<compile_context>
chip_gen: v7x
topology: tpu7x:2x2x1
jax: 0.10.0
libtpu: 0.0.40
codegen_flags: <defaults>
</compile_context>

<pallas_src>
import functools

import jax
import jax.numpy as jnp
from jax.experimental import pallas as pl
from jax.experimental.pallas import tpu as pltpu

NEG_SLOPE = 0.2
BN_EPS = 1e-5

# For output phase p (rows) / q (cols): which original 3x3 taps collapse onto each 2x2 tap offset.
# phase 0: offset 0 <- tap 0 ; offset 1 <- taps 1,2       (output index 2i+0)
# phase 1: offset 0 <- taps 0,1 ; offset 1 <- tap 2       (output index 2i+1)
_PHASE_TAPS = (((0,), (1, 2)),
               ((0, 1), (2,)))


def _up_block_kernel(xm_ref, xh0_ref, xh1_ref, w_ref, shift_ref, o_ref, *,
                     TH, W, Cin, Cout, mxu_dtype):
    # xm_ref:    (TH, W+2, Cin)   zero-padded ORIGINAL-resolution rows of this tile
    # xh0_ref:   (1,  W+2, Cin)   first halo row below the tile (from the same x_pad array)
    # xh1_ref:   (1,  W+2, Cin)   second halo row below the tile
    # w_ref:     (9*Cin, 4*Cout)  fused sub-pixel weights, BN scale folded, zero taps per phase
    # shift_ref: (1, W*4*Cout)    conv bias + BN shift, tiled lane-dense
    # o_ref:     (TH, W*4*Cout)   lane-dense output; lanes are (w, p, q, cout)
    x = jnp.concatenate([xm_ref[...], xh0_ref[...], xh1_ref[...]], axis=0)
    x = x.astype(jnp.float32)
    # LeakyReLU; f(0)=0 so applying it after zero-padding (and before the folded upsample) is exact.
    x = jnp.where(x > 0, x, NEG_SLOPE * x)

    # Fused 9-tap im2col on the ORIGINAL-resolution tile (all 4 phases share it).
    patch = jnp.concatenate(
        [x[dy:dy + TH, dx:dx + W, :] for dy in range(3) for dx in range(3)],
        axis=-1)                                                          # (TH, W, 9*Cin)

    # Single MXU matmul for all 4 phases; f32 accumulation, bf16 operands on v6e/v7x.
    acc = jax.lax.dot_general(
        patch.astype(mxu_dtype), w_ref[...],
        dimension_numbers=(((2,), (0,)), ((), ())),
        preferred_element_type=jnp.float32)                               # (TH, W, 4*Cout)

    # Lane-densify: move the W index onto lanes so the store is a single unmasked,
    # 128-multiple-wide vst per row instead of masked 4*Cout-wide partial stores.
    dense = jnp.concatenate([acc[:, j, :] for j in range(W)], axis=-1)    # (TH, W*4*Cout)
    o_ref[...] = (dense + shift_ref[...]).astype(o_ref.dtype)


def _pick_tile_h(H, W, Cin, Cout, in_itemsize, out_itemsize, n_batch, tile_h):
    """Largest H-tile that keeps double-buffered blocks comfortably inside VMEM (v7x-safe)."""
    # rough per-row VMEM bytes: padded input row + im2col patch (f32 + mxu copy) + acc + dense out
    row_bytes = ((W + 2) * Cin * in_itemsize
                 + W * 9 * Cin * 6
                 + W * 4 * Cout * (8 + out_itemsize))
    budget = 4 << 20                       # ~4 MiB per grid step -> double buffering fits everywhere
    cap = max(8, budget // max(row_bytes, 1))
    if tile_h is not None:
        cap = min(cap, max(1, int(tile_h)))
    if n_batch == 1 and H > 8:
        cap = min(cap, max(8, (H + 1) // 2))   # keep >=2 grid steps for the 2nd TC on v7x
    # th must divide H and be a multiple of 8 (output-block sublane rule) or equal H itself.
    cands = [d for d in range(1, H + 1) if H % d == 0 and (d % 8 == 0 or d == H)]
    under = [d for d in cands if d <= cap]
    th = max(under) if under else min(cands)
    # TODO(synk): a huge prime H would force th == H here; a cdiv grid + masked edge tile would
    # bound VMEM in that corner case.
    return th, H // th


def up_block_forward(x_nchw, link_nchw, params, *, tile_h=None, mxu_dtype=jnp.bfloat16):
    """Pallas implementation of _up_block.forward(x, link). NCHW in / NCHW out."""
    w, b, gamma, beta, rmean, rvar = params
    N, Cin, H, W = x_nchw.shape
    Cout = w.shape[0]
    H2, W2 = 2 * H, 2 * W
    assert link_nchw.shape[0] == N and link_nchw.shape[2:] == (H2, W2)
    out_dtype = x_nchw.dtype

    th, nt = _pick_tile_h(H, W, Cin, Cout,
                          jnp.dtype(x_nchw.dtype).itemsize,
                          jnp.dtype(out_dtype).itemsize, N, tile_h)

    # ---- glue (ORIGINAL resolution only; no 2x repeat): NCHW -> NHWC + 1px zero pad.
    # The transpose and pad fuse into one XLA pass; the pad rows/cols are the upsampled-resolution
    # conv padding collapsed back to original resolution (exact because LeakyReLU(0)=0).
    x = jnp.transpose(x_nchw, (0, 2, 3, 1))
    x_pad = jnp.pad(x, ((0, 0), (1, 1), (1, 1), (0, 0)))                  # (N, H+2, W+2, Cin)

    # ---- parameter folding: BN scale into weights, conv bias + BN shift into one vector ----
    scale = gamma / jnp.sqrt(rvar + BN_EPS)                               # (Cout,)
    shift = b * scale + beta - rmean * scale                              # (Cout,)
    w_hwio = jnp.transpose(w, (2, 3, 1, 0)).astype(jnp.float32) * scale   # (3,3,Cin,Cout)

    # Fused sub-pixel weight: for output phase (p,q) only taps dy in {p,p+1}, dx in {q,q+1} are
    # nonzero; their value is the sum of the original 3x3 taps that nearest-upsampling collapses.
    zero_blk = jnp.zeros((Cin, Cout), jnp.float32)
    rows = []
    for dy in range(3):
        for dx in range(3):
            phase_cols = []
            for p in range(2):
                for q in range(2):
                    if p <= dy <= p + 1 and q <= dx <= q + 1:
                        wt = sum(w_hwio[ky, kx]
                                 for ky in _PHASE_TAPS[p][dy - p]
                                 for kx in _PHASE_TAPS[q][dx - q])        # (Cin, Cout)
                    else:
                        wt = zero_blk
                    phase_cols.append(wt)
            rows.append(jnp.concatenate(phase_cols, axis=1))              # (Cin, 4*Cout)
    w_packed = jnp.concatenate(rows, axis=0).astype(mxu_dtype)            # (9*Cin, 4*Cout)

    shift_dense = jnp.tile(jnp.tile(shift, 4), W).reshape(1, W * 4 * Cout).astype(jnp.float32)

    # ---- explicit VMEM budgeting (raises v5e's 16 MiB scoped default, stays under v7x's 64 MiB) --
    in_item = jnp.dtype(x_pad.dtype).itemsize
    blk_bytes = ((th + 2) * (W + 2) * Cin * in_item
                 + 9 * Cin * 4 * Cout * jnp.dtype(mxu_dtype).itemsize
                 + W * 4 * Cout * 4
                 + th * W * 4 * Cout * jnp.dtype(out_dtype).itemsize)
    vmem_limit = int(min(64 << 20, max(32 << 20, 4 * blk_bytes)))

    kern = functools.partial(_up_block_kernel, TH=th, W=W, Cin=Cin, Cout=Cout,
                             mxu_dtype=mxu_dtype)

    out = pl.pallas_call(
        kern,
        out_shape=jax.ShapeDtypeStruct((N, H, W * 4 * Cout), out_dtype),
        grid=(N, nt),
        in_specs=[
            # main tile rows (original resolution, padded along W)
            pl.BlockSpec((None, th, W + 2, Cin), lambda n, t: (n, t, 0, 0)),
            # 2-row halo below the tile, sourced straight from x_pad (no wrapper gather)
            pl.BlockSpec((None, 1, W + 2, Cin),
                         lambda n, t, th=th: (n, (t + 1) * th, 0, 0)),
            pl.BlockSpec((None, 1, W + 2, Cin),
                         lambda n, t, th=th: (n, (t + 1) * th + 1, 0, 0)),
            pl.BlockSpec((9 * Cin, 4 * Cout), lambda n, t: (0, 0)),
            pl.BlockSpec((1, W * 4 * Cout), lambda n, t: (0, 0)),
        ],
        out_specs=pl.BlockSpec((None, th, W * 4 * Cout), lambda n, t: (n, t, 0)),
        compiler_params=pltpu.CompilerParams(
            dimension_semantics=("parallel", "parallel"),
            vmem_limit_bytes=vmem_limit),
    )(x_pad, x_pad, x_pad, w_packed, shift_dense)

    # Pixel-shuffle the 4 lane-packed phases back to (2H, 2W), go to NCHW, and concat the untouched
    # link in XLA (fuses with this transpose) instead of round-tripping it through the kernel.
    y = out.reshape(N, H, W, 2, 2, Cout)
    y = jnp.transpose(y, (0, 5, 1, 3, 2, 4)).reshape(N, Cout, H2, W2)
    return jnp.concatenate([y, link_nchw], axis=1)


def _reference_forward(x, link, params):
    """Pure-JAX reference mirroring the PyTorch module (NCHW)."""
    w, b, gamma, beta, rmean, rvar = params
    y = jnp.where(x > 0, x, NEG_SLOPE * x)
    y = jnp.repeat(jnp.repeat(y, 2, axis=2), 2, axis=3)
    y = jax.lax.conv_general_dilated(
        y, w, window_strides=(1, 1), padding=((1, 1), (1, 1)),
        dimension_numbers=("NCHW", "OIHW", "NCHW"))
    y = y + b.reshape(1, -1, 1, 1)
    scale = gamma / jnp.sqrt(rvar + BN_EPS)
    shift = beta - rmean * scale
    y = y * scale.reshape(1, -1, 1, 1) + shift.reshape(1, -1, 1, 1)
    return jnp.concatenate([y, link], axis=1)


if __name__ == "__main__":
    key = jax.random.PRNGKey(0)
    k_x, k_l, k_w, k_b, k_g, k_be, k_m, k_v = jax.random.split(key, 8)

    N, Cin, H, W = 2, 8, 16, 16        # x: (2, 8, 16, 16)
    Cout = 8                           # features
    Clink = 8                          # skip-connection channels
    H2, W2 = 2 * H, 2 * W

    x = jax.random.normal(k_x, (N, Cin, H, W), jnp.float32)
    link = jax.random.normal(k_l, (N, Clink, H2, W2), jnp.float32)

    # deterministic synthetic parameters (Conv2d OIHW weight + bias, BN params)
    w = 0.1 * jax.random.normal(k_w, (Cout, Cin, 3, 3), jnp.float32)
    b = 0.1 * jax.random.normal(k_b, (Cout,), jnp.float32)
    gamma = 1.0 + 0.1 * jax.random.normal(k_g, (Cout,), jnp.float32)
    beta = 0.1 * jax.random.normal(k_be, (Cout,), jnp.float32)
    rmean = 0.1 * jax.random.normal(k_m, (Cout,), jnp.float32)
    rvar = jnp.abs(1.0 + 0.1 * jax.random.normal(k_v, (Cout,), jnp.float32))
    params = (w, b, gamma, beta, rmean, rvar)

    ref = _reference_forward(x, link, params)

    # 1) exact f32 MXU path, auto tile (single H tile per image, grid pipelined over batch)
    out = up_block_forward(x, link, params, mxu_dtype=jnp.float32)
    out = jax.block_until_ready(out)
    assert out.shape == (N, Cout + Clink, H2, W2), out.shape
    err = float(jnp.max(jnp.abs(out - ref)))
    assert jnp.allclose(out, ref, atol=1e-4, rtol=1e-4), err

    # 2) exact f32 path with 2 H-tiles -> exercises the halo BlockSpecs across tile boundaries
    out_t = up_block_forward(x, link, params, tile_h=8, mxu_dtype=jnp.float32)
    err_t = float(jnp.max(jnp.abs(out_t - ref)))
    assert jnp.allclose(out_t, ref, atol=1e-4, rtol=1e-4), err_t

    # 3) bf16 MXU-operand path (v6e/v7x native; f32 accumulation), looser tolerance
    out_bf = up_block_forward(x, link, params, mxu_dtype=jnp.bfloat16)
    err_bf = float(jnp.max(jnp.abs(out_bf - ref)))
    assert jnp.allclose(out_bf, ref, atol=3e-2, rtol=1e-2), err_bf

    print("KERNEL_OK")
</pallas_src>

<mosaic_0001>
module attributes {stable_mosaic.version = 11 : i64} {
  func.func @_up_block_kernel(%arg0: i32, %arg1: i32, %arg2: memref<1x16x18x8xf32, #tpu.memory_space<vmem>>, %arg3: memref<1x1x18x8xf32, #tpu.memory_space<vmem>>, %arg4: memref<1x1x18x8xf32, #tpu.memory_space<vmem>>, %arg5: memref<72x32xf32, #tpu.memory_space<vmem>>, %arg6: memref<1x512xf32, #tpu.memory_space<vmem>>, %arg7: memref<1x16x512xf32, #tpu.memory_space<vmem>>) attributes {dimension_semantics = [#tpu.dimension_semantics<parallel>, #tpu.dimension_semantics<parallel>], iteration_bounds = array<i64: 2, 1>, scalar_prefetch = 0 : i64, scratch_operands = 0 : i64, tpu.core_type = #tpu.core_type<tc>, window_params = [{transform_indices = @transform_0, window_bounds = array<i64: 1, 16, 18, 8>}, {transform_indices = @transform_1, window_bounds = array<i64: 1, 1, 18, 8>}, {transform_indices = @transform_2, window_bounds = array<i64: 1, 1, 18, 8>}, {pipeline_mode = #tpu.pipeline_mode<synchronous>, transform_indices = @transform_3, window_bounds = array<i64: 72, 32>}, {pipeline_mode = #tpu.pipeline_mode<synchronous>, transform_indices = @transform_4, window_bounds = array<i64: 1, 512>}, {transform_indices = @transform_5, window_bounds = array<i64: 1, 16, 512>}]} {
    %c0 = arith.constant 0 : index
    %c0_0 = arith.constant 0 : index
    %c0_1 = arith.constant 0 : index
    %c0_2 = arith.constant 0 : index
    %0 = vector.load %arg2[%c0, %c0_0, %c0_1, %c0_2] : memref<1x16x18x8xf32, #tpu.memory_space<vmem>>, vector<1x16x18x8xf32>
    %1 = vector.shape_cast %0 : vector<1x16x18x8xf32> to vector<16x18x8xf32>
    %c0_3 = arith.constant 0 : index
    %c0_4 = arith.constant 0 : index
    %c0_5 = arith.constant 0 : index
    %c0_6 = arith.constant 0 : index
    %2 = vector.load %arg3[%c0_3, %c0_4, %c0_5, %c0_6] : memref<1x1x18x8xf32, #tpu.memory_space<vmem>>, vector<1x1x18x8xf32>
    %3 = vector.shape_cast %2 : vector<1x1x18x8xf32> to vector<1x18x8xf32>
    %c0_7 = arith.constant 0 : index
    %c0_8 = arith.constant 0 : index
    %c0_9 = arith.constant 0 : index
    %c0_10 = arith.constant 0 : index
    %4 = vector.load %arg4[%c0_7, %c0_8, %c0_9, %c0_10] : memref<1x1x18x8xf32, #tpu.memory_space<vmem>>, vector<1x1x18x8xf32>
    %5 = vector.shape_cast %4 : vector<1x1x18x8xf32> to vector<1x18x8xf32>
    %6 = tpu.concatenate %1, %3, %5 in 0 : vector<16x18x8xf32>, vector<1x18x8xf32>, vector<1x18x8xf32> -> vector<18x18x8xf32>
    %cst = arith.constant 0.000000e+00 : f32
    %7 = vector.broadcast %cst : f32 to vector<18x18x8xf32>
    %8 = arith.cmpf ogt, %6, %7 : vector<18x18x8xf32>
    %cst_11 = arith.constant 2.000000e-01 : f32
    %9 = vector.broadcast %cst_11 : f32 to vector<18x18x8xf32>
    %10 = arith.mulf %9, %6 : vector<18x18x8xf32>
    %11 = arith.select %8, %6, %10 : vector<18x18x8xi1>, vector<18x18x8xf32>
    %12 = vector.extract_strided_slice %11 {offsets = [0, 0, 0], sizes = [16, 16, 8], strides = [1, 1, 1]} : vector<18x18x8xf32> to vector<16x16x8xf32>
    %13 = vector.extract_strided_slice %11 {offsets = [0, 1, 0], sizes = [16, 16, 8], strides = [1, 1, 1]} : vector<18x18x8xf32> to vector<16x16x8xf32>
    %14 = vector.extract_strided_slice %11 {offsets = [0, 2, 0], sizes = [16, 16, 8], strides = [1, 1, 1]} : vector<18x18x8xf32> to vector<16x16x8xf32>
    %15 = vector.extract_strided_slice %11 {offsets = [1, 0, 0], sizes = [16, 16, 8], strides = [1, 1, 1]} : vector<18x18x8xf32> to vector<16x16x8xf32>
    %16 = vector.extract_strided_slice %11 {offsets = [1, 1, 0], sizes = [16, 16, 8], strides = [1, 1, 1]} : vector<18x18x8xf32> to vector<16x16x8xf32>
    %17 = vector.extract_strided_slice %11 {offsets = [1, 2, 0], sizes = [16, 16, 8], strides = [1, 1, 1]} : vector<18x18x8xf32> to vector<16x16x8xf32>
    %18 = vector.extract_strided_slice %11 {offsets = [2, 0, 0], sizes = [16, 16, 8], strides = [1, 1, 1]} : vector<18x18x8xf32> to vector<16x16x8xf32>
    %19 = vector.extract_strided_slice %11 {offsets = [2, 1, 0], sizes = [16, 16, 8], strides = [1, 1, 1]} : vector<18x18x8xf32> to vector<16x16x8xf32>
    %20 = vector.extract_strided_slice %11 {offsets = [2, 2, 0], sizes = [16, 16, 8], strides = [1, 1, 1]} : vector<18x18x8xf32> to vector<16x16x8xf32>
    %21 = tpu.concatenate %12, %13, %14, %15, %16, %17, %18, %19, %20 in 2 : vector<16x16x8xf32>, vector<16x16x8xf32>, vector<16x16x8xf32>, vector<16x16x8xf32>, vector<16x16x8xf32>, vector<16x16x8xf32>, vector<16x16x8xf32>, vector<16x16x8xf32>, vector<16x16x8xf32> -> vector<16x16x72xf32>
    %c0_12 = arith.constant 0 : index
    %c0_13 = arith.constant 0 : index
    %22 = vector.load %arg5[%c0_12, %c0_13] : memref<72x32xf32, #tpu.memory_space<vmem>>, vector<72x32xf32>
    %cst_14 = arith.constant dense<0.000000e+00> : vector<16x16x32xf32>
    %23 = tpu.matmul %21, %22, %cst_14 {dimension_numbers = #tpu.dot_dimension_numbers<[2], [0], [0, 1], [1], [0, 0, 0, 1, 1, 1], [], []>} : vector<16x16x72xf32>, vector<72x32xf32>, vector<16x16x32xf32> -> vector<16x16x32xf32>
    %24 = vector.extract_strided_slice %23 {offsets = [0, 0, 0], sizes = [16, 1, 32], strides = [1, 1, 1]} : vector<16x16x32xf32> to vector<16x1x32xf32>
    %25 = vector.shape_cast %24 : vector<16x1x32xf32> to vector<16x32xf32>
    %26 = vector.extract_strided_slice %23 {offsets = [0, 1, 0], sizes = [16, 1, 32], strides = [1, 1, 1]} : vector<16x16x32xf32> to vector<16x1x32xf32>
    %27 = vector.shape_cast %26 : vector<16x1x32xf32> to vector<16x32xf32>
    %28 = vector.extract_strided_slice %23 {offsets = [0, 2, 0], sizes = [16, 1, 32], strides = [1, 1, 1]} : vector<16x16x32xf32> to vector<16x1x32xf32>
    %29 = vector.shape_cast %28 : vector<16x1x32xf32> to vector<16x32xf32>
    %30 = vector.extract_strided_slice %23 {offsets = [0, 3, 0], sizes = [16, 1, 32], strides = [1, 1, 1]} : vector<16x16x32xf32> to vector<16x1x32xf32>
    %31 = vector.shape_cast %30 : vector<16x1x32xf32> to vector<16x32xf32>
    %32 = vector.extract_strided_slice %23 {offsets = [0, 4, 0], sizes = [16, 1, 32], strides = [1, 1, 1]} : vector<16x16x32xf32> to vector<16x1x32xf32>
    %33 = vector.shape_cast %32 : vector<16x1x32xf32> to vector<16x32xf32>
    %34 = vector.extract_strided_slice %23 {offsets = [0, 5, 0], sizes = [16, 1, 32], strides = [1, 1, 1]} : vector<16x16x32xf32> to vector<16x1x32xf32>
    %35 = vector.shape_cast %34 : vector<16x1x32xf32> to vector<16x32xf32>
    %36 = vector.extract_strided_slice %23 {offsets = [0, 6, 0], sizes = [16, 1, 32], strides = [1, 1, 1]} : vector<16x16x32xf32> to vector<16x1x32xf32>
    %37 = vector.shape_cast %36 : vector<16x1x32xf32> to vector<16x32xf32>
    %38 = vector.extract_strided_slice %23 {offsets = [0, 7, 0], sizes = [16, 1, 32], strides = [1, 1, 1]} : vector<16x16x32xf32> to vector<16x1x32xf32>
    %39 = vector.shape_cast %38 : vector<16x1x32xf32> to vector<16x32xf32>
    %40 = vector.extract_strided_slice %23 {offsets = [0, 8, 0], sizes = [16, 1, 32], strides = [1, 1, 1]} : vector<16x16x32xf32> to vector<16x1x32xf32>
    %41 = vector.shape_cast %40 : vector<16x1x32xf32> to vector<16x32xf32>
    %42 = vector.extract_strided_slice %23 {offsets = [0, 9, 0], sizes = [16, 1, 32], strides = [1, 1, 1]} : vector<16x16x32xf32> to vector<16x1x32xf32>
    %43 = vector.shape_cast %42 : vector<16x1x32xf32> to vector<16x32xf32>
    %44 = vector.extract_strided_slice %23 {offsets = [0, 10, 0], sizes = [16, 1, 32], strides = [1, 1, 1]} : vector<16x16x32xf32> to vector<16x1x32xf32>
    %45 = vector.shape_cast %44 : vector<16x1x32xf32> to vector<16x32xf32>
    %46 = vector.extract_strided_slice %23 {offsets = [0, 11, 0], sizes = [16, 1, 32], strides = [1, 1, 1]} : vector<16x16x32xf32> to vector<16x1x32xf32>
    %47 = vector.shape_cast %46 : vector<16x1x32xf32> to vector<16x32xf32>
    %48 = vector.extract_strided_slice %23 {offsets = [0, 12, 0], sizes = [16, 1, 32], strides = [1, 1, 1]} : vector<16x16x32xf32> to vector<16x1x32xf32>
    %49 = vector.shape_cast %48 : vector<16x1x32xf32> to vector<16x32xf32>
    %50 = vector.extract_strided_slice %23 {offsets = [0, 13, 0], sizes = [16, 1, 32], strides = [1, 1, 1]} : vector<16x16x32xf32> to vector<16x1x32xf32>
    %51 = vector.shape_cast %50 : vector<16x1x32xf32> to vector<16x32xf32>
    %52 = vector.extract_strided_slice %23 {offsets = [0, 14, 0], sizes = [16, 1, 32], strides = [1, 1, 1]} : vector<16x16x32xf32> to vector<16x1x32xf32>
    %53 = vector.shape_cast %52 : vector<16x1x32xf32> to vector<16x32xf32>
    %54 = vector.extract_strided_slice %23 {offsets = [0, 15, 0], sizes = [16, 1, 32], strides = [1, 1, 1]} : vector<16x16x32xf32> to vector<16x1x32xf32>
    %55 = vector.shape_cast %54 : vector<16x1x32xf32> to vector<16x32xf32>
    %56 = tpu.concatenate %25, %27, %29, %31, %33, %35, %37, %39, %41, %43, %45, %47, %49, %51, %53, %55 in 1 : vector<16x32xf32>, vector<16x32xf32>, vector<16x32xf32>, vector<16x32xf32>, vector<16x32xf32>, vector<16x32xf32>, vector<16x32xf32>, vector<16x32xf32>, vector<16x32xf32>, vector<16x32xf32>, vector<16x32xf32>, vector<16x32xf32>, vector<16x32xf32>, vector<16x32xf32>, vector<16x32xf32>, vector<16x32xf32> -> vector<16x512xf32>
    %c0_15 = arith.constant 0 : index
    %c0_16 = arith.constant 0 : index
    %57 = vector.load %arg6[%c0_15, %c0_16] : memref<1x512xf32, #tpu.memory_space<vmem>>, vector<1x512xf32>
    %58 = vector.broadcast %57 : vector<1x512xf32> to vector<16x512xf32>
    %59 = arith.addf %56, %58 : vector<16x512xf32>
    %c0_17 = arith.constant 0 : index
    %c0_18 = arith.constant 0 : index
    %c0_19 = arith.constant 0 : index
    %60 = vector.load %arg7[%c0_17, %c0_18, %c0_19] : memref<1x16x512xf32, #tpu.memory_space<vmem>>, vector<1x16x512xf32>
    %61 = vector.shape_cast %60 : vector<1x16x512xf32> to vector<16x512xf32>
    %62 = vector.shape_cast %59 : vector<16x512xf32> to vector<1x16x512xf32>
    tpu.vector_store %arg7[%c0_17, %c0_18, %c0_19], %62 {strides = array<i32>} : memref<1x16x512xf32, #tpu.memory_space<vmem>>, vector<1x16x512xf32>,
    return
  }
  func.func @transform_0(%arg0: i32, %arg1: i32) -> (i32, i32, i32, i32) {
    %c0_i32 = arith.constant 0 : i32
    %c0_i32_0 = arith.constant 0 : i32
    %c0_i32_1 = arith.constant 0 : i32
    return %arg0, %arg1, %c0_i32, %c0_i32_0 : i32, i32, i32, i32
  }
  func.func @transform_1(%arg0: i32, %arg1: i32) -> (i32, i32, i32, i32) {
    %c1_i32 = arith.constant 1 : i32
    %0 = arith.addi %arg1, %c1_i32 : i32
    %c16_i32 = arith.constant 16 : i32
    %1 = arith.muli %0, %c16_i32 : i32
    %c0_i32 = arith.constant 0 : i32
    %c0_i32_0 = arith.constant 0 : i32
    %c0_i32_1 = arith.constant 0 : i32
    return %arg0, %1, %c0_i32, %c0_i32_0 : i32, i32, i32, i32
  }
  func.func @transform_2(%arg0: i32, %arg1: i32) -> (i32, i32, i32, i32) {
    %c1_i32 = arith.constant 1 : i32
    %0 = arith.addi %arg1, %c1_i32 : i32
    %c16_i32 = arith.constant 16 : i32
    %1 = arith.muli %0, %c16_i32 : i32
    %c1_i32_0 = arith.constant 1 : i32
    %2 = arith.addi %1, %c1_i32_0 : i32
    %c0_i32 = arith.constant 0 : i32
    %c0_i32_1 = arith.constant 0 : i32
    %c0_i32_2 = arith.constant 0 : i32
    return %arg0, %2, %c0_i32, %c0_i32_1 : i32, i32, i32, i32
  }
  func.func @transform_3(%arg0: i32, %arg1: i32) -> (i32, i32) {
    %c0_i32 = arith.constant 0 : i32
    %c0_i32_0 = arith.constant 0 : i32
    %c0_i32_1 = arith.constant 0 : i32
    return %c0_i32, %c0_i32_0 : i32, i32
  }
  func.func @transform_4(%arg0: i32, %arg1: i32) -> (i32, i32) {
    %c0_i32 = arith.constant 0 : i32
    %c0_i32_0 = arith.constant 0 : i32
    %c0_i32_1 = arith.constant 0 : i32
    return %c0_i32, %c0_i32_0 : i32, i32
  }
  func.func @transform_5(%arg0: i32, %arg1: i32) -> (i32, i32, i32) {
    %c0_i32 = arith.constant 0 : i32
    %c0_i32_0 = arith.constant 0 : i32
    return %arg0, %arg1, %c0_i32 : i32, i32, i32
  }
}

</mosaic_0001>

<bundles_post_ra>
// kernel: tpu_custom_call.1
= control target key start
LH: loop header
LB: loop body
LE: loop exit
PB: predicated region body
PF: predicated region fallthrough
CT: control target
= control target key end

     0   :  { %10 = vsyncpa [#allocation3], 0  ;;  %s6194_s0 = inlined_call_operand.vmem [shape: f32[2,18,18,8], index: 0, kind: input, shape index: {}]   ;;  %s6195_s1 = inlined_call_operand.vmem [shape: f32[2,18,18,8], index: 1, kind: input, shape index: {}]   ;;  %s6196_s2 = inlined_call_operand.vmem [shape: f32[2,18,18,8], index: 2, kind: input, shape index: {}]   ;;  %s6197_s3 = inlined_call_operand.vmem [shape: f32[72,32], index: 3, kind: input, shape index: {}]   ;;  %s6198_s4 = inlined_call_operand.vmem [shape: f32[1,512], index: 4, kind: input, shape index: {}]   ;;  %s6199_s5 = inlined_call_operand.hbm [shape: f32[2,16,512], index: 5, kind: output, shape index: {}]  }
   0x1   :  { %12 = vsyncpa [#allocation3 + $0x1], 0  ;;  %s3344_s18 = smov 0   ;;  %s3346_s19 = smov 0  }
   0x2   :  { %s3348_s20 = smov 0   ;;  %s3350_s21 = smov 0  }
   0x3   :  { %s3352_s22 = smov 0   ;;  %s3354_s23 = smov 0  }
   0x4 LB: > { %s2971_s24 = sadd.s32 4294967295, %s3301_s23   ;;  %s2972_s25 = sadd.s32 4294967294, %s3301_s23   ;;  %s3301_s23 = sphi %s3354_s23, %s18_s23   ;;  %s3297_s22 = sphi %s3352_s22, %s6552_s22   ;;  %s3293_s21 = sphi %s3350_s21, %s6551_s21   ;;  %s3289_s20 = sphi %s3348_s20, %s6550_s20   ;;  %s3285_s19 = sphi %s3346_s19, %s6549_s19   ;;  %s3281_s18 = sphi %s3344_s18, %s6548_s18  }
   0x5   : > { %s30_s26 = sadd.s32 1, %s3297_s22  ;;  %s175_s27 = sadd.s32 1, %s3289_s20 }
   0x6   : > { %p32_p0 = scmp.ge.s32.totalorder %s30_s26, 2  ;;  %p185_p1 = scmp.ne.s32.totalorder %s3289_s20, %s3285_s19 }
   0x7   : > { %p186_p2 = scmp.eq.s32.totalorder %s2971_s24, 1  ;;  %p191_p3 = scmp.ne.s32.totalorder %s3285_s19, %s3281_s18 }
   0x8   : > { %s6554_s26 = smov (%p32_p0, %s30_s26), 0  ;;  %p192_p5 = scmp.eq.s32.totalorder %s2972_s25, 1 }
   0x9   : > { %p3384_p4 = por %p186_p2, %p185_p1  ;;  %s170_s29 = ssub.s32 %s3297_s22, %s6554_s26 }
   0xa   : > { %p2975_p6 = scmp.ge.s32.totalorder %s3301_s23, 1  ;;  %p173_p7 = scmp.eq.s32.totalorder %s170_s29, 0 }
   0xb   : > { %p3391_p8 = por %p192_p5, %p191_p3  ;;  %p274_p9 = scmp.lt.s32.totalorder %s3301_s23, 3 }
   0xc   : > { %s3397_s6 = scalar_select %p173_p7, %s3289_s20, %s175_s27  }
   0xd   : > { %p275_p10 = pnand %p2975_p6, %p274_p9 }
   0xf   : > { %278 = sbr.rel (%p275_p10) target bundleno = 1058 (0x422), region = 40 }
  0x16   : > { %p341_p11 = scmp.lt.s32.totalorder %s3293_s21, 1  ;;  %vm649_vm0 = vcmask 1046528   ;;  %s3303_s12 = smov 8  }
  0x17   : > { %s3304_s13 = smov 16   ;;  %s3305_s14 = smov 24  }
  0x18   : > { %s342_s7 = scalar_select %p341_p11, %s3293_s21, 1 }
  0x19   : > { %s3306_s15 = smov 32   ;;  %s3307_s16 = smov 40  }
  0x1a   : > { %s3401_s8 = smul.u32 432, %s342_s7  ;;  %s3308_s17 = smov 48  }
  0x1b   : > { %s3310_s24 = smov 64   ;;  %s3312_s10 = smov [#allocation2]  }
  0x1c   : > { %s3407_s11 = scalar_lea.vmem %s6194_s0, %s3401_s8  ;;  %s3018_s25 = sadd.s32 384, %s3401_s8 }
  0x1d   : > { %v388_v0 = vld [vmem:[%s3407_s11 + $0x18] sm:$0xff]  ;;  %v389_v1 = vld [vmem:[%s3407_s11 + $0x20] sm:$0xff]  ;;  %v386_v5 = vld [vmem:[%s3407_s11 + $0x8] sm:$0xff]  ;;  %s366_s7 = scalar_lea.vmem %s6195_s1, %s3018_s25  ;;  %s3021_s25 = sshll.u32 %s3293_s21, 10 }
  0x1e   : > { %v385_v2 = vld [vmem:[%s3407_s11] sm:$0xff]  ;;  %vm442_vm1 = vcmp.gt.f32.partialorder %v388_v0, 0.0  ;;  %vm443_vm2 = vcmp.gt.f32.partialorder %v389_v1, 0.0  ;;  %v496_v3 = vmul.f32 0.2, %v388_v0  ;;  %vm440_vm4 = vcmp.gt.f32.partialorder %v386_v5, 0.0 }
  0x1f   : > { %v497_v4 = vmul.f32 0.2, %v389_v1  ;;  %vm439_vm3 = vcmp.gt.f32.partialorder %v385_v2, 0.0  ;;  %v493_v6 = vmul.f32 0.2, %v385_v2  ;;  %v392_v12 = vld [vmem:[%s3407_s11 + $0x38] sm:$0xff] }
  0x20   : > { %v390_v7 = vld [vmem:[%s3407_s11 + $0x28] sm:$0x3]  ;;  %v3414_v8 = vsel %vm442_vm1, %v388_v0, %v496_v3  ;;  %v494_v10 = vmul.f32 0.2, %v386_v5  ;;  %v387_v11 = vld [vmem:[%s3407_s11 + $0x10] sm:$0x3] }
  0x21   : > { %6319 = vst [vmem:[#allocation5_spill] sm:$0xff] %v3414_v8  ;;  %v3416_v9 = vsel %vm443_vm2, %v389_v1, %v497_v4  ;;  %v655_v13 = vrot.slane %v3414_v8, 1  ;;  %v3422_v15 = vsel %vm439_vm3, %v385_v2, %v493_v6  ;;  %vm444_vm5 = vcmp.gt.f32.partialorder %v390_v7, 0.0  ;;  %v393_v16 = vld [vmem:[%s3407_s11 + $0x40] sm:$0x3]  ;;  %v391_v20 = vld [vmem:[%s3407_s11 + $0x30] sm:$0xff] }
  0x22   : > { %6320 = vst [vmem:[#allocation6_spill] sm:$0xff] %v3416_v9  ;;  %v656_v14 = vrot.slane %v3416_v9, 1  ;;  %6321 = vst [vmem:[#allocation7_spill] sm:$0xff] %v3422_v15  ;;  %v3425_v17 = vsel %vm440_vm4, %v386_v5, %v494_v10  ;;  %v650_v18 = vrot.slane %v3422_v15, 1  ;;  %v498_v19 = vmul.f32 0.2, %v390_v7 }
  0x23   : > { %6322 = vst [vmem:[#allocation8_spill] sm:$0xff] %v3425_v17  ;;  %vm441_vm6 = vcmp.gt.f32.partialorder %v387_v11, 0.0  ;;  %v651_v22 = vrot.slane %v3425_v17, 1  ;;  %v495_v23 = vmul.f32 0.2, %v387_v11  ;;  %vm446_vm7 = vcmp.gt.f32.partialorder %v392_v12, 0.0 }
  0x24   : > { %v3430_v21 = vsel %vm649_vm0, %v655_v13, %v656_v14  ;;  %v3435_v24 = vsel %vm444_vm5, %v390_v7, %v498_v19  ;;  %vm447_vm8 = vcmp.gt.f32.partialorder %v393_v16, 0.0  ;;  %v500_v25 = vmul.f32 0.2, %v392_v12  ;;  %v395_v27 = vld [vmem:[%s3407_s11 + $0x50] sm:$0xff]  ;;  %v396_v31 = vld [vmem:[%s3407_s11 + $0x58] sm:$0x3] }
  0x25   : > { %6323 = vst [vmem:[#allocation9_spill] sm:$0xff] %v3430_v21  ;;  %734 = vrot.lane.b32.xlu1 %v3430_v21, %s3303_s12  ;;  %v501_v26 = vmul.f32 0.2, %v393_v16  ;;  %v652_v28 = vsel %vm649_vm0, %v650_v18, %v651_v22  ;;  %v658_v29 = vrot.slane %v3435_v24, 1  ;;  %v3440_v30 = vsel %vm441_vm6, %v387_v11, %v495_v23  ;;  %v394_v36 = vld [vmem:[%s3407_s11 + $0x48] sm:$0xff]  ;;  %v397_v48 = vld [vmem:[%s3407_s11 + $0x60] sm:$0xff] }
  0x26   : > { %vm445_vm9 = vcmp.gt.f32.partialorder %v391_v20, 0.0  ;;  %730 = vrot.lane.b32.xlu0 %v652_v28, %s3303_s12  ;;  %v653_v32 = vrot.slane %v3440_v30, 1  ;;  %v3445_v33 = vsel %vm446_vm7, %v392_v12, %v500_v25  ;;  %v499_v35 = vmul.f32 0.2, %v391_v20  ;;  %v398_v40 = vld [vmem:[%s3407_s11 + $0x68] sm:$0xff]  ;;  %v401_v51 = vld [vmem:[%s3407_s11 + $0x80] sm:$0xff] }
  0x27   : > { %v3447_v34 = vsel %vm447_vm8, %v393_v16, %v501_v26  ;;  %v3451_v37 = vsel %vm649_vm0, %v656_v14, %v658_v29  ;;  %v661_v38 = vrot.slane %v3445_v33, 1  ;;  %vm449_vm10 = vcmp.gt.f32.partialorder %v395_v27, 0.0  ;;  %v399_v41 = vld [vmem:[%s3407_s11 + $0x70] sm:$0x3]  ;;  %v402_v56 = vld [vmem:[%s3407_s11 + $0x88] sm:$0x3] }
  0x28   : > { %6324 = vst [vmem:[#allocation10_spill] sm:$0xff] %v3451_v37  ;;  %v663_v39 = vrot.slane %v3447_v34, 1  ;;  %v654_v42 = vsel %vm649_vm0, %v651_v22, %v653_v32  ;;  %v3461_v43 = vsel %vm445_vm9, %v391_v20, %v499_v35  ;;  %vm450_vm11 = vcmp.gt.f32.partialorder %v396_v31, 0.0  ;;  %v400_v63 = vld [vmem:[%s3407_s11 + $0x78] sm:$0xff]  ;;  %v405_v4 = vld [vmem:[%s3407_s11 + $0xa0] sm:$0x3] }
  0x29   : > { %736 = vrot.lane.b32.xlu1 %v3451_v37, %s3303_s12  ;;  %v503_v44 = vmul.f32 0.2, %v395_v27  ;;  %v660_v46 = vrot.slane %v3461_v43, 1  ;;  %v504_v47 = vmul.f32 0.2, %v396_v31  ;;  %vm448_vm12 = vcmp.gt.f32.partialorder %v394_v36, 0.0 }
  0x2a   : > { %v3464_v45 = vsel %vm649_vm0, %v661_v38, %v663_v39  ;;  %732 = vrot.lane.b32.xlu0 %v654_v42, %s3303_s12  ;;  %v502_v50 = vmul.f32 0.2, %v394_v36  ;;  %vm452_vm13 = vcmp.gt.f32.partialorder %v398_v40, 0.0  ;;  %vm453_vm14 = vcmp.gt.f32.partialorder %v399_v41, 0.0  ;;  %v404_v3 = vld [vmem:[%s3407_s11 + $0x98] sm:$0xff]  ;;  %v403_v18 = vld [vmem:[%s3407_s11 + $0x90] sm:$0xff] }
  0x2b   : > { %6325 = vst [vmem:[#allocation11_spill] sm:$0xff] %v3464_v45  ;;  %v3469_v49 = vsel %vm449_vm10, %v395_v27, %v503_v44  ;;  %v3473_v52 = vsel %vm649_vm0, %v660_v46, %v661_v38  ;;  %v3475_v53 = vsel %vm450_vm11, %v396_v31, %v504_v47  ;;  %v506_v55 = vmul.f32 0.2, %v398_v40  ;;  %v407_v19 = vld [vmem:[%s3407_s11 + $0xb0] sm:$0xff]  ;;  %v408_v20 = vld [vmem:[%s3407_s11 + $0xb8] sm:$0x3] }
  0x2c   : > { %6326 = vst [vmem:[#allocation12_spill] sm:$0xff] %v3473_v52  ;;  %v666_v54 = vrot.slane %v3469_v49, 1  ;;  %v668_v57 = vrot.slane %v3475_v53, 1  ;;  %v3482_v58 = vsel %vm448_vm12, %v394_v36, %v502_v50  ;;  %v507_v59 = vmul.f32 0.2, %v399_v41  ;;  %v406_v35 = vld [vmem:[%s3407_s11 + $0xa8] sm:$0xff] }
  0x2d   : > { %740 = vrot.lane.b32.xlu1 %v3464_v45, %s3303_s12  ;;  %vm451_vm15 = vcmp.gt.f32.partialorder %v397_v48, 0.0  ;;  %v665_v60 = vrot.slane %v3482_v58, 1  ;;  %v3485_v61 = vsel %vm452_vm13, %v398_v40, %v506_v55  ;;  %v505_v62 = vmul.f32 0.2, %v397_v48 }
  0x2e   : > { %vm455_vm1 = vcmp.gt.f32.partialorder %v401_v51, 0.0  ;;  %738 = vrot.lane.b32.xlu0 %v3473_v52, %s3303_s12  ;;  %v3491_v0 = vsel %vm649_vm0, %v666_v54, %v668_v57  ;;  %v3494_v1 = vsel %vm453_vm14, %v399_v41, %v507_v59  ;;  %v671_v2 = vrot.slane %v3485_v61, 1  ;;  %v410_v41 = vld [vmem:[%s3407_s11 + $0xc8] sm:$0xff]  ;;  %v409_v57 = vld [vmem:[%s3407_s11 + $0xc0] sm:$0xff] }
  0x2f   : > { %6327 = vst [vmem:[#allocation13_spill] sm:$0xff] %v3491_v0  ;;  %vm456_vm2 = vcmp.gt.f32.partialorder %v402_v56, 0.0  ;;  %v3500_v5 = vsel %vm649_vm0, %v665_v60, %v666_v54  ;;  %v673_v6 = vrot.slane %v3494_v1, 1  ;;  %v3503_v7 = vsel %vm451_vm15, %v397_v48, %v505_v62  ;;  %v411_v48 = vld [vmem:[%s3407_s11 + $0xd0] sm:$0x3]  ;;  %v413_v59 = vld [vmem:[%s3407_s11 + $0xe0] sm:$0xff] }
  0x30   : > { %6328 = vst [vmem:[#allocation14_spill] sm:$0xff] %v3500_v5  ;;  %v509_v10 = vmul.f32 0.2, %v401_v51  ;;  %v670_v11 = vrot.slane %v3503_v7, 1  ;;  %v510_v12 = vmul.f32 0.2, %v402_v56 }
  0x31   : > { %744 = vrot.lane.b32.xlu1 %v3491_v0, %s3303_s12  ;;  %vm454_vm3 = vcmp.gt.f32.partialorder %v400_v63, 0.0  ;;  %v508_v13 = vmul.f32 0.2, %v400_v63  ;;  %v3509_v14 = vsel %vm649_vm0, %v671_v2, %v673_v6  ;;  %vm458_vm4 = vcmp.gt.f32.partialorder %v404_v3, 0.0  ;;  %v428_v0 = vld [vmem:[%s3407_s11 + $0x158] sm:$0xff] }
  0x32   : > { %6329 = vst [vmem:[#allocation15_spill] sm:$0xff] %v3509_v14  ;;  %v3512_v16 = vsel %vm455_vm1, %v401_v51, %v509_v10  ;;  %vm459_vm5 = vcmp.gt.f32.partialorder %v405_v4, 0.0  ;;  %742 = vrot.lane.b32.xlu0 %v3500_v5, %s3303_s12  ;;  %v3520_v22 = vsel %vm649_vm0, %v670_v11, %v671_v2  ;;  %v3523_v23 = vsel %vm456_vm2, %v402_v56, %v510_v12  ;;  %v414_v2 = vld [vmem:[%s3407_s11 + $0xe8] sm:$0x3]  ;;  %v429_v5 = vld [vmem:[%s3407_s11 + $0x160] sm:$0x3] }
  0x33   : > { %6330 = vst [vmem:[#allocation16_spill] sm:$0xff] %v3520_v22  ;;  %v676_v25 = vrot.slane %v3512_v16, 1  ;;  %v3526_v26 = vsel %vm454_vm3, %v400_v63, %v508_v13  ;;  %v678_v27 = vrot.slane %v3523_v23, 1  ;;  %v512_v29 = vmul.f32 0.2, %v404_v3  ;;  %v412_v13 = vld [vmem:[%s3407_s11 + $0xd8] sm:$0xff] }
  0x34   : > { %v675_v28 = vrot.slane %v3526_v26, 1  ;;  %v513_v31 = vmul.f32 0.2, %v405_v4  ;;  %vm457_vm6 = vcmp.gt.f32.partialorder %v403_v18, 0.0  ;;  %v511_v32 = vmul.f32 0.2, %v403_v18 }
  0x35   : > { %748 = vrot.lane.b32.xlu1 %v3509_v14, %s3303_s12  ;;  %vm461_vm7 = vcmp.gt.f32.partialorder %v407_v19, 0.0  ;;  %vm462_vm8 = vcmp.gt.f32.partialorder %v408_v20, 0.0  ;;  %v3534_v36 = vsel %vm649_vm0, %v676_v25, %v678_v27  ;;  %v3540_v39 = vsel %vm458_vm4, %v404_v3, %v512_v29 }
  0x36   : > { %6331 = vst [vmem:[#allocation17_spill] sm:$0xff] %v3534_v36  ;;  %v3537_v38 = vsel %vm649_vm0, %v675_v28, %v676_v25  ;;  %v3543_v40 = vsel %vm459_vm5, %v405_v4, %v513_v31  ;;  %746 = vrot.lane.b32.xlu0 %v3520_v22, %s3303_s12  ;;  %v681_v42 = vrot.slane %v3540_v39, 1  ;;  %v3550_v46 = vsel %vm457_vm6, %v403_v18, %v511_v32  ;;  %v416_v25 = vld [vmem:[%s3407_s11 + $0xf8] sm:$0xff]  ;;  %v417_v32 = vld [vmem:[%s3407_s11 + $0x100] sm:$0x3] }
  0x37   : > { %6332 = vst [vmem:[#allocation18_spill] sm:$0xff] %v3537_v38  ;;  %v683_v44 = vrot.slane %v3543_v40, 1  ;;  %v515_v47 = vmul.f32 0.2, %v407_v19  ;;  %v680_v50 = vrot.slane %v3550_v46, 1  ;;  %vm460_vm9 = vcmp.gt.f32.partialorder %v406_v35, 0.0 }
  0x38   : > { %v516_v51 = vmul.f32 0.2, %v408_v20  ;;  %v514_v54 = vmul.f32 0.2, %v406_v35  ;;  %vm464_vm10 = vcmp.gt.f32.partialorder %v410_v41, 0.0  ;;  %vm465_vm11 = vcmp.gt.f32.partialorder %v411_v48, 0.0 }
  0x39   : > { %752 = vrot.lane.b32.xlu1 %v3534_v36, %s3303_s12  ;;  %v3557_v55 = vsel %vm649_vm0, %v681_v42, %v683_v44  ;;  %v3560_v56 = vsel %vm461_vm7, %v407_v19, %v515_v47  ;;  %v3574_v3 = vsel %vm649_vm0, %v680_v50, %v681_v42  ;;  %v518_v6 = vmul.f32 0.2, %v410_v41  ;;  %v415_v50 = vld [vmem:[%s3407_s11 + $0xf0] sm:$0xff] }
  0x3a   : > { %6333 = vst [vmem:[#allocation19_spill] sm:$0xff] %v3557_v55  ;;  %v3565_v60 = vsel %vm462_vm8, %v408_v20, %v516_v51  ;;  %v686_v62 = vrot.slane %v3560_v56, 1  ;;  %v3568_v63 = vsel %vm460_vm9, %v406_v35, %v514_v54  ;;  %750 = vrot.lane.b32.xlu0 %v3537_v38, %s3303_s12  ;;  %6334 = vst [vmem:[#allocation20_spill] sm:$0xff] %v3574_v3  ;;  %v519_v10 = vmul.f32 0.2, %v411_v48 }
  0x3b   : > { %v688_v4 = vrot.slane %v3565_v60, 1  ;;  %v685_v11 = vrot.slane %v3568_v63, 1  ;;  %vm463_vm12 = vcmp.gt.f32.partialorder %v409_v57, 0.0  ;;  %v517_v12 = vmul.f32 0.2, %v409_v57 }
  0x3c   : > { %vm467_vm13 = vcmp.gt.f32.partialorder %v413_v59, 0.0  ;;  %v3585_v19 = vsel %vm464_vm10, %v410_v41, %v518_v6  ;;  %v3587_v20 = vsel %vm465_vm11, %v411_v48, %v519_v10  ;;  %vm468_vm14 = vcmp.gt.f32.partialorder %v414_v2, 0.0 }
  0x3d   : > { %756 = vrot.lane.b32.xlu1 %v3557_v55, %s3303_s12  ;;  %v3582_v18 = vsel %vm649_vm0, %v686_v62, %v688_v4  ;;  %6336 = vst [vmem:[#allocation22_spill] sm:$0xff] %v3585_v19  ;;  %v691_v27 = vrot.slane %v3585_v19, 1  ;;  %v693_v28 = vrot.slane %v3587_v20, 1  ;;  %v3592_v29 = vsel %vm463_vm12, %v409_v57, %v517_v12  ;;  %v419_v57 = vld [vmem:[%s3407_s11 + $0x110] sm:$0xff] }
  0x3e   : > { %6335 = vst [vmem:[#allocation21_spill] sm:$0xff] %v3582_v18  ;;  %6337 = vst [vmem:[#allocation23_spill] sm:$0xff] %v3592_v29  ;;  %v521_v31 = vmul.f32 0.2, %v413_v59  ;;  %754 = vrot.lane.b32.xlu0 %v3574_v3, %s3303_s12  ;;  %v690_v35 = vrot.slane %v3592_v29, 1  ;;  %vm466_vm15 = vcmp.gt.f32.partialorder %v412_v13, 0.0  ;;  %v3599_v44 = vsel %vm649_vm0, %v685_v11, %v686_v62 }
  0x3f   : > { %v522_v41 = vmul.f32 0.2, %v414_v2  ;;  %v520_v42 = vmul.f32 0.2, %v412_v13  ;;  %6338 = vst [vmem:[#allocation24_spill] sm:$0xff] %v3599_v44  ;;  %v3602_v47 = vsel %vm649_vm0, %v691_v27, %v693_v28  ;;  %vm470_vm1 = vcmp.gt.f32.partialorder %v416_v25, 0.0 }
  0x40   : > { %6339 = vst [vmem:[#allocation25_spill] sm:$0xff] %v3602_v47  ;;  %v3605_v48 = vsel %vm467_vm13, %v413_v59, %v521_v31  ;;  %vm471_vm2 = vcmp.gt.f32.partialorder %v417_v32, 0.0  ;;  %v420_v62 = vld [vmem:[%s3407_s11 + $0x118] sm:$0x3]  ;;  %v524_v6 = vmul.f32 0.2, %v416_v25 }
  0x41   : > { %6340 = vst [vmem:[#allocation26_spill] sm:$0xff] %v3605_v48  ;;  %760 = vrot.lane.b32.xlu1 %v3582_v18, %s3303_s12  ;;  %v3611_v51 = vsel %vm468_vm14, %v414_v2, %v522_v41  ;;  %v3613_v54 = vsel %vm466_vm15, %v412_v13, %v520_v42  ;;  %v696_v4 = vrot.slane %v3605_v48, 1  ;;  %v525_v10 = vmul.f32 0.2, %v417_v32  ;;  %v418_v13 = vld [vmem:[%s3407_s11 + $0x108] sm:$0xff]  ;;  %v425_v3 = vld [vmem:[%s3407_s11 + $0x140] sm:$0xff] }
  0x42   : > { %6341 = vst [vmem:[#allocation27_spill] sm:$0xff] %v3613_v54  ;;  %v698_v59 = vrot.slane %v3611_v51, 1  ;;  %758 = vrot.lane.b32.xlu0 %v3599_v44, %s3303_s12  ;;  %v3622_v2 = vsel %vm649_vm0, %v690_v35, %v691_v27  ;;  %v695_v11 = vrot.slane %v3613_v54, 1  ;;  %vm469_vm3 = vcmp.gt.f32.partialorder %v415_v50, 0.0  ;;  %v422_v41 = vld [vmem:[%s3407_s11 + $0x128] sm:$0xff] }
  0x43   : > { %6342 = vst [vmem:[#allocation28_spill] sm:$0xff] %v3622_v2  ;;  %v523_v12 = vmul.f32 0.2, %v415_v50  ;;  %v3626_v28 = vsel %vm470_vm1, %v416_v25, %v524_v6  ;;  %v3628_v31 = vsel %vm471_vm2, %v417_v32, %v525_v10  ;;  %vm473_vm4 = vcmp.gt.f32.partialorder %v419_v57, 0.0  ;;  %v423_v44 = vld [vmem:[%s3407_s11 + $0x130] sm:$0x3] }
  0x44   : > { %vm474_vm5 = vcmp.gt.f32.partialorder %v420_v62, 0.0  ;;  %v701_v42 = vrot.slane %v3626_v28, 1  ;;  %v703_v27 = vrot.slane %v3628_v31, 1  ;;  %v527_v18 = vmul.f32 0.2, %v419_v57 }
  0x45   : > { %764 = vrot.lane.b32.xlu1 %v3602_v47, %s3303_s12  ;;  %v3635_v35 = vsel %vm469_vm3, %v415_v50, %v523_v12  ;;  %v3639_v25 = vsel %vm649_vm0, %v696_v4, %v698_v59  ;;  %v528_v32 = vmul.f32 0.2, %v420_v62  ;;  %vm472_vm6 = vcmp.gt.f32.partialorder %v418_v13, 0.0  ;;  %v421_v12 = vld [vmem:[%s3407_s11 + $0x120] sm:$0xff] }
  0x46   : > { %6343 = vst [vmem:[#allocation29_spill] sm:$0xff] %v3639_v25  ;;  %v526_v6 = vmul.f32 0.2, %v418_v13  ;;  %762 = vrot.lane.b32.xlu0 %v3622_v2, %s3303_s12  ;;  %v3644_v10 = vsel %vm649_vm0, %v695_v11, %v696_v4  ;;  %v700_v47 = vrot.slane %v3635_v35, 1  ;;  %v3648_v50 = vsel %vm473_vm4, %v419_v57, %v527_v18  ;;  %v426_v18 = vld [vmem:[%s3407_s11 + $0x148] sm:$0x3] }
  0x47   : > { %6344 = vst [vmem:[#allocation30_spill] sm:$0xff] %v3644_v10  ;;  %v3652_v59 = vsel %vm474_vm5, %v420_v62, %v528_v32  ;;  %vm476_vm7 = vcmp.gt.f32.partialorder %v422_v41, 0.0  ;;  %vm477_vm8 = vcmp.gt.f32.partialorder %v423_v44, 0.0  ;;  %v3660_v4 = vsel %vm649_vm0, %v701_v42, %v703_v27  ;;  %v424_v32 = vld [vmem:[%s3407_s11 + $0x138] sm:$0xff] }
  0x48   : > { %v3654_v55 = vsel %vm472_vm6, %v418_v13, %v526_v6  ;;  %6345 = vst [vmem:[#allocation31_spill] sm:$0xff] %v3660_v4  ;;  %v530_v11 = vmul.f32 0.2, %v422_v41  ;;  %v531_v2 = vmul.f32 0.2, %v423_v44  ;;  %v706_v57 = vrot.slane %v3648_v50, 1 }
  0x49   : > { %768 = vrot.lane.b32.xlu1 %v3639_v25, %s3303_s12  ;;  %v708_v62 = vrot.slane %v3652_v59, 1  ;;  %vm475_vm9 = vcmp.gt.f32.partialorder %v421_v12, 0.0  ;;  %v529_v13 = vmul.f32 0.2, %v421_v12  ;;  %v3669_v6 = vsel %vm649_vm0, %v700_v47, %v701_v42 }
  0x4a   : > { %766 = vrot.lane.b32.xlu0 %v3644_v10, %s3303_s12  ;;  %6346 = vst [vmem:[#allocation32_spill] sm:$0xff] %v3669_v6  ;;  %v705_v27 = vrot.slane %v3654_v55, 1  ;;  %v3673_v36 = vsel %vm476_vm7, %v422_v41, %v530_v11  ;;  %v3676_v38 = vsel %vm477_vm8, %v423_v44, %v531_v2  ;;  %vm479_vm10 = vcmp.gt.f32.partialorder %v425_v3, 0.0  ;;  %v427_v2 = vld [vmem:[%s3407_s11 + $0x150] sm:$0xff] }
  0x4b   : > { %v3678_v14 = vsel %vm475_vm9, %v421_v12, %v529_v13  ;;  %vm480_vm11 = vcmp.gt.f32.partialorder %v426_v18, 0.0  ;;  %v533_v22 = vmul.f32 0.2, %v425_v3  ;;  %v534_v47 = vmul.f32 0.2, %v426_v18 }
  0x4c   : > { %v532_v42 = vmul.f32 0.2, %v424_v32  ;;  %v3685_v45 = vsel %vm649_vm0, %v706_v57, %v708_v62  ;;  %v711_v41 = vrot.slane %v3673_v36, 1  ;;  %v713_v44 = vrot.slane %v3676_v38, 1 }
  0x4d   : > { %772 = vrot.lane.b32.xlu1 %v3660_v4, %s3303_s12  ;;  %6347 = vst [vmem:[#allocation33_spill] sm:$0xff] %v3685_v45  ;;  %vm478_vm12 = vcmp.gt.f32.partialorder %v424_v32, 0.0  ;;  %v3693_v12 = vsel %vm649_vm0, %v705_v27, %v706_v57  ;;  %v710_v11 = vrot.slane %v3678_v14, 1  ;;  %v3697_v13 = vsel %vm479_vm10, %v425_v3, %v533_v22  ;;  %v431_v4 = vld [vmem:[%s3407_s11 + $0x170] sm:$0xff]  ;;  %v432_v27 = vld [vmem:[%s3407_s11 + $0x178] sm:$0x3] }
  0x4e   : > { %770 = vrot.lane.b32.xlu0 %v3669_v6, %s3303_s12  ;;  %6348 = vst [vmem:[#allocation34_spill] sm:$0xff] %v3693_v12  ;;  %v3700_v62 = vsel %vm480_vm11, %v426_v18, %v534_v47  ;;  %vm482_vm13 = vcmp.gt.f32.partialorder %v428_v0, 0.0  ;;  %vm483_vm14 = vcmp.gt.f32.partialorder %v429_v5, 0.0  ;;  %v536_v52 = vmul.f32 0.2, %v428_v0  ;;  %v430_v18 = vld [vmem:[%s3407_s11 + $0x168] sm:$0xff] }
  0x4f   : > { %6349 = vst [vmem:[#allocation35_spill] sm:$0xff] %v3700_v62  ;;  %v537_v37 = vmul.f32 0.2, %v429_v5  ;;  %v3705_v6 = vsel %vm478_vm12, %v424_v32, %v532_v42  ;;  %v535_v57 = vmul.f32 0.2, %v427_v2  ;;  %v3709_v25 = vsel %vm649_vm0, %v711_v41, %v713_v44 }
  0x50   : > { %6350 = vst [vmem:[#allocation36_spill] sm:$0xff] %v3709_v25  ;;  %v716_v22 = vrot.slane %v3697_v13, 1  ;;  %v718_v3 = vrot.slane %v3700_v62, 1  ;;  %vm481_vm15 = vcmp.gt.f32.partialorder %v427_v2, 0.0  ;;  %v3717_v47 = vsel %vm649_vm0, %v710_v11, %v711_v41 }
  0x51   : > { %776 = vrot.lane.b32.xlu1 %v3685_v45, %s3303_s12  ;;  %6351 = vst [vmem:[#allocation37_spill] sm:$0xff] %v3717_v47  ;;  %v3719_v45 = vsel %vm482_vm13, %v428_v0, %v536_v52  ;;  %v3721_v32 = vsel %vm483_vm14, %v429_v5, %v537_v37  ;;  %v539_v42 = vmul.f32 0.2, %v431_v4  ;;  %v715_v44 = vrot.slane %v3705_v6, 1 }
  0x52   : > { %774 = vrot.lane.b32.xlu0 %v3693_v12, %s3303_s12  ;;  %vm485_vm1 = vcmp.gt.f32.partialorder %v431_v4, 0.0  ;;  %vm486_vm2 = vcmp.gt.f32.partialorder %v432_v27, 0.0  ;;  %v540_v21 = vmul.f32 0.2, %v432_v27  ;;  %v3726_v10 = vsel %vm481_vm15, %v427_v2, %v535_v57 }
  0x53   : > { %v538_v62 = vmul.f32 0.2, %v430_v18  ;;  %v3729_v12 = vsel %vm649_vm0, %v716_v22, %v718_v3  ;;  %v721_v52 = vrot.slane %v3719_v45, 1  ;;  %v723_v37 = vrot.slane %v3721_v32, 1 }
  0x54   : > { %6352 = vst [vmem:[#allocation38_spill] sm:$0xff] %v3729_v12  ;;  %vm484_vm3 = vcmp.gt.f32.partialorder %v430_v18, 0.0  ;;  %v3735_v0 = vsel %vm485_vm1, %v431_v4, %v539_v42  ;;  %v3737_v5 = vsel %vm486_vm2, %v432_v27, %v540_v21  ;;  %v3740_v41 = vsel %vm649_vm0, %v715_v44, %v716_v22 }
  0x55   : > { %780 = vrot.lane.b32.xlu1 %v3709_v25, %s3303_s12  ;;  %6353 = vst [vmem:[#allocation39_spill] sm:$0xff] %v3740_v41  ;;  %v720_v2 = vrot.slane %v3726_v10, 1  ;;  %v3745_v11 = vsel %vm484_vm3, %v430_v18, %v538_v62  ;;  %v3748_v57 = vsel %vm649_vm0, %v721_v52, %v723_v37  ;;  %v726_v3 = vrot.slane %v3735_v0, 1 }
  0x56   : > { %778 = vrot.lane.b32.xlu0 %v3717_v47, %s3303_s12  ;;  %6354 = vst [vmem:[#allocation40_spill] sm:$0xff] %v3748_v57  ;;  %v728_v4 = vrot.slane %v3737_v5, 1  ;;  %v725_v27 = vrot.slane %v3745_v11, 1  ;;  %v828_v22 = vrot.slane %v3425_v17, 2  ;;  %v830_v18 = vrot.slane %v3440_v30, 2 }
  0x57   : > { %v3755_v21 = vsel %vm649_vm0, %v720_v2, %v721_v52  ;;  %vm826_vm4 = vcmask 1045504   ;;  %v827_v44 = vrot.slane %v3422_v15, 2  ;;  %v833_v37 = vrot.slane %v3416_v9, 2 }
  0x58   : > { %6355 = vst [vmem:[#allocation41_spill] sm:$0xff] %v3755_v21  ;;  %v3761_v62 = vsel %vm649_vm0, %v726_v3, %v728_v4  ;;  %v3768_v42 = vsel %vm649_vm0, %v725_v27, %v726_v3  ;;  %v831_v52 = vsel %vm826_vm4, %v828_v22, %v830_v18  ;;  %v835_v2 = vrot.slane %v3435_v24, 2 }
  0x59   : > { %784 = vrot.lane.b32.xlu1 %v3729_v12, %s3303_s12  ;;  %6356 = vst [vmem:[#allocation42_spill] sm:$0xff] %v3761_v62  ;;  %6357 = vst [vmem:[#allocation43_spill] sm:$0xff] %v3768_v42  ;;  %v829_v30 = vsel %vm826_vm4, %v827_v44, %v828_v22  ;;  %v832_v4 = vrot.slane %v3414_v8, 2  ;;  %v838_v27 = vrot.slane %v3445_v33, 2  ;;  %v840_v18 = vrot.slane %v3447_v34, 2 }
  0x5a   : > { %782 = vrot.lane.b32.xlu0 %v3740_v41, %s3303_s12  ;;  %v3782_v3 = vsel %vm826_vm4, %v833_v37, %v835_v2  ;;  %v843_v44 = vrot.slane %v3469_v49, 2  ;;  %v905_v17 = vrot.slane %v3737_v5, 2  ;;  %vm1605_vm5 = vcmask 64512  }
  0x5b   : > { %v3788_v24 = vsel %vm826_vm4, %v832_v4, %v833_v37  ;;  %v3794_v22 = vsel %vm826_vm4, %v838_v27, %v840_v18  ;;  %v842_v37 = vrot.slane %v3482_v58, 2  ;;  %v850_v4 = vrot.slane %v3494_v1, 2 }
  0x5c   : > { %v853_v18 = vrot.slane %v3512_v16, 2  ;;  %vm1638_vm6 = vcmask 130048   ;;  %vm1704_vm7 = vcmask 261120   ;;  %vm1671_vm8 = vcmask 195584  }
  0x5d   : > { %788 = vrot.lane.b32.xlu1 %v3748_v57, %s3303_s12  ;;  %v865_v57 = vrot.slane %v3565_v60, 2  ;;  %vm1737_vm9 = vcmask 326656   ;;  %vm1770_vm10 = vcmask 392192   ;;  %vm1803_vm11 = vcmask 457728  }
  0x5e   : > { %786 = vrot.lane.b32.xlu0 %v3755_v21, %s3303_s12  ;;  %v870_v21 = vrot.slane %v3587_v20, 2  ;;  %vm1836_vm12 = vcmask 523264   ;;  %vm1878_vm13 = vcmask 588800  }
  0x61   : > { %792 = vrot.lane.b32.xlu1 %v3761_v62, %s3303_s12  ;;  %v837_v62 = vrot.slane %v3461_v43, 2 }
  0x62   : > { %790 = vrot.lane.b32.xlu0 %v3768_v42, %s3303_s12  ;;  %v860_v42 = vrot.slane %v3543_v40, 2  ;;  %s3309_s12 = smov 56  }
  0x63   : > { %v3801_v34 = vsel %vm826_vm4, %v837_v62, %v838_v27  ;;  %v847_v62 = vrot.slane %v3503_v7, 2 }
  0x65   : > { %909 = vrot.lane.b32.xlu1 %v831_v52, %s3304_s13  ;;  %v845_v52 = vrot.slane %v3475_v53, 2  ;;  %v3814_v53 = vsel %vm826_vm4, %v842_v37, %v843_v44 }
  0x66   : > { %907 = vrot.lane.b32.xlu0 %v829_v30, %s3304_s13  ;;  %v848_v30 = vrot.slane %v3485_v61, 2  ;;  %6359 = vst [vmem:[#allocation45_spill] sm:$0xff] %v3814_v53 }
  0x67   : > { %v3807_v2 = vsel %vm826_vm4, %v843_v44, %v845_v52  ;;  %v855_v52 = vrot.slane %v3523_v23, 2  ;;  %v852_v44 = vrot.slane %v3526_v26, 2 }
  0x68   : > { %6358 = vst [vmem:[#allocation44_spill] sm:$0xff] %v3807_v2  ;;  %v3820_v27 = vsel %vm826_vm4, %v848_v30, %v850_v4  ;;  %v3827_v1 = vsel %vm826_vm4, %v847_v62, %v848_v30  ;;  %v858_v4 = vrot.slane %v3540_v39, 2  ;;  %v857_v30 = vrot.slane %v3550_v46, 2 }
  0x69   : > { %913 = vrot.lane.b32.xlu1 %v3782_v3, %s3304_s13  ;;  %6360 = vst [vmem:[#allocation46_spill] sm:$0xff] %v3820_v27  ;;  %6361 = vst [vmem:[#allocation47_spill] sm:$0xff] %v3827_v1  ;;  %v3833_v37 = vsel %vm826_vm4, %v853_v18, %v855_v52  ;;  %v3840_v23 = vsel %vm826_vm4, %v852_v44, %v853_v18  ;;  %v863_v52 = vrot.slane %v3560_v56, 2  ;;  %v862_v18 = vrot.slane %v3568_v63, 2 }
  0x6a   : > { %911 = vrot.lane.b32.xlu0 %v3788_v24, %s3304_s13  ;;  %6362 = vst [vmem:[#allocation48_spill] sm:$0xff] %v3833_v37  ;;  %6363 = vst [vmem:[#allocation49_spill] sm:$0xff] %v3840_v23  ;;  %v3846_v62 = vsel %vm826_vm4, %v858_v4, %v860_v42  ;;  %v3853_v40 = vsel %vm826_vm4, %v857_v30, %v858_v4  ;;  %v868_v42 = vrot.slane %v3585_v19, 2  ;;  %v867_v4 = vrot.slane %v3592_v29, 2 }
  0x6b   : > { %6364 = vst [vmem:[#allocation50_spill] sm:$0xff] %v3846_v62  ;;  %6365 = vst [vmem:[#allocation51_spill] sm:$0xff] %v3853_v40  ;;  %v3859_v44 = vsel %vm826_vm4, %v863_v52, %v865_v57  ;;  %v3866_v60 = vsel %vm826_vm4, %v862_v18, %v863_v52  ;;  %v873_v57 = vrot.slane %v3605_v48, 2  ;;  %v872_v52 = vrot.slane %v3613_v54, 2 }
  0x6c   : > { %6366 = vst [vmem:[#allocation52_spill] sm:$0xff] %v3859_v44  ;;  %6367 = vst [vmem:[#allocation53_spill] sm:$0xff] %v3866_v60  ;;  %v3872_v30 = vsel %vm826_vm4, %v868_v42, %v870_v21  ;;  %v3879_v20 = vsel %vm826_vm4, %v867_v4, %v868_v42  ;;  %v878_v21 = vrot.slane %v3626_v28, 2  ;;  %v877_v42 = vrot.slane %v3635_v35, 2 }
  0x6d   : > { %917 = vrot.lane.b32.xlu1 %v3794_v22, %s3304_s13  ;;  %6368 = vst [vmem:[#allocation54_spill] sm:$0xff] %v3872_v30  ;;  %6369 = vst [vmem:[#allocation55_spill] sm:$0xff] %v3879_v20 }
  0x6e   : > { %915 = vrot.lane.b32.xlu0 %v3801_v34, %s3304_s13 }
  0x71   : > { %921 = vrot.lane.b32.xlu1 %v3807_v2, %s3304_s13 }
  0x72   : > { %919 = vrot.lane.b32.xlu0 %v3814_v53, %s3304_s13 }
  0x75   : > { %925 = vrot.lane.b32.xlu1 %v3820_v27, %s3304_s13 }
  0x76   : > { %923 = vrot.lane.b32.xlu0 %v3827_v1, %s3304_s13 }
  0x79   : > { %929 = vrot.lane.b32.xlu1 %v3833_v37, %s3304_s13  ;;  %v900_v37 = vrot.slane %v3721_v32, 2  ;;  %v903_v32 = vrot.slane %v3735_v0, 2 }
  0x7a   : > { %927 = vrot.lane.b32.xlu0 %v3840_v23, %s3304_s13 }
  0x7d   : > { %933 = vrot.lane.b32.xlu1 %v3846_v62, %s3304_s13  ;;  %v875_v62 = vrot.slane %v3611_v51, 2  ;;  %v3892_v51 = vsel %vm826_vm4, %v872_v52, %v873_v57 }
  0x7e   : > { %931 = vrot.lane.b32.xlu0 %v3853_v40, %s3304_s13  ;;  %6371 = vst [vmem:[#allocation57_spill] sm:$0xff] %v3892_v51 }
  0x7f   : > { %v3885_v18 = vsel %vm826_vm4, %v873_v57, %v875_v62  ;;  %v883_v62 = vrot.slane %v3648_v50, 2  ;;  %v882_v57 = vrot.slane %v3654_v55, 2 }
  0x80   : > { %6370 = vst [vmem:[#allocation56_spill] sm:$0xff] %v3885_v18 }
  0x81   : > { %937 = vrot.lane.b32.xlu1 %v3859_v44, %s3304_s13  ;;  %v880_v44 = vrot.slane %v3628_v31, 2  ;;  %v3905_v31 = vsel %vm826_vm4, %v877_v42, %v878_v21 }
  0x82   : > { %935 = vrot.lane.b32.xlu0 %v3866_v60, %s3304_s13  ;;  %v6375_v60 = vld [vmem:[#allocation35_spill] sm:$0xff] }
  0x83   : > { %v3898_v4 = vsel %vm826_vm4, %v878_v21, %v880_v44  ;;  %v888_v44 = vrot.slane %v3673_v36, 2  ;;  %v887_v21 = vrot.slane %v3678_v14, 2  ;;  %v895_v40 = vrot.slane %v6375_v60, 2 }
  0x85   : > { %941 = vrot.lane.b32.xlu1 %v3872_v30, %s3304_s13  ;;  %v885_v30 = vrot.slane %v3652_v59, 2  ;;  %v3918_v59 = vsel %vm826_vm4, %v882_v57, %v883_v62 }
  0x86   : > { %939 = vrot.lane.b32.xlu0 %v3879_v20, %s3304_s13  ;;  %v890_v20 = vrot.slane %v3676_v38, 2  ;;  %6373 = vst [vmem:[#allocation59_spill] sm:$0xff] %v3918_v59  ;;  %v3931_v38 = vsel %vm826_vm4, %v887_v21, %v888_v44  ;;  %v897_v21 = vrot.slane %v3726_v10, 2 }
  0x87   : > { %v3911_v52 = vsel %vm826_vm4, %v883_v62, %v885_v30  ;;  %v893_v30 = vrot.slane %v3697_v13, 2  ;;  %6376 = vst [vmem:[#allocation35_spill] sm:$0xff] %v3931_v38  ;;  %v892_v62 = vrot.slane %v3705_v6, 2 }
  0x88   : > { %6372 = vst [vmem:[#allocation58_spill] sm:$0xff] %v3911_v52  ;;  %v3924_v42 = vsel %vm826_vm4, %v888_v44, %v890_v20  ;;  %v898_v20 = vrot.slane %v3719_v45, 2 }
  0x89   : > { %945 = vrot.lane.b32.xlu1 %v3885_v18, %s3304_s13  ;;  %6374 = vst [vmem:[#allocation60_spill] sm:$0xff] %v3924_v42  ;;  %v3937_v57 = vsel %vm826_vm4, %v893_v30, %v895_v40  ;;  %v3946_v44 = vsel %vm826_vm4, %v892_v62, %v893_v30  ;;  %v902_v62 = vrot.slane %v3745_v11, 2 }
  0x8a   : > { %943 = vrot.lane.b32.xlu0 %v3892_v51, %s3304_s13  ;;  %6377 = vst [vmem:[#allocation61_spill] sm:$0xff] %v3937_v57  ;;  %6379 = vst [vmem:[#allocation63_spill] sm:$0xff] %v3946_v44  ;;  %v3954_v40 = vsel %vm826_vm4, %v898_v20, %v900_v37  ;;  %v3963_v30 = vsel %vm826_vm4, %v897_v21, %v898_v20  ;;  %v3971_v37 = vsel %vm826_vm4, %v903_v32, %v905_v17 }
  0x8b   : > { %6381 = vst [vmem:[#allocation65_spill] sm:$0xff] %v3954_v40  ;;  %6383 = vst [vmem:[#allocation67_spill] sm:$0xff] %v3963_v30 }
  0x8c   : > { %6385 = vst [vmem:[#allocation69_spill] sm:$0xff] %v3971_v37 }
  0x8d   : > { %949 = vrot.lane.b32.xlu1 %v3898_v4, %s3304_s13 }
  0x8e   : > { %947 = vrot.lane.b32.xlu0 %v3905_v31, %s3304_s13 }
  0x91   : > { %953 = vrot.lane.b32.xlu1 %v3911_v52, %s3304_s13  ;;  %v6396_v52 = vld [vmem:[#allocation30_spill] sm:$0xff] }
  0x92   : > { %951 = vrot.lane.b32.xlu0 %v3918_v59, %s3304_s13  ;;  %v6397_v59 = vld [vmem:[#allocation9_spill] sm:$0xff] }
  0x95   : > { %957 = vrot.lane.b32.xlu1 %v3924_v42, %s3304_s13 }
  0x96   : > { %955 = vrot.lane.b32.xlu0 %v3931_v38, %s3304_s13 }
  0x97   : > { %v3943_v60 = vpop.permute.xlu1 %734 }
  0x98   : > { %6378 = vst [vmem:[#allocation62_spill] sm:$0xff] %v3943_v60  ;;  %v3949_v23 = vpop.permute.xlu0 %730 }
  0x99   : > { %6380 = vst [vmem:[#allocation64_spill] sm:$0xff] %v3949_v23  ;;  %961 = vrot.lane.b32.xlu1 %v3937_v57, %s3304_s13 }
  0x9a   : > { %959 = vrot.lane.b32.xlu0 %v3946_v44, %s3304_s13 }
  0x9b   : > { %v3960_v60 = vpop.permute.xlu1 %736 }
  0x9c   : > { %6382 = vst [vmem:[#allocation66_spill] sm:$0xff] %v3960_v60  ;;  %v3966_v12 = vpop.permute.xlu0 %732  ;;  %v3978_v60 = vsel %vm826_vm4, %v902_v62, %v903_v32 }
  0x9d   : > { %6384 = vst [vmem:[#allocation68_spill] sm:$0xff] %v3966_v12  ;;  %965 = vrot.lane.b32.xlu1 %v3954_v40, %s3304_s13  ;;  %6386 = vst [vmem:[#allocation70_spill] sm:$0xff] %v3978_v60 }
  0x9e   : > { %963 = vrot.lane.b32.xlu0 %v3963_v30, %s3304_s13 }
  0x9f   : > { %v3975_v5 = vpop.permute.xlu1 %740 }
  0xa0   : > { %v3980_v20 = vpop.permute.xlu0 %738 }
  0xa1   : > { %969 = vrot.lane.b32.xlu1 %v3971_v37, %s3304_s13 }
  0xa2   : > { %967 = vrot.lane.b32.xlu0 %v3978_v60, %s3304_s13 }
  0xa3   : > { %v3986_v21 = vpop.permute.xlu1 %744 }
  0xa4   : > { %v3988_v17 = vpop.permute.xlu0 %742 }
  0xa5   : > { %1007 = vrot.lane.b32.xlu1 %v3416_v9, %s3305_s14 }
  0xa6   : > { %1005 = vrot.lane.b32.xlu0 %v3414_v8, %s3305_s14 }
  0xa7   : > { %v3994_v32 = vpop.permute.xlu1 %748 }
  0xa8   : > { %v3996_v62 = vpop.permute.xlu0 %746 }
  0xa9   : > { %1011 = vrot.lane.b32.xlu1 %v3445_v33, %s3305_s14 }
  0xaa   : > { %1009 = vrot.lane.b32.xlu0 %v3461_v43, %s3305_s14 }
  0xab   : > { %v4002_v37 = vpop.permute.xlu1 %752 }
  0xac   : > { %v4004_v60 = vpop.permute.xlu0 %750 }
  0xad   : > { %1015 = vrot.lane.b32.xlu1 %v3469_v49, %s3305_s14 }
  0xae   : > { %1013 = vrot.lane.b32.xlu0 %v3482_v58, %s3305_s14 }
  0xaf   : > { %v4010_v40 = vpop.permute.xlu1 %756 }
  0xb0   : > { %v4012_v9 = vpop.permute.xlu0 %754 }
  0xb1   : > { %1019 = vrot.lane.b32.xlu1 %v3485_v61, %s3305_s14 }
  0xb2   : > { %1017 = vrot.lane.b32.xlu0 %v3503_v7, %s3305_s14 }
  0xb3   : > { %v4018_v30 = vpop.permute.xlu1 %760 }
  0xb4   : > { %v4020_v8 = vpop.permute.xlu0 %758 }
  0xb5   : > { %1023 = vrot.lane.b32.xlu1 %v3512_v16, %s3305_s14 }
  0xb6   : > { %1021 = vrot.lane.b32.xlu0 %v3526_v26, %s3305_s14 }
  0xb7   : > { %v4026_v57 = vpop.permute.xlu1 %764 }
  0xb8   : > { %6387 = vst [vmem:[#allocation71_spill] sm:$0xff] %v4026_v57  ;;  %v4028_v12 = vpop.permute.xlu0 %762 }
  0xb9   : > { %6388 = vst [vmem:[#allocation72_spill] sm:$0xff] %v4028_v12  ;;  %1027 = vrot.lane.b32.xlu1 %v3540_v39, %s3305_s14 }
  0xba   : > { %1025 = vrot.lane.b32.xlu0 %v3550_v46, %s3305_s14 }
  0xbb   : > { %v4034_v44 = vpop.permute.xlu1 %768 }
  0xbc   : > { %6389 = vst [vmem:[#allocation73_spill] sm:$0xff] %v4034_v44  ;;  %v4036_v15 = vpop.permute.xlu0 %766 }
  0xbd   : > { %6390 = vst [vmem:[#allocation74_spill] sm:$0xff] %v4036_v15  ;;  %1031 = vrot.lane.b32.xlu1 %v3560_v56, %s3305_s14 }
  0xbe   : > { %1029 = vrot.lane.b32.xlu0 %v3568_v63, %s3305_s14 }
  0xbf   : > { %v4042_v23 = vpop.permute.xlu1 %772 }
  0xc0   : > { %v4044_v57 = vpop.permute.xlu0 %770 }
  0xc1   : > { %1035 = vrot.lane.b32.xlu1 %v3585_v19, %s3305_s14 }
  0xc2   : > { %1033 = vrot.lane.b32.xlu0 %v3592_v29, %s3305_s14 }
  0xc3   : > { %v4050_v41 = vpop.permute.xlu1 %776 }
  0xc4   : > { %v4052_v44 = vpop.permute.xlu0 %774 }
  0xc5   : > { %1039 = vrot.lane.b32.xlu1 %v3605_v48, %s3305_s14 }
  0xc6   : > { %1037 = vrot.lane.b32.xlu0 %v3613_v54, %s3305_s14 }
  0xc7   : > { %v4058_v15 = vpop.permute.xlu1 %780 }
  0xc8   : > { %v4060_v12 = vpop.permute.xlu0 %778 }
  0xc9   : > { %1043 = vrot.lane.b32.xlu1 %v3626_v28, %s3305_s14 }
  0xca   : > { %1041 = vrot.lane.b32.xlu0 %v3635_v35, %s3305_s14 }
  0xcb   : > { %v4066_v19 = vpop.permute.xlu1 %784 }
  0xcc   : > { %v4068_v29 = vpop.permute.xlu0 %782 }
  0xcd   : > { %1047 = vrot.lane.b32.xlu1 %v3648_v50, %s3305_s14 }
  0xce   : > { %1045 = vrot.lane.b32.xlu0 %v3654_v55, %s3305_s14 }
  0xcf   : > { %v4074_v48 = vpop.permute.xlu1 %788 }
  0xd0   : > { %v4076_v54 = vpop.permute.xlu0 %786 }
  0xd1   : > { %1051 = vrot.lane.b32.xlu1 %v3673_v36, %s3305_s14 }
  0xd2   : > { %1049 = vrot.lane.b32.xlu0 %v3678_v14, %s3305_s14 }
  0xd3   : > { %v4082_v27 = vpop.permute.xlu1 %792 }
  0xd4   : > { %v4084_v42 = vpop.permute.xlu0 %790 }
  0xd5   : > { %1055 = vrot.lane.b32.xlu1 %v3697_v13, %s3305_s14 }
  0xd6   : > { %1053 = vrot.lane.b32.xlu0 %v3705_v6, %s3305_s14 }
  0xd7   : > { %v4090_v1 = vpop.permute.xlu1 %909 }
  0xd8   : > { %6391 = vst [vmem:[#allocation75_spill] sm:$0xff] %v4090_v1  ;;  %v4092_v38 = vpop.permute.xlu0 %907  ;;  %v1611_v1 = vsel %vm1605_vm5, %v3445_v33, %v3975_v5  ;;  %v1613_v5 = vsel %vm1605_vm5, %v3469_v49, %v3986_v21 }
  0xd9   : > { %6392 = vst [vmem:[#allocation76_spill] sm:$0xff] %v4092_v38  ;;  %1059 = vrot.lane.b32.xlu1 %v3719_v45, %s3305_s14 }
  0xda   : > { %1057 = vrot.lane.b32.xlu0 %v3726_v10, %s3305_s14 }
  0xdb   : > { %v4098_v25 = vpop.permute.xlu1 %913 }
  0xdc   : > { %6393 = vst [vmem:[#allocation77_spill] sm:$0xff] %v4098_v25  ;;  %v4100_v47 = vpop.permute.xlu0 %911  ;;  %v1610_v25 = vsel %vm1605_vm5, %v3461_v43, %v3980_v20  ;;  %v1612_v20 = vsel %vm1605_vm5, %v3482_v58, %v3988_v17  ;;  %v1614_v17 = vsel %vm1605_vm5, %v3503_v7, %v3996_v62  ;;  %v1616_v62 = vsel %vm1605_vm5, %v3526_v26, %v4004_v60 }
  0xdd   : > { %6394 = vst [vmem:[#allocation78_spill] sm:$0xff] %v4100_v47  ;;  %1063 = vrot.lane.b32.xlu1 %v3735_v0, %s3305_s14  ;;  %v1618_v60 = vsel %vm1605_vm5, %v3550_v46, %v4012_v9  ;;  %v1621_v9 = vsel %vm1605_vm5, %v3560_v56, %v4018_v30  ;;  %v1872_v30 = vld [vmem:[%s6197_s3 + $0x18] sm:$0xff] }
  0xde   : > { %1061 = vrot.lane.b32.xlu0 %v3745_v11, %s3305_s14 }
  0xdf   : > { %v918_v38 = vpop.permute.xlu1 %917 }
  0xe0   : > { %v4110_v2 = vsel %vm1638_vm6, %v1611_v1, %v918_v38  ;;  %v916_v47 = vpop.permute.xlu0 %915 }
  0xe1   : > { %6395 = vst [vmem:[#allocation79_spill] sm:$0xff] %v4110_v2  ;;  %1139 = vrot.lane.b32.xlu1 %v6396_v52, %s3306_s15  ;;  %v4118_v53 = vsel %vm1638_vm6, %v1610_v25, %v916_v47  ;;  %v6398_v52 = vld [vmem:[#allocation29_spill] sm:$0xff]  ;;  %v1615_v47 = vsel %vm1605_vm5, %v3485_v61, %v3994_v32  ;;  %v1617_v32 = vsel %vm1605_vm5, %v3512_v16, %v4002_v37 }
  0xe2   : > { %1107 = vrot.lane.b32.xlu0 %v6397_v59, %s3306_s15  ;;  %v6399_v59 = vld [vmem:[#allocation10_spill] sm:$0xff]  ;;  %v1619_v37 = vsel %vm1605_vm5, %v3540_v39, %v4010_v40 }
  0xe3   : > { %v922_v1 = vpop.permute.xlu1 %921  ;;  %v1870_v40 = vld [vmem:[%s6197_s3 + $0x8] sm:$0xff] }
  0xe4   : > { %v4126_v38 = vsel %vm1638_vm6, %v1613_v5, %v922_v1  ;;  %v920_v2 = vpop.permute.xlu0 %919 }
  0xe5   : > { %1141 = vrot.lane.b32.xlu1 %v6398_v52, %s3306_s15  ;;  %v4134_v25 = vsel %vm1638_vm6, %v1612_v20, %v920_v2 }
  0xe6   : > { %1109 = vrot.lane.b32.xlu0 %v6399_v59, %s3306_s15 }
  0xe7   : > { %v926_v21 = vpop.permute.xlu1 %925 }
  0xe8   : > { %v4142_v5 = vsel %vm1638_vm6, %v1615_v47, %v926_v21  ;;  %v924_v1 = vpop.permute.xlu0 %923 }
  0xe9   : > { %6400 = vst [vmem:[#allocation9_spill] sm:$0xff] %v4142_v5  ;;  %1240 = vrot.lane.b32.xlu1 %v3892_v51, %s3307_s16  ;;  %v4150_v2 = vsel %vm1638_vm6, %v1614_v17, %v924_v1 }
  0xea   : > { %6401 = vst [vmem:[#allocation10_spill] sm:$0xff] %v4150_v2  ;;  %1208 = vrot.lane.b32.xlu0 %v3788_v24, %s3307_s16 }
  0xeb   : > { %v930_v20 = vpop.permute.xlu1 %929 }
  0xec   : > { %v4158_v47 = vsel %vm1638_vm6, %v1617_v32, %v930_v20  ;;  %v928_v59 = vpop.permute.xlu0 %927 }
  0xed   : > { %6402 = vst [vmem:[#allocation80_spill] sm:$0xff] %v4158_v47  ;;  %1242 = vrot.lane.b32.xlu1 %v3885_v18, %s3307_s16  ;;  %v4166_v21 = vsel %vm1638_vm6, %v1616_v62, %v928_v59 }
  0xee   : > { %6403 = vst [vmem:[#allocation81_spill] sm:$0xff] %v4166_v21  ;;  %1210 = vrot.lane.b32.xlu0 %v3782_v3, %s3307_s16  ;;  %v1869_v3 = vld [vmem:[%s6197_s3] sm:$0xff] }
  0xef   : > { %v934_v24 = vpop.permute.xlu1 %933  ;;  %v3129_v62 = vpack.c.bf16 %v1870_v40, %v1869_v3  ;;  %v6408_v40 = vld [vmem:[#allocation32_spill] sm:$0xff] }
  0xf0   : > { %v4174_v17 = vsel %vm1638_vm6, %v1619_v37, %v934_v24  ;;  %v932_v1 = vpop.permute.xlu0 %931  ;;  %v1620_v37 = vsel %vm1605_vm5, %v3568_v63, %v4020_v8 }
  0xf1   : > { %6404 = vst [vmem:[#allocation82_spill] sm:$0xff] %v4174_v17  ;;  %1338 = vrot.lane.b32.xlu1 %v3635_v35, %s3308_s17  ;;  %v4182_v32 = vsel %vm1638_vm6, %v1618_v60, %v932_v1  ;;  %3130 = vmatprep.subr.bf16.mxu0 %v3129_v62  ;;  %v6410_v17 = vld [vmem:[#allocation31_spill] sm:$0xff] }
  0xf2   : > { %6405 = vst [vmem:[#allocation83_spill] sm:$0xff] %v4182_v32  ;;  %1306 = vrot.lane.b32.xlu0 %v3461_v43, %s3308_s17  ;;  %3145 = vmatprep.subr.bf16.mxu1 %v3129_v62  ;;  %v1871_v43 = vld [vmem:[%s6197_s3 + $0x10] sm:$0xff] }
  0xf3   : > { %v938_v20 = vpop.permute.xlu1 %937  ;;  %3132 = vmatpush3.bf16.msra.mxu0 %v3129_v62  ;;  %3150 = vmatpush3.bf16.msra.mxu1 %v3129_v62  ;;  %v3133_v1 = vpack.c.bf16 %v1872_v30, %v1871_v43  ;;  %v1875_v43 = vld [vmem:[%s6197_s3 + $0x30] sm:$0xff]  ;;  %v1876_v30 = vld [vmem:[%s6197_s3 + $0x38] sm:$0xff] }
  0xf4   : > { %v4196_v59 = vsel %vm1638_vm6, %v1621_v9, %v938_v20  ;;  %v936_v24 = vpop.permute.xlu0 %935  ;;  %v1873_v9 = vld [vmem:[%s6197_s3 + $0x20] sm:$0xff]  ;;  %v6409_v20 = vld [vmem:[#allocation12_spill] sm:$0xff] }
  0xf5   : > { %6406 = vst [vmem:[#allocation84_spill] sm:$0xff] %v4196_v59  ;;  %1340 = vrot.lane.b32.xlu1 %v3626_v28, %s3308_s17  ;;  %v4204_v60 = vsel %vm1638_vm6, %v1620_v37, %v936_v24  ;;  %3134 = vmatprep.subr.bf16.mxu0 %v3133_v1 }
  0xf6   : > { %6407 = vst [vmem:[#allocation85_spill] sm:$0xff] %v4204_v60  ;;  %1308 = vrot.lane.b32.xlu0 %v3445_v33, %s3308_s17  ;;  %3146 = vmatprep.subr.bf16.mxu1 %v3133_v1  ;;  %v1874_v33 = vld [vmem:[%s6197_s3 + $0x28] sm:$0xff]  ;;  %v1626_v60 = vsel %vm1605_vm5, %v3635_v35, %v4044_v57  ;;  %v1877_v35 = vld [vmem:[%s6197_s3 + $0x40] sm:$0xff] }
  0xf7   : > { %v4214_v8 = vpop.permute.xlu1 %941  ;;  %3136 = vmatpush3.bf16.msra.mxu0 %v3133_v1  ;;  %3151 = vmatpush3.bf16.msra.mxu1 %v3133_v1  ;;  %v3137_v37 = vpack.c.bf16 %v1874_v33, %v1873_v9  ;;  %v1627_v1 = vsel %vm1605_vm5, %v3626_v28, %v4042_v23  ;;  %v1629_v23 = vsel %vm1605_vm5, %v3648_v50, %v4050_v41 }
  0xf8   : > { %v4216_v3 = vpop.permute.xlu0 %939 }
  0xf9   : > { %1440 = vrot.lane.b32.xlu1 %v6408_v40, %s3309_s12  ;;  %3138 = vmatprep.subr.bf16.mxu0 %v3137_v37 }
  0xfa   : > { %1408 = vrot.lane.b32.xlu0 %v6409_v20, %s3309_s12  ;;  %3147 = vmatprep.subr.bf16.mxu1 %v3137_v37 }
  0xfb   : > { %v4228_v62 = vpop.permute.xlu1 %945  ;;  %3140 = vmatpush3.bf16.msra.mxu0 %v3137_v37  ;;  %3152 = vmatpush3.bf16.msra.mxu1 %v3137_v37 }
  0xfc   : > { %v4230_v24 = vpop.permute.xlu0 %943 }
  0xfd   : > { %1143 = vrot.lane.b32.xlu1 %v6408_v40, %s3306_s15  ;;  %v3141_v40 = vpack.c.bf16 %v1876_v30, %v1875_v43  ;;  %v1631_v43 = vsel %vm1605_vm5, %v3673_v36, %v4058_v15  ;;  %v1633_v15 = vsel %vm1605_vm5, %v3697_v13, %v4066_v19  ;;  %v1635_v19 = vsel %vm1605_vm5, %v3719_v45, %v4074_v48 }
  0xfe   : > { %1111 = vrot.lane.b32.xlu0 %v6409_v20, %s3306_s15  ;;  %v6411_v20 = vld [vmem:[#allocation11_spill] sm:$0xff]  ;;  %v1637_v48 = vsel %vm1605_vm5, %v3735_v0, %v4082_v27 }
  0xff   : > { %v950_v9 = vpop.permute.xlu1 %949  ;;  %3142 = vmatprep.subr.bf16.mxu0 %v3141_v40  ;;  %3148 = vmatprep.subr.bf16.mxu1 %v3141_v40 }
 0x100   : > { %v4246_v33 = vsel %vm1638_vm6, %v1627_v1, %v950_v9  ;;  %v948_v59 = vpop.permute.xlu0 %947  ;;  %3144 = vmatpush3.bf16.msra.mxu0 %v3141_v40  ;;  %3153 = vmatpush3.bf16.msra.mxu1 %v3141_v40  ;;  %v1630_v1 = vsel %vm1605_vm5, %v3678_v14, %v4060_v12  ;;  %v1632_v12 = vsel %vm1605_vm5, %v3705_v6, %v4068_v29 }
 0x101   : > { %1442 = vrot.lane.b32.xlu1 %v6410_v17, %s3309_s12  ;;  %v4254_v28 = vsel %vm1638_vm6, %v1626_v60, %v948_v59  ;;  %3079 = vmatprep.subr.mxu0 %v1877_v35  ;;  %v1628_v59 = vsel %vm1605_vm5, %v3654_v55, %v4052_v44  ;;  %v1634_v29 = vsel %vm1605_vm5, %v3726_v10, %v4076_v54 }
 0x102   : > { %1410 = vrot.lane.b32.xlu0 %v6411_v20, %s3309_s12  ;;  %3149 = vmatprep.subr.mxu1 %v1877_v35  ;;  %v1636_v54 = vsel %vm1605_vm5, %v3745_v11, %v4084_v42 }
 0x103   : > { %v954_v37 = vpop.permute.xlu1 %953 }
 0x104   : > { %v4265_v57 = vsel %vm1638_vm6, %v1629_v23, %v954_v37  ;;  %v952_v60 = vpop.permute.xlu0 %951  ;;  %3080 = vmatpush3.msra.mxu0 %v1877_v35  ;;  %3154 = vmatpush3.msra.mxu1 %v1877_v35 }
 0x105   : > { %1541 = vrot.lane.b32.xlu1 %v3905_v31, %s3310_s24  ;;  %v4273_v41 = vsel %vm1638_vm6, %v1628_v59, %v952_v60 }
 0x106   : > { %1509 = vrot.lane.b32.xlu0 %v3801_v34, %s3310_s24 }
 0x107   : > { %v958_v30 = vpop.permute.xlu1 %957 }
 0x108   : > { %v4281_v44 = vsel %vm1638_vm6, %v1631_v43, %v958_v30  ;;  %v956_v9 = vpop.permute.xlu0 %955 }
 0x109   : > { %6412 = vst [vmem:[#allocation32_spill] sm:$0xff] %v4281_v44  ;;  %1145 = vrot.lane.b32.xlu1 %v6410_v17, %s3306_s15  ;;  %v4289_v40 = vsel %vm1638_vm6, %v1630_v1, %v956_v9 }
 0x10a   : > { %6413 = vst [vmem:[#allocation12_spill] sm:$0xff] %v4289_v40  ;;  %1113 = vrot.lane.b32.xlu0 %v6411_v20, %s3306_s15 }
 0x10b   : > { %v962_v23 = vpop.permute.xlu1 %961 }
 0x10c   : > { %v4297_v37 = vsel %vm1638_vm6, %v1633_v15, %v962_v23  ;;  %v960_v35 = vpop.permute.xlu0 %959  ;;  %v6420_v23 = vld [vmem:[#allocation34_spill] sm:$0xff] }
 0x10d   : > { %6414 = vst [vmem:[#allocation31_spill] sm:$0xff] %v4297_v37  ;;  %1244 = vrot.lane.b32.xlu1 %v3905_v31, %s3307_s16  ;;  %v4305_v17 = vsel %vm1638_vm6, %v1632_v12, %v960_v35  ;;  %v6424_v35 = vld [vmem:[#allocation33_spill] sm:$0xff]  ;;  %v6446_v37 = vld [vmem:[#allocation35_spill] sm:$0xff] }
 0x10e   : > { %6415 = vst [vmem:[#allocation11_spill] sm:$0xff] %v4305_v17  ;;  %1212 = vrot.lane.b32.xlu0 %v3801_v34, %s3307_s16  ;;  %v6448_v17 = vld [vmem:[#allocation60_spill] sm:$0xff] }
 0x10f   : > { %v966_v20 = vpop.permute.xlu1 %965 }
 0x110   : > { %v4313_v59 = vsel %vm1638_vm6, %v1635_v19, %v966_v20  ;;  %v964_v60 = vpop.permute.xlu0 %963  ;;  %v6425_v19 = vld [vmem:[#allocation13_spill] sm:$0xff] }
 0x111   : > { %6416 = vst [vmem:[#allocation86_spill] sm:$0xff] %v4313_v59  ;;  %1543 = vrot.lane.b32.xlu1 %v3898_v4, %s3310_s24  ;;  %v4321_v31 = vsel %vm1638_vm6, %v1634_v29, %v964_v60  ;;  %v6428_v60 = vld [vmem:[#allocation59_spill] sm:$0xff]  ;;  %v6438_v59 = vld [vmem:[#allocation37_spill] sm:$0xff] }
 0x112   : > { %6417 = vst [vmem:[#allocation87_spill] sm:$0xff] %v4321_v31  ;;  %1511 = vrot.lane.b32.xlu0 %v3794_v22, %s3310_s24  ;;  %v6445_v31 = vld [vmem:[#allocation15_spill] sm:$0xff] }
 0x113   : > { %v970_v34 = vpop.permute.xlu1 %969 }
 0x114   : > { %v4329_v43 = vsel %vm1638_vm6, %v1637_v48, %v970_v34  ;;  %v968_v30 = vpop.permute.xlu0 %967  ;;  %v6429_v48 = vld [vmem:[#allocation45_spill] sm:$0xff] }
 0x115   : > { %6418 = vst [vmem:[#allocation88_spill] sm:$0xff] %v4329_v43  ;;  %1246 = vrot.lane.b32.xlu1 %v3898_v4, %s3307_s16  ;;  %v4337_v1 = vsel %vm1638_vm6, %v1636_v54, %v968_v30 }
 0x116   : > { %6419 = vst [vmem:[#allocation89_spill] sm:$0xff] %v4337_v1  ;;  %1214 = vrot.lane.b32.xlu0 %v3794_v22, %s3307_s16  ;;  %v6434_v1 = vld [vmem:[#allocation58_spill] sm:$0xff] }
 0x117   : > { %v4341_v27 = vpop.permute.xlu1 %1007 }
 0x118   : > { %v4343_v9 = vpop.permute.xlu0 %1005 }
 0x119   : > { %1342 = vrot.lane.b32.xlu1 %v3654_v55, %s3308_s17  ;;  %v6421_v55 = vld [vmem:[#allocation14_spill] sm:$0xff] }
 0x11a   : > { %1310 = vrot.lane.b32.xlu0 %v3482_v58, %s3308_s17 }
 0x11b   : > { %v4349_v42 = vpop.permute.xlu1 %1011 }
 0x11c   : > { %v4351_v15 = vpop.permute.xlu0 %1009 }
 0x11d   : > { %1344 = vrot.lane.b32.xlu1 %v3648_v50, %s3308_s17 }
 0x11e   : > { %1312 = vrot.lane.b32.xlu0 %v3469_v49, %s3308_s17 }
 0x11f   : > { %v4357_v22 = vpop.permute.xlu1 %1015 }
 0x120   : > { %v4359_v4 = vpop.permute.xlu0 %1013 }
 0x121   : > { %1444 = vrot.lane.b32.xlu1 %v6420_v23, %s3309_s12 }
 0x122   : > { %1412 = vrot.lane.b32.xlu0 %v6421_v55, %s3309_s12 }
 0x123   : > { %v4365_v58 = vpop.permute.xlu1 %1019 }
 0x124   : > { %v4367_v12 = vpop.permute.xlu0 %1017 }
 0x125   : > { %1147 = vrot.lane.b32.xlu1 %v6420_v23, %s3306_s15 }
 0x126   : > { %1115 = vrot.lane.b32.xlu0 %v6421_v55, %s3306_s15 }
 0x127   : > { %v4373_v49 = vpop.permute.xlu1 %1023 }
 0x128   : > { %6422 = vst [vmem:[#allocation34_spill] sm:$0xff] %v4373_v49  ;;  %v4375_v50 = vpop.permute.xlu0 %1021  ;;  %v6451_v49 = vld [vmem:[#allocation23_spill] sm:$0xff] }
 0x129   : > { %6423 = vst [vmem:[#allocation14_spill] sm:$0xff] %v4375_v50  ;;  %1446 = vrot.lane.b32.xlu1 %v6424_v35, %s3309_s12  ;;  %v6456_v50 = vld [vmem:[#allocation76_spill] sm:$0xff] }
 0x12a   : > { %1414 = vrot.lane.b32.xlu0 %v6425_v19, %s3309_s12 }
 0x12b   : > { %v4381_v20 = vpop.permute.xlu1 %1027 }
 0x12c   : > { %6426 = vst [vmem:[#allocation33_spill] sm:$0xff] %v4381_v20  ;;  %v4383_v29 = vpop.permute.xlu0 %1025 }
 0x12d   : > { %6427 = vst [vmem:[#allocation13_spill] sm:$0xff] %v4383_v29  ;;  %1545 = vrot.lane.b32.xlu1 %v6428_v60, %s3310_s24 }
 0x12e   : > { %1513 = vrot.lane.b32.xlu0 %v6429_v48, %s3310_s24 }
 0x12f   : > { %v4389_v34 = vpop.permute.xlu1 %1031 }
 0x130   : > { %6430 = vst [vmem:[#allocation59_spill] sm:$0xff] %v4389_v34  ;;  %v4391_v54 = vpop.permute.xlu0 %1029 }
 0x131   : > { %6431 = vst [vmem:[#allocation45_spill] sm:$0xff] %v4391_v54  ;;  %1149 = vrot.lane.b32.xlu1 %v6424_v35, %s3306_s15  ;;  %v6435_v35 = vld [vmem:[#allocation44_spill] sm:$0xff] }
 0x132   : > { %1117 = vrot.lane.b32.xlu0 %v6425_v19, %s3306_s15  ;;  %v6444_v54 = vld [vmem:[#allocation36_spill] sm:$0xff] }
 0x133   : > { %v4397_v30 = vpop.permute.xlu1 %1035 }
 0x134   : > { %6432 = vst [vmem:[#allocation90_spill] sm:$0xff] %v4397_v30  ;;  %v4399_v23 = vpop.permute.xlu0 %1033 }
 0x135   : > { %6433 = vst [vmem:[#allocation91_spill] sm:$0xff] %v4399_v23  ;;  %1248 = vrot.lane.b32.xlu1 %v6428_v60, %s3307_s16 }
 0x136   : > { %1216 = vrot.lane.b32.xlu0 %v6429_v48, %s3307_s16 }
 0x137   : > { %v4405_v55 = vpop.permute.xlu1 %1039 }
 0x138   : > { %v4407_v43 = vpop.permute.xlu0 %1037 }
 0x139   : > { %1547 = vrot.lane.b32.xlu1 %v6434_v1, %s3310_s24 }
 0x13a   : > { %1515 = vrot.lane.b32.xlu0 %v6435_v35, %s3310_s24 }
 0x13b   : > { %v4413_v19 = vpop.permute.xlu1 %1043 }
 0x13c   : > { %v4415_v30 = vpop.permute.xlu0 %1041 }
 0x13d   : > { %1250 = vrot.lane.b32.xlu1 %v6434_v1, %s3307_s16 }
 0x13e   : > { %1218 = vrot.lane.b32.xlu0 %v6435_v35, %s3307_s16 }
 0x13f   : > { %v4421_v60 = vpop.permute.xlu1 %1047 }
 0x140   : > { %v4423_v48 = vpop.permute.xlu0 %1045 }
 0x141   : > { %1346 = vrot.lane.b32.xlu1 %v3678_v14, %s3308_s17  ;;  %v6439_v14 = vld [vmem:[#allocation16_spill] sm:$0xff] }
 0x142   : > { %1314 = vrot.lane.b32.xlu0 %v3503_v7, %s3308_s17 }
 0x143   : > { %v4429_v23 = vpop.permute.xlu1 %1051 }
 0x144   : > { %v4431_v34 = vpop.permute.xlu0 %1049 }
 0x145   : > { %1348 = vrot.lane.b32.xlu1 %v3673_v36, %s3308_s17 }
 0x146   : > { %1316 = vrot.lane.b32.xlu0 %v3485_v61, %s3308_s17 }
 0x147   : > { %v4437_v1 = vpop.permute.xlu1 %1055 }
 0x148   : > { %6436 = vst [vmem:[#allocation58_spill] sm:$0xff] %v4437_v1  ;;  %v4439_v35 = vpop.permute.xlu0 %1053  ;;  %v6454_v1 = vld [vmem:[#allocation7_spill] sm:$0xff] }
 0x149   : > { %6437 = vst [vmem:[#allocation44_spill] sm:$0xff] %v4439_v35  ;;  %1448 = vrot.lane.b32.xlu1 %v6438_v59, %s3309_s12 }
 0x14a   : > { %1416 = vrot.lane.b32.xlu0 %v6439_v14, %s3309_s12 }
 0x14b   : > { %v4445_v7 = vpop.permute.xlu1 %1059 }
 0x14c   : > { %6440 = vst [vmem:[#allocation37_spill] sm:$0xff] %v4445_v7  ;;  %v4447_v32 = vpop.permute.xlu0 %1057 }
 0x14d   : > { %6441 = vst [vmem:[#allocation16_spill] sm:$0xff] %v4447_v32  ;;  %1151 = vrot.lane.b32.xlu1 %v6438_v59, %s3306_s15  ;;  %v6447_v59 = vld [vmem:[#allocation47_spill] sm:$0xff] }
 0x14e   : > { %1119 = vrot.lane.b32.xlu0 %v6439_v14, %s3306_s15 }
 0x14f   : > { %v4453_v61 = vpop.permute.xlu1 %1063 }
 0x150   : > { %6442 = vst [vmem:[#allocation92_spill] sm:$0xff] %v4453_v61  ;;  %v4455_v36 = vpop.permute.xlu0 %1061 }
 0x151   : > { %6443 = vst [vmem:[#allocation93_spill] sm:$0xff] %v4455_v36  ;;  %1450 = vrot.lane.b32.xlu1 %v6444_v54, %s3309_s12 }
 0x152   : > { %1418 = vrot.lane.b32.xlu0 %v6445_v31, %s3309_s12 }
 0x153   : > { %v1140_v47 = vpop.permute.xlu1 %1139 }
 0x154   : > { %v1108_v20 = vpop.permute.xlu0 %1107 }
 0x155   : > { %1549 = vrot.lane.b32.xlu1 %v6446_v37, %s3310_s24 }
 0x156   : > { %1517 = vrot.lane.b32.xlu0 %v6447_v59, %s3310_s24 }
 0x157   : > { %v4465_v7 = vpop.permute.xlu1 %1141 }
 0x158   : > { %v4467_v14 = vpop.permute.xlu0 %1109 }
 0x159   : > { %1153 = vrot.lane.b32.xlu1 %v6444_v54, %s3306_s15  ;;  %v6449_v54 = vld [vmem:[#allocation46_spill] sm:$0xff] }
 0x15a   : > { %1121 = vrot.lane.b32.xlu0 %v6445_v31, %s3306_s15 }
 0x15b   : > { %v1241_v61 = vpop.permute.xlu1 %1240 }
 0x15c   : > { %v1209_v36 = vpop.permute.xlu0 %1208 }
 0x15d   : > { %1252 = vrot.lane.b32.xlu1 %v6446_v37, %s3307_s16 }
 0x15e   : > { %1220 = vrot.lane.b32.xlu0 %v6447_v59, %s3307_s16 }
 0x15f   : > { %v4477_v21 = vpop.permute.xlu1 %1242 }
 0x160   : > { %v4479_v29 = vpop.permute.xlu0 %1210 }
 0x161   : > { %1551 = vrot.lane.b32.xlu1 %v6448_v17, %s3310_s24 }
 0x162   : > { %1519 = vrot.lane.b32.xlu0 %v6449_v54, %s3310_s24 }
 0x163   : > { %v1339_v32 = vpop.permute.xlu1 %1338 }
 0x164   : > { %v1307_v31 = vpop.permute.xlu0 %1306 }
 0x165   : > { %1254 = vrot.lane.b32.xlu1 %v6448_v17, %s3307_s16 }
 0x166   : > { %1222 = vrot.lane.b32.xlu0 %v6449_v54, %s3307_s16  ;;  %v6450_v54 = vld [vmem:[#allocation72_spill] sm:$0xff] }
 0x167   : > { %v1341_v37 = vpop.permute.xlu1 %1340  ;;  %v1622_v51 = vsel %vm1605_vm5, %v6451_v49, %v6450_v54  ;;  %v6455_v54 = vld [vmem:[#allocation18_spill] sm:$0xff] }
 0x168   : > { %v4489_v59 = vpop.permute.xlu0 %1308 }
 0x169   : > { %1350 = vrot.lane.b32.xlu1 %v3705_v6, %s3308_s17  ;;  %v6452_v6 = vld [vmem:[#allocation39_spill] sm:$0xff] }
 0x16a   : > { %1318 = vrot.lane.b32.xlu0 %v3526_v26, %s3308_s17  ;;  %v1655_v26 = vsel %vm1638_vm6, %v1622_v51, %v4216_v3 }
 0x16b   : > { %v1441_v18 = vpop.permute.xlu1 %1440  ;;  %v1688_v52 = vsel %vm1671_vm8, %v1655_v26, %v4407_v43 }
 0x16c   : > { %v1409_v5 = vpop.permute.xlu0 %1408  ;;  %v1721_v35 = vsel %vm1704_vm7, %v1688_v52, %v1140_v47 }
 0x16d   : > { %1352 = vrot.lane.b32.xlu1 %v3697_v13, %s3308_s17  ;;  %v6453_v13 = vld [vmem:[#allocation64_spill] sm:$0xff]  ;;  %v1754_v3 = vsel %vm1737_vm9, %v1721_v35, %v1241_v61 }
 0x16e   : > { %1320 = vrot.lane.b32.xlu0 %v3512_v16, %s3308_s17  ;;  %v1606_v16 = vsel %vm1605_vm5, %v6454_v1, %v6453_v13  ;;  %v1787_v26 = vsel %vm1770_vm10, %v1754_v3, %v1339_v32  ;;  %v6463_v3 = vld [vmem:[#allocation8_spill] sm:$0xff] }
 0x16f   : > { %v4499_v17 = vpop.permute.xlu1 %1143  ;;  %v1639_v40 = vsel %vm1638_vm6, %v1606_v16, %v6456_v50  ;;  %v1820_v52 = vsel %vm1803_vm11, %v1787_v26, %v1441_v18  ;;  %v6458_v18 = vld [vmem:[#allocation17_spill] sm:$0xff]  ;;  %v6461_v16 = vld [vmem:[#allocation63_spill] sm:$0xff] }
 0x170   : > { %v4504_v44 = vpop.permute.xlu0 %1111  ;;  %v1672_v51 = vsel %vm1671_vm8, %v1639_v40, %v4343_v9 }
 0x171   : > { %1452 = vrot.lane.b32.xlu1 %v6452_v6, %s3309_s12  ;;  %v1705_v43 = vsel %vm1704_vm7, %v1672_v51, %v1108_v20  ;;  %v6457_v20 = vld [vmem:[#allocation38_spill] sm:$0xff]  ;;  %v6462_v51 = vld [vmem:[#allocation68_spill] sm:$0xff] }
 0x172   : > { %1420 = vrot.lane.b32.xlu0 %v6455_v54, %s3309_s12  ;;  %v1738_v50 = vsel %vm1737_vm9, %v1705_v43, %v1209_v36  ;;  %v1607_v43 = vsel %vm1605_vm5, %v6463_v3, %v6462_v51 }
 0x173   : > { %v1443_v2 = vpop.permute.xlu1 %1442  ;;  %v1771_v40 = vsel %vm1770_vm10, %v1738_v50, %v1307_v31  ;;  %v6459_v31 = vld [vmem:[#allocation71_spill] sm:$0xff]  ;;  %v6464_v50 = vld [vmem:[#allocation49_spill] sm:$0xff] }
 0x174   : > { %v1411_v1 = vpop.permute.xlu0 %1410  ;;  %v1804_v35 = vsel %vm1803_vm11, %v1771_v40, %v1409_v5 }
 0x175   : > { %1155 = vrot.lane.b32.xlu1 %v6452_v6, %s3306_s15  ;;  %v6460_v6 = vld [vmem:[#allocation22_spill] sm:$0xff] }
 0x176   : > { %1123 = vrot.lane.b32.xlu0 %v6455_v54, %s3306_s15  ;;  %v1623_v13 = vsel %vm1605_vm5, %v6460_v6, %v6459_v31 }
 0x177   : > { %v1542_v47 = vpop.permute.xlu1 %1541  ;;  %v1656_v54 = vsel %vm1638_vm6, %v1623_v13, %v4214_v8 }
 0x178   : > { %v1853_v9 = vsel %vm1836_vm12, %v1820_v52, %v1542_v47  ;;  %v1510_v61 = vpop.permute.xlu0 %1509  ;;  %v1689_v26 = vsel %vm1671_vm8, %v1656_v54, %v4405_v55  ;;  %v6465_v47 = vld [vmem:[#allocation75_spill] sm:$0xff] }
 0x179   : > { %1454 = vrot.lane.b32.xlu1 %v6457_v20, %s3309_s12  ;;  %3105 = vmatprep.mubr.msk.f32.mxu1 %vm1878_vm13, %v1853_v9  ;;  %v1837_v32 = vsel %vm1836_vm12, %v1804_v35, %v1510_v61  ;;  %v1640_v40 = vsel %vm1638_vm6, %v1607_v43, %v6465_v47  ;;  %v1722_v9 = vsel %vm1704_vm7, %v1689_v26, %v4465_v7  ;;  %v6469_v47 = vld [vmem:[#allocation27_spill] sm:$0xff] }
 0x17a   : > { %1422 = vrot.lane.b32.xlu0 %v6458_v18, %s3309_s12  ;;  %3081 = vmatprep.mubr.msk.f32.mxu0 %vm1878_vm13, %v1837_v32  ;;  %v1673_v8 = vsel %vm1671_vm8, %v1640_v40, %v4341_v27  ;;  %v1755_v35 = vsel %vm1737_vm9, %v1722_v9, %v4477_v21 }
 0x17b   : > { %v4541_v36 = vpop.permute.xlu1 %1145  ;;  %v1706_v55 = vsel %vm1704_vm7, %v1673_v8, %v4467_v14  ;;  %v1788_v32 = vsel %vm1770_vm10, %v1755_v35, %v1341_v37  ;;  %v6466_v37 = vld [vmem:[#allocation61_spill] sm:$0xff]  ;;  %v6471_v8 = vld [vmem:[#allocation62_spill] sm:$0xff] }
 0x17c   : > { %v4546_v5 = vpop.permute.xlu0 %1113  ;;  %v1739_v31 = vsel %vm1737_vm9, %v1706_v55, %v4479_v29  ;;  %v1821_v7 = vsel %vm1803_vm11, %v1788_v32, %v1443_v2  ;;  %v6472_v35 = vld [vmem:[#allocation5_spill] sm:$0xff]  ;;  %v6473_v55 = vld [vmem:[#allocation20_spill] sm:$0xff] }
 0x17d   : > { %1553 = vrot.lane.b32.xlu1 %v6461_v16, %s3310_s24  ;;  %v1772_v21 = vsel %vm1770_vm10, %v1739_v31, %v4489_v59  ;;  %v6467_v59 = vld [vmem:[#allocation48_spill] sm:$0xff]  ;;  %v6474_v31 = vld [vmem:[#allocation78_spill] sm:$0xff] }
 0x17e   : > { %1521 = vrot.lane.b32.xlu0 %v6464_v50, %s3310_s24 }
 0x17f   : > { %v1245_v52 = vpop.permute.xlu1 %1244 }
 0x180   : > { %v1213_v61 = vpop.permute.xlu0 %1212 }
 0x181   : > { %1157 = vrot.lane.b32.xlu1 %v6457_v20, %s3306_s15  ;;  %v1805_v20 = vsel %vm1803_vm11, %v1772_v21, %v1411_v1 }
 0x182   : > { %1125 = vrot.lane.b32.xlu0 %v6458_v18, %s3306_s15 }
 0x183   : > { %v1544_v27 = vpop.permute.xlu1 %1543 }
 0x184   : > { %v1854_v13 = vsel %vm1836_vm12, %v1821_v7, %v1544_v27  ;;  %v1512_v54 = vpop.permute.xlu0 %1511 }
 0x185   : > { %1256 = vrot.lane.b32.xlu1 %v6461_v16, %s3307_s16  ;;  %3106 = vmatmul.mubr.msk.f32.vlgmr.msra.gmra.mrb[0].mxu1 %vm1878_vm13, %v1854_v13  ;;  %v1838_v29 = vsel %vm1836_vm12, %v1805_v20, %v1512_v54 }
 0x186   : > { %1224 = vrot.lane.b32.xlu0 %v6464_v50, %s3307_s16  ;;  %3082 = vmatmul.mubr.msk.f32.vlgmr.msra.gmra.mrb[0].mxu0 %vm1878_vm13, %v1838_v29  ;;  %v6468_v50 = vld [vmem:[#allocation74_spill] sm:$0xff] }
 0x187   : > { %v1247_v2 = vpop.permute.xlu1 %1246  ;;  %v1624_v40 = vsel %vm1605_vm5, %v6469_v47, %v6468_v50  ;;  %v6475_v50 = vld [vmem:[#allocation40_spill] sm:$0xff] }
 0x188   : > { %v4588_v14 = vpop.permute.xlu0 %1214 }
 0x189   : > { %1555 = vrot.lane.b32.xlu1 %v6466_v37, %s3310_s24 }
 0x18a   : > { %1523 = vrot.lane.b32.xlu0 %v6467_v59, %s3310_s24 }
 0x18b   : > { %v1343_v1 = vpop.permute.xlu1 %1342 }
 0x18c   : > { %v1311_v18 = vpop.permute.xlu0 %1310 }
 0x18d   : > { %1258 = vrot.lane.b32.xlu1 %v6466_v37, %s3307_s16 }
 0x18e   : > { %1226 = vrot.lane.b32.xlu0 %v6467_v59, %s3307_s16 }
 0x18f   : > { %v1345_v16 = vpop.permute.xlu1 %1344 }
 0x190   : > { %v1313_v51 = vpop.permute.xlu0 %1312 }
 0x191   : > { %1354 = vrot.lane.b32.xlu1 %v3726_v10, %s3308_s17  ;;  %v6470_v10 = vld [vmem:[#allocation41_spill] sm:$0xff] }
 0x192   : > { %1322 = vrot.lane.b32.xlu0 %v3550_v46, %s3308_s17  ;;  %v1657_v46 = vsel %vm1638_vm6, %v1624_v40, %v4230_v24 }
 0x193   : > { %v1445_v3 = vpop.permute.xlu1 %1444 }
 0x194   : > { %v1413_v43 = vpop.permute.xlu0 %1412 }
 0x195   : > { %1356 = vrot.lane.b32.xlu1 %v3719_v45, %s3308_s17  ;;  %v1608_v45 = vsel %vm1605_vm5, %v6472_v35, %v6471_v8  ;;  %v6480_v8 = vld [vmem:[#allocation66_spill] sm:$0xff] }
 0x196   : > { %1324 = vrot.lane.b32.xlu0 %v3540_v39, %s3308_s17  ;;  %v1690_v39 = vsel %vm1671_vm8, %v1657_v46, %v4415_v30  ;;  %v1641_v7 = vsel %vm1638_vm6, %v1608_v45, %v6474_v31  ;;  %v6481_v35 = vld [vmem:[#allocation6_spill] sm:$0xff] }
 0x197   : > { %v4606_v26 = vpop.permute.xlu1 %1147  ;;  %v1723_v27 = vsel %vm1704_vm7, %v1690_v39, %v4499_v17  ;;  %v1674_v24 = vsel %vm1671_vm8, %v1641_v7, %v4351_v15  ;;  %v1609_v45 = vsel %vm1605_vm5, %v6481_v35, %v6480_v8  ;;  %v6483_v7 = vld [vmem:[#allocation77_spill] sm:$0xff] }
 0x198   : > { %v4611_v9 = vpop.permute.xlu0 %1115  ;;  %v1756_v21 = vsel %vm1737_vm9, %v1723_v27, %v1245_v52  ;;  %v1707_v30 = vsel %vm1704_vm7, %v1674_v24, %v4504_v44  ;;  %v1642_v27 = vsel %vm1638_vm6, %v1609_v45, %v6483_v7  ;;  %v6489_v7 = vld [vmem:[#allocation21_spill] sm:$0xff] }
 0x199   : > { %1456 = vrot.lane.b32.xlu1 %v6470_v10, %s3309_s12  ;;  %v1789_v20 = vsel %vm1770_vm10, %v1756_v21, %v1343_v1  ;;  %v1740_v54 = vsel %vm1737_vm9, %v1707_v30, %v1213_v61  ;;  %v6476_v61 = vld [vmem:[#allocation19_spill] sm:$0xff] }
 0x19a   : > { %1424 = vrot.lane.b32.xlu0 %v6473_v55, %s3309_s12  ;;  %v1822_v29 = vsel %vm1803_vm11, %v1789_v20, %v1445_v3  ;;  %v1773_v15 = vsel %vm1770_vm10, %v1740_v54, %v1311_v18  ;;  %v6477_v18 = vld [vmem:[#allocation73_spill] sm:$0xff]  ;;  %v6478_v3 = vld [vmem:[#allocation26_spill] sm:$0xff] }
 0x19b   : > { %v1447_v32 = vpop.permute.xlu1 %1446  ;;  %v1806_v37 = vsel %vm1803_vm11, %v1773_v15, %v1413_v43  ;;  %v1625_v40 = vsel %vm1605_vm5, %v6478_v3, %v6477_v18 }
 0x19c   : > { %v1415_v13 = vpop.permute.xlu0 %1414  ;;  %v1658_v46 = vsel %vm1638_vm6, %v1625_v40, %v4228_v62  ;;  %v1675_v62 = vsel %vm1671_vm8, %v1642_v27, %v4349_v42  ;;  %v6486_v40 = vld [vmem:[#allocation43_spill] sm:$0xff]  ;;  %vm2223_vm6 = vcmask 1043459  }
 0x19d   : > { %1159 = vrot.lane.b32.xlu1 %v6470_v10, %s3306_s15  ;;  %v6479_v10 = vld [vmem:[#allocation67_spill] sm:$0xff]  ;;  %v1691_v39 = vsel %vm1671_vm8, %v1658_v46, %v4413_v19  ;;  %v1708_v19 = vsel %vm1704_vm7, %v1675_v62, %v4546_v5  ;;  %v6490_v62 = vld [vmem:[#allocation70_spill] sm:$0xff] }
 0x19e   : > { %1127 = vrot.lane.b32.xlu0 %v6473_v55, %s3306_s15  ;;  %v6482_v55 = vld [vmem:[#allocation51_spill] sm:$0xff]  ;;  %v1724_v24 = vsel %vm1704_vm7, %v1691_v39, %v4541_v36  ;;  %v1741_v54 = vsel %vm1737_vm9, %v1708_v19, %v4588_v14 }
 0x19f   : > { %v1546_v17 = vpop.permute.xlu1 %1545  ;;  %v1757_v21 = vsel %vm1737_vm9, %v1724_v24, %v1247_v2  ;;  %v1774_v36 = vsel %vm1770_vm10, %v1741_v54, %v1313_v51  ;;  %v6484_v51 = vld [vmem:[#allocation65_spill] sm:$0xff]  ;;  %v6492_v54 = vld [vmem:[#allocation79_spill] sm:$0xff] }
 0x1a0   : > { %v1855_v52 = vsel %vm1836_vm12, %v1822_v29, %v1546_v17  ;;  %v1514_v59 = vpop.permute.xlu0 %1513  ;;  %v1790_v20 = vsel %vm1770_vm10, %v1757_v21, %v1345_v16  ;;  %v1807_v17 = vsel %vm1803_vm11, %v1774_v36, %v1415_v13  ;;  %v1693_v21 = vsel %vm1671_vm8, %v4246_v33, %v4421_v60 }
 0x1a1   : > { %1458 = vrot.lane.b32.xlu1 %v6475_v50, %s3309_s12  ;;  %3108 = vmatprep.mubr.msk.f32.mxu1 %vm1878_vm13, %v1855_v52  ;;  %v1839_v44 = vsel %vm1836_vm12, %v1806_v37, %v1514_v59  ;;  %v1823_v29 = vsel %vm1803_vm11, %v1790_v20, %v1447_v32  ;;  %v6485_v32 = vld [vmem:[#allocation50_spill] sm:$0xff] }
 0x1a2   : > { %1426 = vrot.lane.b32.xlu0 %v6476_v61, %s3309_s12  ;;  %3084 = vmatprep.mubr.msk.f32.mxu0 %vm1878_vm13, %v1839_v44 }
 0x1a3   : > { %v4650_v1 = vpop.permute.xlu1 %1149 }
 0x1a4   : > { %v4655_v43 = vpop.permute.xlu0 %1117  ;;  %v1726_v20 = vsel %vm1704_vm7, %v1693_v21, %v4650_v1 }
 0x1a5   : > { %1557 = vrot.lane.b32.xlu1 %v6479_v10, %s3310_s24 }
 0x1a6   : > { %1525 = vrot.lane.b32.xlu0 %v6482_v55, %s3310_s24 }
 0x1a7   : > { %v1249_v31 = vpop.permute.xlu1 %1248 }
 0x1a8   : > { %v1217_v30 = vpop.permute.xlu0 %1216 }
 0x1a9   : > { %1161 = vrot.lane.b32.xlu1 %v6475_v50, %s3306_s15 }
 0x1aa   : > { %1129 = vrot.lane.b32.xlu0 %v6476_v61, %s3306_s15 }
 0x1ab   : > { %v1548_v42 = vpop.permute.xlu1 %1547 }
 0x1ac   : > { %v1856_v2 = vsel %vm1836_vm12, %v1823_v29, %v1548_v42  ;;  %v1516_v15 = vpop.permute.xlu0 %1515  ;;  %v1677_v29 = vsel %vm1671_vm8, %v6492_v54, %v4357_v22 }
 0x1ad   : > { %1260 = vrot.lane.b32.xlu1 %v6479_v10, %s3307_s16  ;;  %3109 = vmatmul.mubr.msk.f32.gmra.mrb[2].mxu1 %vm1878_vm13, %v1856_v2  ;;  %v1840_v5 = vsel %vm1836_vm12, %v1807_v17, %v1516_v15  ;;  %v1710_v33 = vsel %vm1704_vm7, %v1677_v29, %v4655_v43 }
 0x1ae   : > { %1228 = vrot.lane.b32.xlu0 %v6482_v55, %s3307_s16  ;;  %3085 = vmatmul.mubr.msk.f32.gmra.mrb[2].mxu0 %vm1878_vm13, %v1840_v5 }
 0x1af   : > { %v1251_v14 = vpop.permute.xlu1 %1250 }
 0x1b0   : > { %v1219_v16 = vpop.permute.xlu0 %1218  ;;  %v1759_v42 = vsel %vm1737_vm9, %v1726_v20, %v1251_v14 }
 0x1b1   : > { %1559 = vrot.lane.b32.xlu1 %v6484_v51, %s3310_s24  ;;  %v1743_v2 = vsel %vm1737_vm9, %v1710_v33, %v1219_v16 }
 0x1b2   : > { %1527 = vrot.lane.b32.xlu0 %v6485_v32, %s3310_s24 }
 0x1b3   : > { %v1347_v13 = vpop.permute.xlu1 %1346 }
 0x1b4   : > { %v1315_v52 = vpop.permute.xlu0 %1314 }
 0x1b5   : > { %1262 = vrot.lane.b32.xlu1 %v6484_v51, %s3307_s16  ;;  %v433_v51 = vld [vmem:[%s366_s7] sm:$0xff] }
 0x1b6   : > { %1230 = vrot.lane.b32.xlu0 %v6485_v32, %s3307_s16  ;;  %vm487_vm14 = vcmp.gt.f32.partialorder %v433_v51, 0.0 }
 0x1b7   : > { %v1349_v37 = vpop.permute.xlu1 %1348 }
 0x1b8   : > { %v1317_v59 = vpop.permute.xlu0 %1316  ;;  %v1792_v60 = vsel %vm1770_vm10, %v1759_v42, %v1349_v37  ;;  %v6494_v37 = vld [vmem:[#allocation52_spill] sm:$0xff] }
 0x1b9   : > { %1358 = vrot.lane.b32.xlu1 %v3745_v11, %s3308_s17  ;;  %v1692_v11 = vsel %vm1671_vm8, %v4254_v28, %v4423_v48  ;;  %v1776_v17 = vsel %vm1770_vm10, %v1743_v2, %v1317_v59  ;;  %v1695_v2 = vsel %vm1671_vm8, %v4265_v57, %v4429_v23 }
 0x1ba   : > { %1326 = vrot.lane.b32.xlu0 %v3568_v63, %s3308_s17  ;;  %v6487_v63 = vld [vmem:[#allocation24_spill] sm:$0xff] }
 0x1bb   : > { %v1449_v50 = vpop.permute.xlu1 %1448 }
 0x1bc   : > { %v1417_v44 = vpop.permute.xlu0 %1416 }
 0x1bd   : > { %1360 = vrot.lane.b32.xlu1 %v3735_v0, %s3308_s17  ;;  %v1725_v0 = vsel %vm1704_vm7, %v1692_v11, %v4606_v26 }
 0x1be   : > { %1328 = vrot.lane.b32.xlu0 %v3560_v56, %s3308_s17  ;;  %v1676_v56 = vsel %vm1671_vm8, %v4118_v53, %v4359_v4  ;;  %v1758_v46 = vsel %vm1737_vm9, %v1725_v0, %v1249_v31  ;;  %v6488_v31 = vld [vmem:[#allocation42_spill] sm:$0xff] }
 0x1bf   : > { %v4711_v61 = vpop.permute.xlu1 %1151  ;;  %v1709_v28 = vsel %vm1704_vm7, %v1676_v56, %v4611_v9  ;;  %v1791_v48 = vsel %vm1770_vm10, %v1758_v46, %v1347_v13  ;;  %v6493_v13 = vld [vmem:[#allocation69_spill] sm:$0xff]  ;;  %v435_v56 = vld [vmem:[%s366_s7 + $0x10] sm:$0x3] }
 0x1c0   : > { %v4713_v18 = vpop.permute.xlu0 %1119  ;;  %v1742_v35 = vsel %vm1737_vm9, %v1709_v28, %v1217_v30  ;;  %v1824_v45 = vsel %vm1803_vm11, %v1791_v48, %v1449_v50  ;;  %v6491_v30 = vld [vmem:[#allocation53_spill] sm:$0xff]  ;;  %v543_v28 = vmul.f32 0.2, %v435_v56  ;;  %vm489_vm1 = vcmp.gt.f32.partialorder %v435_v56, 0.0 }
 0x1c1   : > { %1460 = vrot.lane.b32.xlu1 %v6486_v40, %s3309_s12  ;;  %v1775_v53 = vsel %vm1770_vm10, %v1742_v35, %v1315_v52  ;;  %v541_v52 = vmul.f32 0.2, %v433_v51 }
 0x1c2   : > { %1428 = vrot.lane.b32.xlu0 %v6487_v63, %s3309_s12  ;;  %v1808_v39 = vsel %vm1803_vm11, %v1775_v53, %v1417_v44 }
 0x1c3   : > { %v1451_v10 = vpop.permute.xlu1 %1450  ;;  %v595_v44 = vsel %vm487_vm14, %v433_v51, %v541_v52 }
 0x1c4   : > { %v1419_v8 = vpop.permute.xlu0 %1418  ;;  %v1825_v1 = vsel %vm1803_vm11, %v1792_v60, %v1451_v10  ;;  %v1102_v35 = vrot.slane %v595_v44, 1 }
 0x1c5   : > { %1163 = vrot.lane.b32.xlu1 %v6486_v40, %s3306_s15  ;;  %v1809_v43 = vsel %vm1803_vm11, %v1776_v17, %v1419_v8  ;;  %v434_v40 = vld [vmem:[%s366_s7 + $0x8] sm:$0xff] }
 0x1c6   : > { %1131 = vrot.lane.b32.xlu0 %v6487_v63, %s3306_s15  ;;  %v542_v10 = vmul.f32 0.2, %v434_v40  ;;  %vm488_vm15 = vcmp.gt.f32.partialorder %v434_v40, 0.0 }
 0x1c7   : > { %v1550_v26 = vpop.permute.xlu1 %1549 }
 0x1c8   : > { %v1857_v4 = vsel %vm1836_vm12, %v1824_v45, %v1550_v26  ;;  %v1518_v55 = vpop.permute.xlu0 %1517  ;;  %v4810_v8 = vsel %vm488_vm15, %v434_v40, %v542_v10 }
 0x1c9   : > { %1462 = vrot.lane.b32.xlu1 %v6488_v31, %s3309_s12  ;;  %3111 = vmatprep.mubr.msk.f32.mxu1 %vm1878_vm13, %v1857_v4  ;;  %v1841_v9 = vsel %vm1836_vm12, %v1808_v39, %v1518_v55  ;;  %v1103_v45 = vrot.slane %v4810_v8, 1  ;;  %v597_v4 = vsel %vm489_vm1, %v435_v56, %v543_v28  ;;  %v1204_v54 = vrot.slane %v4810_v8, 2 }
 0x1ca   : > { %1430 = vrot.lane.b32.xlu0 %v6489_v7, %s3309_s12  ;;  %3087 = vmatprep.mubr.msk.f32.mxu0 %vm1878_vm13, %v1841_v9 }
 0x1cb   : > { %v4747_v27 = vpop.permute.xlu1 %1153  ;;  %v1104_v55 = vsel %vm649_vm0, %v1102_v35, %v1103_v45 }
 0x1cc   : > { %v4749_v24 = vpop.permute.xlu0 %1121  ;;  %v1728_v17 = vsel %vm1704_vm7, %v1695_v2, %v4747_v27  ;;  %v6503_v2 = vld [vmem:[#allocation30_spill] sm:$0xff] }
 0x1cd   : > { %1561 = vrot.lane.b32.xlu1 %v6490_v62, %s3310_s24 }
 0x1ce   : > { %1529 = vrot.lane.b32.xlu0 %v6491_v30, %s3310_s24 }
 0x1cf   : > { %v4758_v19 = vpop.permute.xlu1 %1252 }
 0x1d0   : > { %v4766_v36 = vpop.permute.xlu0 %1220 }
 0x1d1   : > { %1165 = vrot.lane.b32.xlu1 %v6488_v31, %s3306_s15  ;;  %v1678_v31 = vsel %vm1671_vm8, %v4134_v25, %v4367_v12 }
 0x1d2   : > { %1133 = vrot.lane.b32.xlu0 %v6489_v7, %s3306_s15 }
 0x1d3   : > { %v1552_v22 = vpop.permute.xlu1 %1551 }
 0x1d4   : > { %v1858_v15 = vsel %vm1836_vm12, %v1825_v1, %v1552_v22  ;;  %v1520_v5 = vpop.permute.xlu0 %1519  ;;  %v6496_v1 = vld [vmem:[#allocation25_spill] sm:$0xff] }
 0x1d5   : > { %1264 = vrot.lane.b32.xlu1 %v6490_v62, %s3307_s16  ;;  %3112 = vmatmul.mubr.msk.f32.gmra.mrb[4].mxu1 %vm1878_vm13, %v1858_v15  ;;  %v1842_v14 = vsel %vm1836_vm12, %v1809_v43, %v1520_v5  ;;  %v1105_v62 = vrot.slane %v597_v4, 1  ;;  %v1679_v15 = vsel %vm1671_vm8, %v4126_v38, %v4365_v58  ;;  %v6497_v38 = vld [vmem:[#allocation55_spill] sm:$0xff] }
 0x1d6   : > { %1232 = vrot.lane.b32.xlu0 %v6491_v30, %s3307_s16  ;;  %3088 = vmatmul.mubr.msk.f32.gmra.mrb[4].mxu0 %vm1878_vm13, %v1842_v14  ;;  %v1712_v57 = vsel %vm1704_vm7, %v1679_v15, %v4749_v24 }
 0x1d7   : > { %v4791_v16 = vpop.permute.xlu1 %1254  ;;  %v1106_v42 = vsel %vm649_vm0, %v1103_v45, %v1105_v62  ;;  %v6500_v62 = vld [vmem:[#allocation12_spill] sm:$0xff] }
 0x1d8   : > { %v4793_v32 = vpop.permute.xlu0 %1222  ;;  %v1761_v43 = vsel %vm1737_vm9, %v1728_v17, %v4791_v16 }
 0x1d9   : > { %1563 = vrot.lane.b32.xlu1 %v6493_v13, %s3310_s24  ;;  %v1745_v27 = vsel %vm1737_vm9, %v1712_v57, %v4793_v32  ;;  %v1206_v32 = vrot.slane %v597_v4, 2 }
 0x1da   : > { %1531 = vrot.lane.b32.xlu0 %v6494_v37, %s3310_s24 }
 0x1db   : > { %v1351_v59 = vpop.permute.xlu1 %1350 }
 0x1dc   : > { %v1319_v50 = vpop.permute.xlu0 %1318 }
 0x1dd   : > { %1266 = vrot.lane.b32.xlu1 %v6493_v13, %s3307_s16 }
 0x1de   : > { %1234 = vrot.lane.b32.xlu0 %v6494_v37, %s3307_s16 }
 0x1df   : > { %v1353_v11 = vpop.permute.xlu1 %1352 }
 0x1e0   : > { %v4803_v63 = vpop.permute.xlu0 %1320  ;;  %v1794_v23 = vsel %vm1770_vm10, %v1761_v43, %v1353_v11 }
 0x1e1   : > { %1362 = vrot.lane.b32.xlu1 %v595_v44, %s3308_s17  ;;  %v1778_v16 = vsel %vm1770_vm10, %v1745_v27, %v4803_v63 }
 0x1e2   : > { %1330 = vrot.lane.b32.xlu0 %v6451_v49, %s3308_s17  ;;  %v6495_v49 = vld [vmem:[#allocation28_spill] sm:$0xff] }
 0x1e3   : > { %v1453_v0 = vpop.permute.xlu1 %1452 }
 0x1e4   : > { %v1421_v46 = vpop.permute.xlu0 %1420 }
 0x1e5   : > { %1332 = vrot.lane.b32.xlu1 %v6460_v6, %s3308_s17  ;;  %v1694_v6 = vsel %vm1671_vm8, %v4273_v41, %v4431_v34  ;;  %v1711_v41 = vsel %vm1704_vm7, %v1678_v31, %v4713_v18  ;;  %v1203_v18 = vrot.slane %v595_v44, 2 }
 0x1e6   : > { %1065 = vrot.lane.b32.xlu0 %v595_v44, %s3305_s14  ;;  %v1727_v39 = vsel %vm1704_vm7, %v1694_v6, %v4711_v61  ;;  %v1744_v61 = vsel %vm1737_vm9, %v1711_v41, %v4766_v36 }
 0x1e7   : > { %v4813_v48 = vpop.permute.xlu1 %1155  ;;  %v1760_v9 = vsel %vm1737_vm9, %v1727_v39, %v4758_v19  ;;  %v1777_v12 = vsel %vm1770_vm10, %v1744_v61, %v1319_v50  ;;  %v1205_v60 = vsel %vm826_vm4, %v1203_v18, %v1204_v54  ;;  %v1207_v50 = vsel %vm826_vm4, %v1204_v54, %v1206_v32  ;;  %v6508_v32 = vld [vmem:[#allocation34_spill] sm:$0xff] }
 0x1e8   : > { %v4816_v26 = vpop.permute.xlu0 %1123  ;;  %v1793_v34 = vsel %vm1770_vm10, %v1760_v9, %v1351_v59  ;;  %v1810_v19 = vsel %vm1803_vm11, %v1777_v12, %v1421_v46  ;;  %v6502_v12 = vld [vmem:[#allocation10_spill] sm:$0xff] }
 0x1e9   : > { %1432 = vrot.lane.b32.xlu1 %v6495_v49, %s3309_s12  ;;  %v1826_v21 = vsel %vm1803_vm11, %v1793_v34, %v1453_v0  ;;  %v6498_v0 = vld [vmem:[#allocation54_spill] sm:$0xff]  ;;  %v6499_v34 = vld [vmem:[#allocation44_spill] sm:$0xff] }
 0x1ea   : > { %1364 = vrot.lane.b32.xlu0 %v4810_v8, %s3308_s17  ;;  %v1696_v61 = vsel %vm1671_vm8, %v6500_v62, %v6499_v34  ;;  %v6511_v34 = vld [vmem:[#allocation16_spill] sm:$0xff]  ;;  %v6512_v62 = vld [vmem:[#allocation11_spill] sm:$0xff] }
 0x1eb   : > { %v1455_v53 = vpop.permute.xlu1 %1454 }
 0x1ec   : > { %v1423_v7 = vpop.permute.xlu0 %1422  ;;  %v1827_v14 = vsel %vm1803_vm11, %v1794_v23, %v1455_v53  ;;  %v6504_v23 = vld [vmem:[#allocation29_spill] sm:$0xff] }
 0x1ed   : > { %1067 = vrot.lane.b32.xlu1 %v4810_v8, %s3305_s14  ;;  %v1811_v13 = vsel %vm1803_vm11, %v1778_v16, %v1423_v7  ;;  %s3020_s14 = sadd.s32 408, %s3401_s8  ;;  %v6506_v16 = vld [vmem:[#allocation32_spill] sm:$0xff]  ;;  %s3311_s8 = smov 96  }
 0x1ee   : > { %1464 = vrot.lane.b32.xlu0 %v1104_v55, %s3309_s12  ;;  %s380_s11 = scalar_lea.vmem %s6196_s2, %s3020_s14  ;;  %s6139_s14 = scalar_lea.hbm %s6199_s5, %s3021_s25 }
 0x1ef   : > { %v1554_v25 = vpop.permute.xlu1 %1553  ;;  %v436_v40 = vld [vmem:[%s380_s11] sm:$0xff]  ;;  %v437_v11 = vld [vmem:[%s380_s11 + $0x8] sm:$0xff]  ;;  %v438_v8 = vld [vmem:[%s380_s11 + $0x10] sm:$0x3]  ;;  %s3227_s11 = sshll.u32 %s3312_s10, 4  ;;  %s3228_s11 = int_to_ptr.vmem [resolvable:$false] %s3227_s11 }
 0x1f0   : > { %v1859_v30 = vsel %vm1836_vm12, %v1826_v21, %v1554_v25  ;;  %v1522_v20 = vpop.permute.xlu0 %1521  ;;  %v544_v10 = vmul.f32 0.2, %v436_v40  ;;  %vm490_vm2 = vcmp.gt.f32.partialorder %v436_v40, 0.0  ;;  %v545_v46 = vmul.f32 0.2, %v437_v11  ;;  %v6501_v25 = vld [vmem:[#allocation14_spill] sm:$0xff] }
 0x1f1   : > { %1167 = vrot.lane.b32.xlu1 %v1104_v55, %s3306_s15  ;;  %3114 = vmatprep.mubr.msk.f32.mxu1 %vm1878_vm13, %v1859_v30  ;;  %v1843_v29 = vsel %vm1836_vm12, %v1810_v19, %v1522_v20  ;;  %vm491_vm3 = vcmp.gt.f32.partialorder %v437_v11, 0.0  ;;  %vm492_vm5 = vcmp.gt.f32.partialorder %v438_v8, 0.0  ;;  %v1680_v30 = vsel %vm1671_vm8, %v6502_v12, %v6501_v25  ;;  %v6513_v25 = vld [vmem:[#allocation13_spill] sm:$0xff] }
 0x1f2   : > { %1135 = vrot.lane.b32.xlu0 %v6495_v49, %s3306_s15  ;;  %3090 = vmatprep.mubr.msk.f32.mxu0 %vm1878_vm13, %v1843_v29  ;;  %v598_v35 = vsel %vm490_vm2, %v436_v40, %v544_v10  ;;  %v546_v49 = vmul.f32 0.2, %v438_v8  ;;  %v599_v6 = vsel %vm491_vm3, %v437_v11, %v545_v46  ;;  %v1713_v54 = vsel %vm1704_vm7, %v1680_v30, %v4816_v26  ;;  %v6510_v46 = vld [vmem:[#allocation56_spill] sm:$0xff]  ;;  %v6514_v12 = vld [vmem:[#allocation81_spill] sm:$0xff] }
 0x1f3   : > { %v4853_v36 = vpop.permute.xlu1 %1157  ;;  %v1403_v4 = vrot.slane %v598_v35, 1  ;;  %v1404_v39 = vrot.slane %v599_v6, 1  ;;  %v1504_v20 = vrot.slane %v598_v35, 2  ;;  %v1505_v29 = vrot.slane %v599_v6, 2 }
 0x1f4   : > { %v4855_v33 = vpop.permute.xlu0 %1125  ;;  %v600_v31 = vsel %vm492_vm5, %v438_v8, %v546_v49  ;;  %v1682_v30 = vsel %vm1671_vm8, %v6514_v12, %v6513_v25 }
 0x1f5   : > { %1466 = vrot.lane.b32.xlu1 %v1106_v42, %s3309_s12  ;;  %v1405_v7 = vsel %vm649_vm0, %v1403_v4, %v1404_v39  ;;  %v1406_v41 = vrot.slane %v600_v31, 1  ;;  %v1507_v57 = vrot.slane %v600_v31, 2 }
 0x1f6   : > { %1434 = vrot.lane.b32.xlu0 %v6496_v1, %s3309_s12 }
 0x1f7   : > { %v4864_v22 = vpop.permute.xlu1 %1256 }
 0x1f8   : > { %v4873_v5 = vpop.permute.xlu0 %1224 }
 0x1f9   : > { %1565 = vrot.lane.b32.xlu1 %v1205_v60, %s3310_s24 }
 0x1fa   : > { %1533 = vrot.lane.b32.xlu0 %v6497_v38, %s3310_s24 }
 0x1fb   : > { %v1556_v58 = vpop.permute.xlu1 %1555 }
 0x1fc   : > { %v1860_v51 = vsel %vm1836_vm12, %v1827_v14, %v1556_v58  ;;  %v1524_v52 = vpop.permute.xlu0 %1523  ;;  %v6505_v58 = vld [vmem:[#allocation58_spill] sm:$0xff] }
 0x1fd   : > { %1169 = vrot.lane.b32.xlu1 %v1106_v42, %s3306_s15  ;;  %3115 = vmatmul.mubr.msk.f32.gmra.mrb[6].mxu1 %vm1878_vm13, %v1860_v51  ;;  %v1844_v24 = vsel %vm1836_vm12, %v1811_v13, %v1524_v52  ;;  %v1407_v42 = vsel %vm649_vm0, %v1404_v39, %v1406_v41  ;;  %v1697_v51 = vsel %vm1671_vm8, %v6506_v16, %v6505_v58  ;;  %v6507_v13 = vld [vmem:[#allocation57_spill] sm:$0xff]  ;;  %vm2217_vm0 = vcmask 1041409  }
 0x1fe   : > { %1137 = vrot.lane.b32.xlu0 %v6496_v1, %s3306_s15  ;;  %3091 = vmatmul.mubr.msk.f32.gmra.mrb[6].mxu0 %vm1878_vm13, %v1844_v24  ;;  %v1730_v24 = vsel %vm1704_vm7, %v1697_v51, %v4853_v36 }
 0x1ff   : > { %v4895_v37 = vpop.permute.xlu1 %1258 }
 0x200   : > { %v4900_v59 = vpop.permute.xlu0 %1226  ;;  %v1763_v40 = vsel %vm1737_vm9, %v1730_v24, %v4895_v37 }
 0x201   : > { %1268 = vrot.lane.b32.xlu1 %v1205_v60, %s3307_s16 }
 0x202   : > { %1236 = vrot.lane.b32.xlu0 %v6497_v38, %s3307_s16  ;;  %v1508_v38 = vsel %vm826_vm4, %v1505_v29, %v1507_v57  ;;  %v6517_v57 = vld [vmem:[#allocation33_spill] sm:$0xff] }
 0x203   : > { %v1355_v44 = vpop.permute.xlu1 %1354 }
 0x204   : > { %v1323_v63 = vpop.permute.xlu0 %1322 }
 0x205   : > { %1567 = vrot.lane.b32.xlu1 %v1207_v50, %s3310_s24 }
 0x206   : > { %1535 = vrot.lane.b32.xlu0 %v6498_v0, %s3310_s24 }
 0x207   : > { %v4909_v56 = vpop.permute.xlu1 %1356 }
 0x208   : > { %v4911_v28 = vpop.permute.xlu0 %1324  ;;  %v1796_v10 = vsel %vm1770_vm10, %v1763_v40, %v4909_v56 }
 0x209   : > { %1270 = vrot.lane.b32.xlu1 %v1207_v50, %s3307_s16  ;;  %v6509_v50 = vld [vmem:[#allocation9_spill] sm:$0xff] }
 0x20a   : > { %1238 = vrot.lane.b32.xlu0 %v6498_v0, %s3307_s16 }
 0x20b   : > { %v1457_v45 = vpop.permute.xlu1 %1456 }
 0x20c   : > { %v1425_v53 = vpop.permute.xlu0 %1424 }
 0x20d   : > { %1366 = vrot.lane.b32.xlu1 %v598_v35, %s3308_s17 }
 0x20e   : > { %1334 = vrot.lane.b32.xlu0 %v6469_v47, %s3308_s17  ;;  %v1729_v47 = vsel %vm1704_vm7, %v1696_v61, %v4813_v48  ;;  %v1746_v48 = vsel %vm1737_vm9, %v1713_v54, %v4873_v5  ;;  %v1506_v5 = vsel %vm826_vm4, %v1504_v20, %v1505_v29  ;;  %v1698_v61 = vsel %vm1671_vm8, %v6512_v62, %v6511_v34  ;;  %v6521_v62 = vld [vmem:[#allocation45_spill] sm:$0xff] }
 0x20f   : > { %v4919_v55 = vpop.permute.xlu1 %1159  ;;  %v1762_v19 = vsel %vm1737_vm9, %v1729_v47, %v4864_v22  ;;  %v1779_v22 = vsel %vm1770_vm10, %v1746_v48, %v1323_v63  ;;  %vm2220_vm4 = vcmask 1042434  }
 0x210   : > { %v4921_v9 = vpop.permute.xlu0 %1127  ;;  %v1812_v26 = vsel %vm1803_vm11, %v1779_v22, %v1425_v53  ;;  %v1731_v47 = vsel %vm1704_vm7, %v1698_v61, %v4919_v55  ;;  %v6522_v61 = vld [vmem:[#allocation83_spill] sm:$0xff] }
 0x211   : > { %1368 = vrot.lane.b32.xlu1 %v599_v6, %s3308_s17 }
 0x212   : > { %1336 = vrot.lane.b32.xlu0 %v6478_v3, %s3308_s17  ;;  %v1795_v3 = vsel %vm1770_vm10, %v1762_v19, %v1355_v44  ;;  %v1681_v44 = vsel %vm1671_vm8, %v6509_v50, %v6508_v32 }
 0x213   : > { %v1459_v21 = vpop.permute.xlu1 %1458  ;;  %v1828_v60 = vsel %vm1803_vm11, %v1795_v3, %v1457_v45  ;;  %v1714_v63 = vsel %vm1704_vm7, %v1681_v44, %v4855_v33 }
 0x214   : > { %v1427_v18 = vpop.permute.xlu0 %1426  ;;  %v1747_v0 = vsel %vm1737_vm9, %v1714_v63, %v4900_v59  ;;  %v1829_v36 = vsel %vm1803_vm11, %v1796_v10, %v1459_v21 }
 0x215   : > { %1468 = vrot.lane.b32.xlu1 %v1405_v7, %s3309_s12  ;;  %v1780_v37 = vsel %vm1770_vm10, %v1747_v0, %v4911_v28 }
 0x216   : > { %1436 = vrot.lane.b32.xlu0 %v6503_v2, %s3309_s12  ;;  %v1813_v45 = vsel %vm1803_vm11, %v1780_v37, %v1427_v18  ;;  %v1715_v18 = vsel %vm1704_vm7, %v1682_v30, %v4921_v9 }
 0x217   : > { %v1558_v1 = vpop.permute.xlu1 %1557 }
 0x218   : > { %v1861_v17 = vsel %vm1836_vm12, %v1828_v60, %v1558_v1  ;;  %v1526_v15 = vpop.permute.xlu0 %1525 }
 0x219   : > { %1470 = vrot.lane.b32.xlu1 %v1407_v42, %s3309_s12  ;;  %3117 = vmatprep.mubr.msk.f32.mxu1 %vm1878_vm13, %v1861_v17  ;;  %v1845_v43 = vsel %vm1836_vm12, %v1812_v26, %v1526_v15  ;;  %v6515_v17 = vld [vmem:[#allocation37_spill] sm:$0xff]  ;;  %v6516_v26 = vld [vmem:[#allocation31_spill] sm:$0xff] }
 0x21a   : > { %1438 = vrot.lane.b32.xlu0 %v6504_v23, %s3309_s12  ;;  %3093 = vmatprep.mubr.msk.f32.mxu0 %vm1878_vm13, %v1845_v43  ;;  %v1699_v15 = vsel %vm1671_vm8, %v6516_v26, %v6515_v17  ;;  %v6518_v23 = vld [vmem:[#allocation80_spill] sm:$0xff]  ;;  %v6525_v17 = vld [vmem:[#allocation59_spill] sm:$0xff]  ;;  %v6526_v26 = vld [vmem:[#allocation82_spill] sm:$0xff]  ;;  %s332_s12 = sand.u32 1, %s3285_s19  }
 0x21b   : > { %v1162_v27 = vpop.permute.xlu1 %1161  ;;  %s2976_s13 = sshll.u32 %s332_s12, 6  ;;  %s6147_s21 = scalar_lea.sflag [#allocation3], %s332_s12 }
 0x21c   : > { %v1130_v14 = vpop.permute.xlu0 %1129 }
 0x21d   : > { %1569 = vrot.lane.b32.xlu1 %v1506_v5, %s3310_s24  ;;  %v1732_v5 = vsel %vm1704_vm7, %v1699_v15, %v1162_v27  ;;  %v1685_v15 = vsel %vm1671_vm8, %v6526_v26, %v6525_v17 }
 0x21e   : > { %1537 = vrot.lane.b32.xlu0 %v6507_v13, %s3310_s24 }
 0x21f   : > { %v1261_v52 = vpop.permute.xlu1 %1260 }
 0x220   : > { %v1229_v11 = vpop.permute.xlu0 %1228  ;;  %v1764_v19 = vsel %vm1737_vm9, %v1731_v47, %v1261_v52 }
 0x221   : > { %1571 = vrot.lane.b32.xlu1 %v1508_v38, %s3310_s24  ;;  %v1748_v3 = vsel %vm1737_vm9, %v1715_v18, %v1229_v11  ;;  %v1683_v38 = vsel %vm1671_vm8, %v6518_v23, %v6517_v57 }
 0x222   : > { %1539 = vrot.lane.b32.xlu0 %v6510_v46, %s3310_s24  ;;  %v1716_v51 = vsel %vm1704_vm7, %v1683_v38, %v1130_v14 }
 0x223   : > { %v1560_v8 = vpop.permute.xlu1 %1559 }
 0x224   : > { %v1862_v35 = vsel %vm1836_vm12, %v1829_v36, %v1560_v8  ;;  %v1528_v33 = vpop.permute.xlu0 %1527 }
 0x225   : > { %3118 = vmatmul.mubr.msk.f32.gmra.mrb[8].mxu1 %vm1878_vm13, %v1862_v35  ;;  %v1846_v56 = vsel %vm1836_vm12, %v1813_v45, %v1528_v33 }
 0x226   : > { %3094 = vmatmul.mubr.msk.f32.gmra.mrb[8].mxu0 %vm1878_vm13, %v1846_v56 }
 0x227   : > { %v1263_v59 = vpop.permute.xlu1 %1262 }
 0x228   : > { %v1231_v49 = vpop.permute.xlu0 %1230  ;;  %v1765_v58 = vsel %vm1737_vm9, %v1732_v5, %v1263_v59 }
 0x229   : > { %v1749_v52 = vsel %vm1737_vm9, %v1716_v51, %v1231_v49  ;;  %v6528_v51 = vld [vmem:[#allocation84_spill] sm:$0xff] }
 0x22b   : > { %v1359_v6 = vpop.permute.xlu1 %1358 }
 0x22c   : > { %v1327_v53 = vpop.permute.xlu0 %1326  ;;  %v1797_v54 = vsel %vm1770_vm10, %v1764_v19, %v1359_v6 }
 0x22d   : > { %v1781_v48 = vsel %vm1770_vm10, %v1748_v3, %v1327_v53 }
 0x22f   : > { %v1361_v4 = vpop.permute.xlu1 %1360 }
 0x230   : > { %v1329_v39 = vpop.permute.xlu0 %1328  ;;  %v1798_v13 = vsel %vm1770_vm10, %v1765_v58, %v1361_v4  ;;  %v6519_v4 = vld [vmem:[#allocation93_spill] sm:$0xff] }
 0x231   : > { %v1782_v50 = vsel %vm1770_vm10, %v1749_v52, %v1329_v39  ;;  %v6520_v39 = vld [vmem:[#allocation87_spill] sm:$0xff] }
 0x232   : > { %v6529_v52 = vld [vmem:[#allocation91_spill] sm:$0xff] }
 0x233   : > { %v1461_v31 = vpop.permute.xlu1 %1460 }
 0x234   : > { %v1429_v7 = vpop.permute.xlu0 %1428  ;;  %v1830_v29 = vsel %vm1803_vm11, %v1797_v54, %v1461_v31  ;;  %v1700_v31 = vsel %vm1671_vm8, %v6520_v39, %v6519_v4 }
 0x235   : > { %v1814_v60 = vsel %vm1803_vm11, %v1781_v48, %v1429_v7 }
 0x237   : > { %v1164_v28 = vpop.permute.xlu1 %1163 }
 0x238   : > { %v1132_v41 = vpop.permute.xlu0 %1131  ;;  %v1733_v34 = vsel %vm1704_vm7, %v1700_v31, %v1164_v28 }
 0x23b   : > { %v1463_v21 = vpop.permute.xlu1 %1462 }
 0x23c   : > { %v1431_v20 = vpop.permute.xlu0 %1430  ;;  %v1831_v24 = vsel %vm1803_vm11, %v1798_v13, %v1463_v21  ;;  %v1684_v21 = vsel %vm1671_vm8, %v6522_v61, %v6521_v62 }
 0x23d   : > { %v1815_v44 = vsel %vm1803_vm11, %v1782_v50, %v1431_v20  ;;  %v1717_v12 = vsel %vm1704_vm7, %v1684_v21, %v1132_v41 }
 0x23f   : > { %v1562_v42 = vpop.permute.xlu1 %1561 }
 0x240   : > { %v1863_v55 = vsel %vm1836_vm12, %v1830_v29, %v1562_v42  ;;  %v1530_v2 = vpop.permute.xlu0 %1529 }
 0x241   : > { %3120 = vmatprep.mubr.msk.f32.mxu1 %vm1878_vm13, %v1863_v55  ;;  %v1847_v1 = vsel %vm1836_vm12, %v1814_v60, %v1530_v2  ;;  %v6523_v55 = vld [vmem:[#allocation92_spill] sm:$0xff]  ;;  %v6524_v60 = vld [vmem:[#allocation86_spill] sm:$0xff] }
 0x242   : > { %3096 = vmatprep.mubr.msk.f32.mxu0 %vm1878_vm13, %v1847_v1  ;;  %v1701_v2 = vsel %vm1671_vm8, %v6524_v60, %v6523_v55  ;;  %v6532_v60 = vld [vmem:[#allocation88_spill] sm:$0xff] }
 0x243   : > { %v1166_v9 = vpop.permute.xlu1 %1165 }
 0x244   : > { %v1134_v22 = vpop.permute.xlu0 %1133 }
 0x245   : > { %v1718_v5 = vsel %vm1704_vm7, %v1685_v15, %v1134_v22 }
 0x247   : > { %v1265_v43 = vpop.permute.xlu1 %1264 }
 0x248   : > { %v1233_v16 = vpop.permute.xlu0 %1232  ;;  %v1766_v47 = vsel %vm1737_vm9, %v1733_v34, %v1265_v43  ;;  %v1734_v43 = vsel %vm1704_vm7, %v1701_v2, %v1166_v9 }
 0x249   : > { %v1750_v19 = vsel %vm1737_vm9, %v1717_v12, %v1233_v16  ;;  %v6527_v16 = vld [vmem:[#allocation90_spill] sm:$0xff] }
 0x24a   : > { %v5074_v13 = vsel %vm1671_vm8, %v6528_v51, %v6527_v16 }
 0x24b   : > { %v1564_v32 = vpop.permute.xlu1 %1563 }
 0x24c   : > { %v1864_v27 = vsel %vm1836_vm12, %v1831_v24, %v1564_v32  ;;  %v1532_v40 = vpop.permute.xlu0 %1531  ;;  %v6530_v24 = vld [vmem:[#allocation85_spill] sm:$0xff] }
 0x24d   : > { %3121 = vmatmul.mubr.msk.f32.gmra.mrb[10].mxu1 %vm1878_vm13, %v1864_v27  ;;  %v1848_v11 = vsel %vm1836_vm12, %v1815_v44, %v1532_v40  ;;  %v1686_v32 = vsel %vm1671_vm8, %v6530_v24, %v6529_v52 }
 0x24e   : > { %3097 = vmatmul.mubr.msk.f32.gmra.mrb[10].mxu0 %vm1878_vm13, %v1848_v11 }
 0x24f   : > { %v1267_v14 = vpop.permute.xlu1 %1266 }
 0x250   : > { %v1235_v63 = vpop.permute.xlu0 %1234  ;;  %v1767_v57 = vsel %vm1737_vm9, %v1734_v43, %v1267_v14  ;;  %v6531_v14 = vld [vmem:[#allocation89_spill] sm:$0xff] }
 0x251   : > { %v1751_v38 = vsel %vm1737_vm9, %v1718_v5, %v1235_v63 }
 0x253   : > { %v1363_v10 = vpop.permute.xlu1 %1362 }
 0x254   : > { %v1331_v0 = vpop.permute.xlu0 %1330  ;;  %v1799_v30 = vsel %vm1770_vm10, %v1766_v47, %v1363_v10 }
 0x255   : > { %v1783_v54 = vsel %vm1770_vm10, %v1750_v19, %v1331_v0 }
 0x257   : > { %v1333_v36 = vpop.permute.xlu1 %1332 }
 0x258   : > { %v5026_v46 = vpop.f32.mrb[0].mxu1  ;;  %v1066_v8 = vpop.permute.xlu0 %1065  ;;  %v1784_v9 = vsel %vm1770_vm10, %v1751_v38, %v1333_v36 }
 0x259   : > { %v5028_v37 = vpop.f32.mrb[1].mxu1  ;;  %v5030_v35 = vpop.f32.mrb[0].mxu0  ;;  %v2547_v27 = vrot.slane %v5026_v46, 1  ;;  %v2581_v44 = vrot.slane %v5026_v46, 2  ;;  %v1702_v63 = vsel %vm1671_vm8, %v6531_v14, %v1066_v8  ;;  %v2679_v0 = vrot.slane %v5026_v46, 5 }
 0x25a   : > { %v5032_v45 = vpop.f32.mrb[1].mxu0  ;;  %v2567_v31 = vrot.slane %v5030_v35, 2  ;;  %v2665_v34 = vrot.slane %v5030_v35, 5  ;;  %v2399_v55 = vrot.slane %v5028_v37, 5  ;;  %v2433_v15 = vrot.slane %v5028_v37, 6 }
 0x25b   : > { %v1433_v33 = vpop.permute.xlu1 %1432  ;;  %v2253_v47 = vrot.slane %v5032_v45, 1  ;;  %v2385_v19 = vrot.slane %v5032_v45, 5 }
 0x25c   : > { %v1365_v56 = vpop.permute.xlu0 %1364  ;;  %v1816_v3 = vsel %vm1803_vm11, %v1783_v54, %v1433_v33 }
 0x25d   : > { %v1800_v58 = vsel %vm1770_vm10, %v1767_v57, %v1365_v56  ;;  %v2533_v56 = vrot.slane %v5030_v35, 1 }
 0x25f   : > { %v5034_v59 = vpop.permute.xlu1 %1067 }
 0x260   : > { %v1465_v49 = vpop.permute.xlu0 %1464  ;;  %v1703_v2 = vsel %vm1671_vm8, %v6532_v60, %v5034_v59  ;;  %vm2226_vm8 = vcmask 1044484  }
 0x261   : > { %v1832_v20 = vsel %vm1803_vm11, %v1799_v30, %v1465_v49  ;;  %v2713_v49 = vrot.slane %v5026_v46, 6 }
 0x263   : > { %v5036_v6 = vpop.permute.xlu1 %1167 }
 0x264   : > { %v5038_v53 = vpop.permute.xlu0 %1135  ;;  %v1735_v17 = vsel %vm1704_vm7, %v1702_v63, %v5036_v6 }
 0x265   : > { %v1719_v43 = vsel %vm1704_vm7, %v1686_v32, %v5038_v53 }
 0x267   : > { %v1467_v7 = vpop.permute.xlu1 %1466 }
 0x268   : > { %v1435_v25 = vpop.permute.xlu0 %1434  ;;  %v1833_v22 = vsel %vm1803_vm11, %v1800_v58, %v1467_v7 }
 0x269   : > { %v1817_v36 = vsel %vm1803_vm11, %v1784_v9, %v1435_v25  ;;  %v2287_v25 = vrot.slane %v5032_v45, 2 }
 0x26b   : > { %v1566_v18 = vpop.permute.xlu1 %1565 }
 0x26c   : > { %v1865_v28 = vsel %vm1836_vm12, %v1832_v20, %v1566_v18  ;;  %v1534_v29 = vpop.permute.xlu0 %1533  ;;  %v2419_v20 = vrot.slane %v5032_v45, 6 }
 0x26d   : > { %3123 = vmatprep.mubr.msk.f32.mxu1 %vm1878_vm13, %v1865_v28  ;;  %v1849_v42 = vsel %vm1836_vm12, %v1816_v3, %v1534_v29  ;;  %v2267_v28 = vrot.slane %v5028_v37, 1  ;;  %v2301_v3 = vrot.slane %v5028_v37, 2 }
 0x26e   : > { %3099 = vmatprep.mubr.msk.f32.mxu0 %vm1878_vm13, %v1849_v42 }
 0x26f   : > { %v1170_v41 = vpop.permute.xlu1 %1169 }
 0x270   : > { %v5058_v48 = vpop.permute.xlu0 %1137  ;;  %v1736_v5 = vsel %vm1704_vm7, %v1703_v2, %v1170_v41 }
 0x273   : > { %v1269_v1 = vpop.permute.xlu1 %1268 }
 0x274   : > { %v1237_v23 = vpop.permute.xlu0 %1236  ;;  %v1768_v57 = vsel %vm1737_vm9, %v1735_v17, %v1269_v1 }
 0x275   : > { %v1752_v16 = vsel %vm1737_vm9, %v1719_v43, %v1237_v23 }
 0x277   : > { %v1568_v50 = vpop.permute.xlu1 %1567 }
 0x278   : > { %v1866_v11 = vsel %vm1836_vm12, %v1833_v22, %v1568_v50  ;;  %v1536_v33 = vpop.permute.xlu0 %1535 }
 0x279   : > { %3124 = vmatmul.mubr.msk.f32.gmra.mrb[12].mxu1 %vm1878_vm13, %v1866_v11  ;;  %v1850_v39 = vsel %vm1836_vm12, %v1817_v36, %v1536_v33 }
 0x27a   : > { %3100 = vmatmul.mubr.msk.f32.gmra.mrb[12].mxu0 %vm1878_vm13, %v1850_v39 }
 0x27b   : > { %v1271_v62 = vpop.permute.xlu1 %1270 }
 0x27c   : > { %v5108_v18 = vpop.permute.xlu0 %1238  ;;  %v5131_v59 = vsel %vm1737_vm9, %v1736_v5, %v1271_v62 }
 0x27f   : > { %v1367_v26 = vpop.permute.xlu1 %1366 }
 0x280   : > { %v5126_v38 = vpop.f32.mrb[2].mxu1  ;;  %v1801_v6 = vsel %vm1770_vm10, %v1768_v57, %v1367_v26  ;;  %v1335_v51 = vpop.permute.xlu0 %1334 }
 0x281   : > { %v5134_v52 = vpop.f32.mrb[3].mxu1  ;;  %v5136_v24 = vpop.f32.mrb[2].mxu0  ;;  %v2582_v41 = vrot.slane %v5126_v38, 1  ;;  %v2616_v1 = vrot.slane %v5126_v38, 2  ;;  %v1785_v23 = vsel %vm1770_vm10, %v1752_v16, %v1335_v51  ;;  %v2680_v9 = vrot.slane %v5126_v38, 4 }
 0x282   : > { %v2714_v22 = vrot.slane %v5126_v38, 5  ;;  %v2748_v50 = vrot.slane %v5126_v38, 6  ;;  %v2051_v11 = vpop.f32.mrb[3].mxu0  ;;  %v2503_v63 = vrot.slane %v5136_v24, 7  ;;  %v2568_v36 = vrot.slane %v5136_v24, 1 }
 0x283   : > { %v5146_v14 = vpop.permute.xlu1 %1368  ;;  %v2602_v33 = vrot.slane %v5136_v24, 2  ;;  %v2636_v39 = vrot.slane %v5136_v24, 3  ;;  %v2666_v62 = vrot.slane %v5136_v24, 4  ;;  %v2700_v60 = vrot.slane %v5136_v24, 5 }
 0x284   : > { %v2734_v2 = vrot.slane %v5136_v24, 6  ;;  %v2386_v17 = vrot.slane %v2051_v11, 4  ;;  %v5155_v26 = vpop.permute.xlu0 %1336  ;;  %v2216_v43 = vrot.slane %v2051_v11, 7  ;;  %v2288_v5 = vrot.slane %v2051_v11, 1 }
 0x285   : > { %v2322_v57 = vrot.slane %v2051_v11, 2  ;;  %v2356_v16 = vrot.slane %v2051_v11, 3  ;;  %v2420_v51 = vrot.slane %v2051_v11, 5  ;;  %v2302_v7 = vrot.slane %v5134_v52, 1 }
 0x286   : > { %v2400_v32 = vrot.slane %v5134_v52, 4  ;;  %v2434_v10 = vrot.slane %v5134_v52, 5  ;;  %v2454_v30 = vrot.slane %v2051_v11, 6  ;;  %v2237_v42 = vrot.slane %v5134_v52, 7 }
 0x287   : > { %v1469_v53 = vpop.permute.xlu1 %1468  ;;  %v2336_v21 = vrot.slane %v5134_v52, 2  ;;  %v2370_v4 = vrot.slane %v5134_v52, 3  ;;  %v5165_v40 = vsel %vm2217_vm0, %v5134_v52, %v2267_v28  ;;  %v5170_v54 = vsel %vm2217_vm0, %v2051_v11, %v2253_v47 }
 0x288   : > { %v1437_v8 = vpop.permute.xlu0 %1436  ;;  %v5173_v58 = vsel %vm2217_vm0, %v2400_v32, %v2399_v55  ;;  %v5176_v12 = vsel %vm2217_vm0, %v2386_v17, %v2385_v19  ;;  %v2468_v29 = vrot.slane %v5134_v52, 6  ;;  %v5183_v61 = vsel %vm2217_vm0, %v5126_v38, %v2547_v27 }
 0x289   : > { %v5189_v47 = vsel %vm2217_vm0, %v5136_v24, %v2533_v56  ;;  %v5194_v28 = vsel %vm2217_vm0, %v2680_v9, %v2679_v0  ;;  %v5199_v55 = vsel %vm2217_vm0, %v2666_v62, %v2665_v34  ;;  %v2303_v27 = vsel %vm2217_vm0, %v2302_v7, %v2301_v3 }
 0x28a   : > { %v5207_v56 = vsel %vm2217_vm0, %v2288_v5, %v2287_v25  ;;  %v5210_v52 = vsel %vm2217_vm0, %v2434_v10, %v2433_v15  ;;  %v1834_v0 = vsel %vm1803_vm11, %v1801_v6, %v1469_v53  ;;  %v5216_v24 = vsel %vm2217_vm0, %v2420_v51, %v2419_v20 }
 0x28b   : > { %v1471_v19 = vpop.permute.xlu1 %1470  ;;  %v2583_v34 = vsel %vm2217_vm0, %v2582_v41, %v2581_v44  ;;  %v5224_v7 = vsel %vm2217_vm0, %v2568_v36, %v2567_v31  ;;  %v5229_v10 = vsel %vm2217_vm0, %v2714_v22, %v2713_v49  ;;  %v6533_v3 = vrot.slane %v5030_v35, 6 }
 0x28c   : > { %v1439_v25 = vpop.permute.xlu0 %1438  ;;  %v6534_v15 = vrot.slane %v5028_v37, 3  ;;  %v6535_v6 = vrot.slane %v5032_v45, 3  ;;  %v1818_v53 = vsel %vm1803_vm11, %v1785_v23, %v1437_v8  ;;  %v6536_v49 = vrot.slane %v5028_v37, 7 }
 0x28d   : > { %v5234_v20 = vsel %vm2217_vm0, %v2700_v60, %v6533_v3  ;;  %v6537_v32 = vrot.slane %v5032_v45, 7  ;;  %v6539_v36 = vrot.slane %v5030_v35, 3  ;;  %v6540_v23 = vrot.slane %v5026_v46, 7 }
 0x28e   : > { %v5239_v44 = vsel %vm2217_vm0, %v2336_v21, %v6534_v15  ;;  %v5244_v31 = vsel %vm2217_vm0, %v2322_v57, %v6535_v6  ;;  %v5250_v41 = vsel %vm2217_vm0, %v2468_v29, %v6536_v49  ;;  %v6538_v21 = vrot.slane %v5026_v46, 3 }
 0x28f   : > { %v5255_v9 = vsel %vm2217_vm0, %v2454_v30, %v6537_v32  ;;  %v1570_v11 = vpop.permute.xlu1 %1569  ;;  %v5265_v8 = vsel %vm2217_vm0, %v2602_v33, %v6539_v36  ;;  %v5270_v29 = vsel %vm2217_vm0, %v2748_v50, %v6540_v23  ;;  %v6541_v62 = vrot.slane %v5030_v35, 7 }
 0x290   : > { %v5260_v22 = vsel %vm2217_vm0, %v2616_v1, %v6538_v21  ;;  %v5279_v1 = vsel %vm2217_vm0, %v2237_v42, %v5028_v37  ;;  %v1867_v60 = vsel %vm1836_vm12, %v1834_v0, %v1570_v11  ;;  %v5284_v33 = vsel %vm2217_vm0, %v2216_v43, %v5032_v45  ;;  %v1538_v57 = vpop.permute.xlu0 %1537 }
 0x291   : > { %v5275_v30 = vsel %vm2217_vm0, %v2734_v2, %v6541_v62  ;;  %v6542_v17 = vrot.slane %v5028_v37, 4  ;;  %v6543_v5 = vrot.slane %v5032_v45, 4  ;;  %3126 = vmatprep.mubr.msk.f32.mxu1 %vm1878_vm13, %v1867_v60  ;;  %v6544_v42 = vrot.slane %v5126_v38, 7 }
 0x292   : > { %v5305_v37 = vsel %vm2217_vm0, %v2503_v63, %v5030_v35  ;;  %v6546_v45 = vrot.slane %v5126_v38, 3  ;;  %v1720_v3 = vsel %vm1704_vm7, %v5074_v13, %v5058_v48  ;;  %v1802_v63 = vsel %vm1770_vm10, %v5131_v59, %v5146_v14 }
 0x293   : > { %v5289_v50 = vsel %vm2217_vm0, %v2370_v4, %v6542_v17  ;;  %v5294_v2 = vsel %vm2217_vm0, %v2356_v16, %v6543_v5  ;;  %v5301_v51 = vsel %vm2217_vm0, %v6544_v42, %v5026_v46  ;;  %v6545_v4 = vrot.slane %v5026_v46, 4 }
 0x294   : > { %v6547_v16 = vrot.slane %v5030_v35, 4  ;;  %v1851_v46 = vsel %vm1836_vm12, %v1818_v53, %v1538_v57  ;;  %v1753_v38 = vsel %vm1737_vm9, %v1720_v3, %v5108_v18  ;;  %v1835_v15 = vsel %vm1803_vm11, %v1802_v63, %v1471_v19  ;;  %v1572_v35 = vpop.permute.xlu1 %1571  ;;  %v1540_v13 = vpop.permute.xlu0 %1539 }
 0x295   : > { %v5312_v43 = vsel %vm2217_vm0, %v6546_v45, %v6545_v4  ;;  %3102 = vmatprep.mubr.msk.f32.mxu0 %vm1878_vm13, %v1851_v46  ;;  %v1868_v6 = vsel %vm1836_vm12, %v1835_v15, %v1572_v35  ;;  %vm2229_vm9 = vcmask 1045509  }
 0x296   : > { %v5317_v0 = vsel %vm2217_vm0, %v2636_v39, %v6547_v16  ;;  %v1786_v39 = vsel %vm1770_vm10, %v1753_v38, %v5155_v26  ;;  %3127 = vmatmul.mubr.msk.f32.gmra.mrb[14].mxu1 %vm1878_vm13, %v1868_v6  ;;  %vm2232_vm10 = vcmask 1046534  }
 0x297   : > { %v1819_v48 = vsel %vm1803_vm11, %v1786_v39, %v1439_v25  ;;  %vm2235_vm11 = vcmask 1047559  }
 0x298   : > { %v1852_v59 = vsel %vm1836_vm12, %v1819_v48, %v1540_v13 }
 0x299   : > { %3103 = vmatmul.mubr.msk.f32.gmra.mrb[14].mxu0 %vm1878_vm13, %v1852_v59  ;;  %vm2771_vm13 = vcmask 785408  }
 0x2a8   : > { %v5337_v18 = vpop.f32.mrb[4].mxu1 }
 0x2a9   : > { %v2141_v14 = vpop.f32.mrb[5].mxu1  ;;  %v2549_v19 = vrot.slane %v5337_v18, 7  ;;  %v2682_v53 = vrot.slane %v5337_v18, 3  ;;  %v5343_v26 = vsel %vm2220_vm4, %v5337_v18, %v2583_v34  ;;  %v2716_v25 = vrot.slane %v5337_v18, 4  ;;  %v3089_v49 = vpop.f32.mrb[4].mxu0 }
 0x2aa   : > { %v2269_v32 = vrot.slane %v2141_v14, 7  ;;  %v2402_v21 = vrot.slane %v2141_v14, 3  ;;  %v5347_v11 = vsel %vm2220_vm4, %v2141_v14, %v2303_v27  ;;  %v2436_v36 = vrot.slane %v2141_v14, 4  ;;  %v2061_v23 = vpop.f32.mrb[5].mxu0 }
 0x2ab   : > { %v5351_v62 = vsel %vm2220_vm4, %v2549_v19, %v5183_v61  ;;  %v2535_v60 = vrot.slane %v3089_v49, 7  ;;  %v5355_v17 = vsel %vm2220_vm4, %v2682_v53, %v5194_v28  ;;  %v2668_v34 = vrot.slane %v3089_v49, 3 }
 0x2ac   : > { %v5359_v5 = vsel %vm2220_vm4, %v2269_v32, %v5165_v40  ;;  %v2255_v57 = vrot.slane %v2061_v23, 7  ;;  %v5363_v27 = vsel %vm2220_vm4, %v2402_v21, %v5173_v58  ;;  %v2388_v42 = vrot.slane %v2061_v23, 3 }
 0x2ad   : > { %v5367_v61 = vsel %vm2220_vm4, %v2535_v60, %v5189_v47  ;;  %v5371_v4 = vsel %vm2220_vm4, %v2668_v34, %v5199_v55  ;;  %v5375_v28 = vsel %vm2220_vm4, %v2061_v23, %v5207_v56  ;;  %v5379_v40 = vsel %vm2220_vm4, %v2436_v36, %v5210_v52 }
 0x2ae   : > { %v5383_v58 = vsel %vm2220_vm4, %v2255_v57, %v5170_v54  ;;  %v5387_v47 = vsel %vm2220_vm4, %v2388_v42, %v5176_v12  ;;  %v2422_v45 = vrot.slane %v2061_v23, 4  ;;  %v5391_v55 = vsel %vm2220_vm4, %v3089_v49, %v5224_v7 }
 0x2af   : > { %v5395_v56 = vsel %vm2220_vm4, %v2716_v25, %v5229_v10  ;;  %v2702_v16 = vrot.slane %v3089_v49, 4  ;;  %v2338_v52 = vrot.slane %v2141_v14, 1  ;;  %v2324_v3 = vrot.slane %v2061_v23, 1 }
 0x2b0   : > { %v5399_v54 = vsel %vm2220_vm4, %v2422_v45, %v5216_v24  ;;  %v2470_v63 = vrot.slane %v2141_v14, 5  ;;  %v2456_v46 = vrot.slane %v2061_v23, 5  ;;  %v2618_v12 = vrot.slane %v5337_v18, 1 }
 0x2b1   : > { %v5404_v38 = vsel %vm2220_vm4, %v2702_v16, %v5234_v20  ;;  %v5408_v7 = vsel %vm2220_vm4, %v2338_v52, %v5239_v44  ;;  %v5412_v10 = vsel %vm2220_vm4, %v2324_v3, %v5244_v31  ;;  %v2604_v15 = vrot.slane %v3089_v49, 1 }
 0x2b2   : > { %v5416_v24 = vsel %vm2220_vm4, %v2470_v63, %v5250_v41  ;;  %v5420_v35 = vsel %vm2220_vm4, %v2456_v46, %v5255_v9  ;;  %v5424_v20 = vsel %vm2220_vm4, %v2618_v12, %v5260_v22  ;;  %v2750_v44 = vrot.slane %v5337_v18, 5 }
 0x2b3   : > { %v5429_v39 = vsel %vm2220_vm4, %v2604_v15, %v5265_v8  ;;  %v2736_v31 = vrot.slane %v3089_v49, 5  ;;  %v2239_v6 = vrot.slane %v2141_v14, 6  ;;  %v2219_v48 = vrot.slane %v2061_v23, 6 }
 0x2b4   : > { %v5433_v41 = vsel %vm2220_vm4, %v2750_v44, %v5270_v29  ;;  %v2372_v13 = vrot.slane %v2141_v14, 2  ;;  %v2358_v9 = vrot.slane %v2061_v23, 2  ;;  %v2519_v59 = vrot.slane %v5337_v18, 6 }
 0x2b5   : > { %v5438_v22 = vsel %vm2220_vm4, %v2736_v31, %v5275_v30  ;;  %v5442_v19 = vsel %vm2220_vm4, %v2239_v6, %v5279_v1  ;;  %v5446_v8 = vsel %vm2220_vm4, %v2219_v48, %v5284_v33  ;;  %v2505_v53 = vrot.slane %v3089_v49, 6 }
 0x2b6   : > { %v5450_v29 = vsel %vm2220_vm4, %v2372_v13, %v5289_v50  ;;  %v5454_v14 = vsel %vm2220_vm4, %v2358_v9, %v5294_v2  ;;  %v5458_v30 = vsel %vm2220_vm4, %v2519_v59, %v5301_v51  ;;  %v2652_v1 = vrot.slane %v5337_v18, 2 }
 0x2b7   : > { %v5463_v25 = vsel %vm2220_vm4, %v2505_v53, %v5305_v37  ;;  %v2638_v33 = vrot.slane %v3089_v49, 2 }
 0x2b8   : > { %v5467_v32 = vsel %vm2220_vm4, %v2652_v1, %v5312_v43 }
 0x2b9   : > { %v5471_v50 = vsel %vm2220_vm4, %v2638_v33, %v5317_v0 }
 0x2d0   : > { %v5473_v2 = vpop.f32.mrb[6].mxu1 }
 0x2d1   : > { %v2151_v21 = vpop.f32.mrb[7].mxu1  ;;  %v2551_v51 = vrot.slane %v5473_v2, 6  ;;  %v2684_v18 = vrot.slane %v5473_v2, 2  ;;  %v2585_v37 = vrot.slane %v5473_v2, 7  ;;  %v3092_v36 = vpop.f32.mrb[6].mxu0  ;;  %v2718_v43 = vrot.slane %v5473_v2, 3 }
 0x2d2   : > { %v2271_v49 = vrot.slane %v2151_v21, 6  ;;  %v2404_v23 = vrot.slane %v2151_v21, 2  ;;  %v2305_v60 = vrot.slane %v2151_v21, 7  ;;  %v2071_v34 = vpop.f32.mrb[7].mxu0  ;;  %v2537_v57 = vrot.slane %v3092_v36, 6 }
 0x2d3   : > { %v5481_v0 = vsel %vm2223_vm6, %v2551_v51, %v5351_v62  ;;  %v5485_v42 = vsel %vm2223_vm6, %v2684_v18, %v5355_v17  ;;  %v2670_v45 = vrot.slane %v3092_v36, 2  ;;  %v2257_v52 = vrot.slane %v2071_v34, 6 }
 0x2d4   : > { %v5489_v16 = vsel %vm2223_vm6, %v2271_v49, %v5359_v5  ;;  %v5493_v3 = vsel %vm2223_vm6, %v2404_v23, %v5363_v27  ;;  %v2390_v63 = vrot.slane %v2071_v34, 2  ;;  %v5497_v62 = vsel %vm2223_vm6, %v2537_v57, %v5367_v61 }
 0x2d5   : > { %v5501_v46 = vsel %vm2223_vm6, %v2670_v45, %v5371_v4  ;;  %v5505_v17 = vsel %vm2223_vm6, %v2305_v60, %v5347_v11  ;;  %v2291_v5 = vrot.slane %v2071_v34, 7  ;;  %v5509_v12 = vsel %vm2223_vm6, %v2257_v52, %v5383_v58 }
 0x2d6   : > { %v5513_v27 = vsel %vm2223_vm6, %v2390_v63, %v5387_v47  ;;  %v2438_v15 = vrot.slane %v2151_v21, 3  ;;  %v2424_v61 = vrot.slane %v2071_v34, 3  ;;  %v5521_v4 = vsel %vm2223_vm6, %v2585_v37, %v5343_v26 }
 0x2d7   : > { %v5517_v44 = vsel %vm2223_vm6, %v2291_v5, %v5375_v28  ;;  %v2571_v11 = vrot.slane %v3092_v36, 7  ;;  %v5525_v31 = vsel %vm2223_vm6, %v2718_v43, %v5395_v56  ;;  %v2704_v6 = vrot.slane %v3092_v36, 3 }
 0x2d8   : > { %v2439_v58 = vsel %vm2223_vm6, %v2438_v15, %v5379_v40  ;;  %v5531_v47 = vsel %vm2223_vm6, %v2424_v61, %v5399_v54  ;;  %v5535_v28 = vsel %vm2223_vm6, %v2151_v21, %v5408_v7  ;;  %v5543_v56 = vsel %vm2223_vm6, %v2071_v34, %v5412_v10 }
 0x2d9   : > { %v5539_v26 = vsel %vm2223_vm6, %v2571_v11, %v5391_v55  ;;  %v2472_v48 = vrot.slane %v2151_v21, 4  ;;  %v2458_v13 = vrot.slane %v2071_v34, 4  ;;  %v5547_v40 = vsel %vm2223_vm6, %v2704_v6, %v5404_v38 }
 0x2da   : > { %v5552_v54 = vsel %vm2223_vm6, %v5473_v2, %v5424_v20  ;;  %v5556_v7 = vsel %vm2223_vm6, %v3092_v36, %v5429_v39  ;;  %v2752_v55 = vrot.slane %v5473_v2, 4  ;;  %v2738_v38 = vrot.slane %v3092_v36, 4 }
 0x2db   : > { %v5561_v10 = vsel %vm2223_vm6, %v2472_v48, %v5416_v24  ;;  %v5565_v9 = vsel %vm2223_vm6, %v2458_v13, %v5420_v35  ;;  %v2241_v59 = vrot.slane %v2151_v21, 5  ;;  %v2222_v53 = vrot.slane %v2071_v34, 5 }
 0x2dc   : > { %v5569_v20 = vsel %vm2223_vm6, %v2752_v55, %v5433_v41  ;;  %v2374_v1 = vrot.slane %v2151_v21, 1  ;;  %v2360_v39 = vrot.slane %v2071_v34, 1  ;;  %v5573_v33 = vsel %vm2223_vm6, %v2738_v38, %v5438_v22 }
 0x2dd   : > { %v5577_v24 = vsel %vm2223_vm6, %v2241_v59, %v5442_v19  ;;  %v2521_v35 = vrot.slane %v5473_v2, 5  ;;  %v2507_v51 = vrot.slane %v3092_v36, 5  ;;  %v5582_v18 = vsel %vm2223_vm6, %v2222_v53, %v5446_v8 }
 0x2de   : > { %v5586_v41 = vsel %vm2223_vm6, %v2374_v1, %v5450_v29  ;;  %v5590_v21 = vsel %vm2223_vm6, %v2360_v39, %v5454_v14  ;;  %v2654_v22 = vrot.slane %v5473_v2, 1  ;;  %v2640_v8 = vrot.slane %v3092_v36, 1 }
 0x2df   : > { %v5595_v19 = vsel %vm2223_vm6, %v2521_v35, %v5458_v30  ;;  %v5599_v37 = vsel %vm2223_vm6, %v2507_v51, %v5463_v25 }
 0x2e0   : > { %v5603_v49 = vsel %vm2223_vm6, %v2654_v22, %v5467_v32  ;;  %v5607_v29 = vsel %vm2223_vm6, %v2640_v8, %v5471_v50 }
 0x2f8   : > { %v5609_v14 = vpop.f32.mrb[8].mxu1 }
 0x2f9   : > { %v2161_v2 = vpop.f32.mrb[9].mxu1  ;;  %v2553_v30 = vrot.slane %v5609_v14, 5  ;;  %v2686_v23 = vrot.slane %v5609_v14, 1  ;;  %v2587_v25 = vrot.slane %v5609_v14, 6  ;;  %v2720_v36 = vrot.slane %v5609_v14, 2  ;;  %v3095_v60 = vpop.f32.mrb[8].mxu0 }
 0x2fa   : > { %v2273_v43 = vrot.slane %v2161_v2, 5  ;;  %v2406_v32 = vrot.slane %v2161_v2, 1  ;;  %v2307_v34 = vrot.slane %v2161_v2, 6  ;;  %v2440_v57 = vrot.slane %v2161_v2, 2  ;;  %v2081_v45 = vpop.f32.mrb[9].mxu0 }
 0x2fb   : > { %v5617_v50 = vsel %vm2226_vm8, %v2553_v30, %v5481_v0  ;;  %v2539_v52 = vrot.slane %v3095_v60, 5  ;;  %v2687_v63 = vsel %vm2226_vm8, %v2686_v23, %v5485_v42  ;;  %v2672_v5 = vrot.slane %v3095_v60, 1 }
 0x2fc   : > { %v5623_v15 = vsel %vm2226_vm8, %v2273_v43, %v5489_v16  ;;  %v2259_v61 = vrot.slane %v2081_v45, 5  ;;  %v2407_v11 = vsel %vm2226_vm8, %v2406_v32, %v5493_v3  ;;  %v2392_v6 = vrot.slane %v2081_v45, 1 }
 0x2fd   : > { %v5629_v48 = vsel %vm2226_vm8, %v2539_v52, %v5497_v62  ;;  %v2673_v0 = vsel %vm2226_vm8, %v2672_v5, %v5501_v46  ;;  %v5635_v42 = vsel %vm2226_vm8, %v2307_v34, %v5505_v17  ;;  %v2293_v13 = vrot.slane %v2081_v45, 6 }
 0x2fe   : > { %v5639_v16 = vsel %vm2226_vm8, %v2259_v61, %v5509_v12  ;;  %v2393_v3 = vsel %vm2226_vm8, %v2392_v6, %v5513_v27  ;;  %v2441_v55 = vsel %vm2226_vm8, %v2440_v57, %v2439_v58  ;;  %v2426_v38 = vrot.slane %v2081_v45, 2 }
 0x2ff   : > { %v5646_v62 = vsel %vm2226_vm8, %v2293_v13, %v5517_v44  ;;  %v2588_v46 = vsel %vm2226_vm8, %v2587_v25, %v5521_v4  ;;  %v2573_v17 = vrot.slane %v3095_v60, 6  ;;  %v2721_v59 = vsel %vm2226_vm8, %v2720_v36, %v5525_v31 }
 0x300   : > { %v5654_v12 = vsel %vm2226_vm8, %v2426_v38, %v5531_v47  ;;  %v2706_v53 = vrot.slane %v3095_v60, 2  ;;  %v2341_v27 = vrot.slane %v2161_v2, 7  ;;  %v2327_v1 = vrot.slane %v2081_v45, 7 }
 0x301   : > { %v2574_v58 = vsel %vm2226_vm8, %v2573_v17, %v5539_v26  ;;  %v2474_v39 = vrot.slane %v2161_v2, 3  ;;  %v2460_v44 = vrot.slane %v2081_v45, 3  ;;  %v2621_v35 = vrot.slane %v5609_v14, 7 }
 0x302   : > { %v2707_v4 = vsel %vm2226_vm8, %v2706_v53, %v5547_v40  ;;  %v2342_v31 = vsel %vm2226_vm8, %v2341_v27, %v5535_v28  ;;  %v2328_v47 = vsel %vm2226_vm8, %v2327_v1, %v5543_v56  ;;  %v2607_v51 = vrot.slane %v3095_v60, 7 }
 0x303   : > { %v2475_v22 = vsel %vm2226_vm8, %v2474_v39, %v5561_v10  ;;  %v2461_v26 = vsel %vm2226_vm8, %v2460_v44, %v5565_v9  ;;  %v5671_v8 = vsel %vm2226_vm8, %v2621_v35, %v5552_v54  ;;  %v2754_v30 = vrot.slane %v5609_v14, 3 }
 0x304   : > { %v5676_v40 = vsel %vm2226_vm8, %v2607_v51, %v5556_v7  ;;  %v2740_v28 = vrot.slane %v3095_v60, 3  ;;  %v2243_v23 = vrot.slane %v2161_v2, 4  ;;  %v2225_v56 = vrot.slane %v2081_v45, 4 }
 0x305   : > { %v2755_v25 = vsel %vm2226_vm8, %v2754_v30, %v5569_v20  ;;  %v5682_v10 = vsel %vm2226_vm8, %v2161_v2, %v5586_v41  ;;  %v5686_v54 = vsel %vm2226_vm8, %v2081_v45, %v5590_v21  ;;  %v2523_v9 = vrot.slane %v5609_v14, 4 }
 0x306   : > { %v2741_v7 = vsel %vm2226_vm8, %v2740_v28, %v5573_v33  ;;  %v2244_v36 = vsel %vm2226_vm8, %v2243_v23, %v5577_v24  ;;  %v2227_v43 = vsel %vm2226_vm8, %v2225_v56, %v5582_v18  ;;  %v2509_v20 = vrot.slane %v3095_v60, 4 }
 0x307   : > { %v5697_v41 = vsel %vm2226_vm8, %v2523_v9, %v5595_v19  ;;  %v5702_v21 = vsel %vm2226_vm8, %v5609_v14, %v5603_v49  ;;  %v5706_v2 = vsel %vm2226_vm8, %v3095_v60, %v5607_v29 }
 0x308   : > { %v5710_v33 = vsel %vm2226_vm8, %v2509_v20, %v5599_v37 }
 0x320   : > { %v5712_v24 = vpop.f32.mrb[10].mxu1 }
 0x321   : > { %v2171_v18 = vpop.f32.mrb[11].mxu1  ;;  %v2555_v19 = vrot.slane %v5712_v24, 4  ;;  %v5717_v32 = vsel %vm2229_vm9, %v5712_v24, %v2687_v63  ;;  %v2589_v49 = vrot.slane %v5712_v24, 5  ;;  %v2722_v14 = vrot.slane %v5712_v24, 1  ;;  %v3098_v29 = vpop.f32.mrb[10].mxu0 }
 0x322   : > { %v2275_v60 = vrot.slane %v2171_v18, 4  ;;  %v5722_v34 = vsel %vm2229_vm9, %v2171_v18, %v2407_v11  ;;  %v2309_v37 = vrot.slane %v2171_v18, 5  ;;  %v2442_v57 = vrot.slane %v2171_v18, 1  ;;  %v2091_v45 = vpop.f32.mrb[11].mxu0 }
 0x323   : > { %v5726_v52 = vsel %vm2229_vm9, %v2555_v19, %v5617_v50  ;;  %v2541_v5 = vrot.slane %v3098_v29, 4  ;;  %v5729_v63 = vsel %vm2229_vm9, %v3098_v29, %v2673_v0  ;;  %v5732_v61 = vsel %vm2229_vm9, %v2589_v49, %v2588_v46 }
 0x324   : > { %v5736_v6 = vsel %vm2229_vm9, %v2275_v60, %v5623_v15  ;;  %v2261_v11 = vrot.slane %v2091_v45, 4  ;;  %v5739_v13 = vsel %vm2229_vm9, %v2091_v45, %v2393_v3  ;;  %v5743_v38 = vsel %vm2229_vm9, %v2309_v37, %v5635_v42 }
 0x325   : > { %v5747_v50 = vsel %vm2229_vm9, %v2541_v5, %v5629_v48  ;;  %v2295_v0 = vrot.slane %v2091_v45, 5  ;;  %v2443_v46 = vsel %vm2229_vm9, %v2442_v57, %v2441_v55  ;;  %v2428_v17 = vrot.slane %v2091_v45, 1 }
 0x326   : > { %v5752_v15 = vsel %vm2229_vm9, %v2261_v11, %v5639_v16  ;;  %v2575_v53 = vrot.slane %v3098_v29, 5  ;;  %v2723_v3 = vsel %vm2229_vm9, %v2722_v14, %v2721_v59  ;;  %v2708_v27 = vrot.slane %v3098_v29, 1 }
 0x327   : > { %v5757_v42 = vsel %vm2229_vm9, %v2295_v0, %v5646_v62  ;;  %v5761_v48 = vsel %vm2229_vm9, %v2428_v17, %v5654_v12  ;;  %v2343_v1 = vrot.slane %v2171_v18, 6  ;;  %v2329_v39 = vrot.slane %v2091_v45, 6 }
 0x328   : > { %v5764_v55 = vsel %vm2229_vm9, %v2575_v53, %v2574_v58  ;;  %v5767_v16 = vsel %vm2229_vm9, %v2708_v27, %v2707_v4  ;;  %v2476_v44 = vrot.slane %v2171_v18, 2  ;;  %v2462_v35 = vrot.slane %v2091_v45, 2 }
 0x329   : > { %v5770_v59 = vsel %vm2229_vm9, %v2343_v1, %v2342_v31  ;;  %v5773_v62 = vsel %vm2229_vm9, %v2329_v39, %v2328_v47  ;;  %v2623_v51 = vrot.slane %v5712_v24, 6  ;;  %v2609_v12 = vrot.slane %v3098_v29, 6 }
 0x32a   : > { %v5777_v30 = vsel %vm2229_vm9, %v2476_v44, %v2475_v22  ;;  %v5780_v58 = vsel %vm2229_vm9, %v2462_v35, %v2461_v26  ;;  %v2756_v4 = vrot.slane %v5712_v24, 2  ;;  %v2742_v28 = vrot.slane %v3098_v29, 2 }
 0x32b   : > { %v5785_v23 = vsel %vm2229_vm9, %v2623_v51, %v5671_v8  ;;  %v5789_v31 = vsel %vm2229_vm9, %v2609_v12, %v5676_v40  ;;  %v2245_v47 = vrot.slane %v2171_v18, 3  ;;  %v2228_v56 = vrot.slane %v2091_v45, 3 }
 0x32c   : > { %v5792_v9 = vsel %vm2229_vm9, %v2756_v4, %v2755_v25  ;;  %v5795_v22 = vsel %vm2229_vm9, %v2742_v28, %v2741_v7  ;;  %v2377_v26 = vrot.slane %v2171_v18, 7  ;;  %v2363_v20 = vrot.slane %v2091_v45, 7 }
 0x32d   : > { %v5798_v19 = vsel %vm2229_vm9, %v2245_v47, %v2244_v36  ;;  %v5801_v8 = vsel %vm2229_vm9, %v2228_v56, %v2227_v43  ;;  %v2525_v49 = vrot.slane %v5712_v24, 3  ;;  %v2511_v40 = vrot.slane %v3098_v29, 3 }
 0x32e   : > { %v5806_v14 = vsel %vm2229_vm9, %v2377_v26, %v5682_v10  ;;  %v5810_v25 = vsel %vm2229_vm9, %v2363_v20, %v5686_v54  ;;  %v2657_v7 = vrot.slane %v5712_v24, 7  ;;  %v2643_v18 = vrot.slane %v3098_v29, 7 }
 0x32f   : > { %v5815_v36 = vsel %vm2229_vm9, %v2525_v49, %v5697_v41  ;;  %v5819_v43 = vsel %vm2229_vm9, %v2511_v40, %v5710_v33 }
 0x330   : > { %v5823_v60 = vsel %vm2229_vm9, %v2657_v7, %v5702_v21  ;;  %v5827_v10 = vsel %vm2229_vm9, %v2643_v18, %v5706_v2 }
 0x34c   : > { %v5829_v54 = vpop.f32.mrb[12].mxu1 }
 0x34d   : > { %v2181_v24 = vpop.f32.mrb[13].mxu1  ;;  %v2557_v29 = vrot.slane %v5829_v54, 3  ;;  %v2689_v41 = vrot.slane %v5829_v54, 7  ;;  %v2591_v37 = vrot.slane %v5829_v54, 4  ;;  %v5836_v33 = vsel %vm2232_vm10, %v5829_v54, %v2723_v3  ;;  %v3101_v21 = vpop.f32.mrb[12].mxu0 }
 0x34e   : > { %v2277_v57 = vrot.slane %v2181_v24, 3  ;;  %v2409_v45 = vrot.slane %v2181_v24, 7  ;;  %v2311_v5 = vrot.slane %v2181_v24, 4  ;;  %v5839_v2 = vsel %vm2232_vm10, %v2181_v24, %v2443_v46  ;;  %v2101_v11 = vpop.f32.mrb[13].mxu0 }
 0x34f   : > { %v5843_v0 = vsel %vm2232_vm10, %v2557_v29, %v5726_v52  ;;  %v2543_v17 = vrot.slane %v3101_v21, 3  ;;  %v5847_v53 = vsel %vm2232_vm10, %v2689_v41, %v5717_v32  ;;  %v2675_v27 = vrot.slane %v3101_v21, 7 }
 0x350   : > { %v5851_v3 = vsel %vm2232_vm10, %v2277_v57, %v5736_v6  ;;  %v2263_v1 = vrot.slane %v2101_v11, 3  ;;  %v5855_v46 = vsel %vm2232_vm10, %v2409_v45, %v5722_v34  ;;  %v2395_v39 = vrot.slane %v2101_v11, 7 }
 0x351   : > { %v5859_v52 = vsel %vm2232_vm10, %v2543_v17, %v5747_v50  ;;  %v5863_v44 = vsel %vm2232_vm10, %v2675_v27, %v5729_v63  ;;  %v5867_v32 = vsel %vm2232_vm10, %v2311_v5, %v5743_v38  ;;  %v2297_v6 = vrot.slane %v2101_v11, 4 }
 0x352   : > { %v5871_v35 = vsel %vm2232_vm10, %v2263_v1, %v5752_v15  ;;  %v5875_v34 = vsel %vm2232_vm10, %v2395_v39, %v5739_v13  ;;  %v5879_v50 = vsel %vm2232_vm10, %v2101_v11, %v5761_v48  ;;  %v5883_v63 = vsel %vm2232_vm10, %v2591_v37, %v5732_v61 }
 0x353   : > { %v5887_v38 = vsel %vm2232_vm10, %v2297_v6, %v5757_v42  ;;  %v2577_v51 = vrot.slane %v3101_v21, 4  ;;  %v5891_v15 = vsel %vm2232_vm10, %v3101_v21, %v5767_v16  ;;  %v2345_v12 = vrot.slane %v2181_v24, 5 }
 0x354   : > { %v2331_v13 = vrot.slane %v2101_v11, 5  ;;  %v2478_v4 = vrot.slane %v2181_v24, 1  ;;  %v2464_v28 = vrot.slane %v2101_v11, 1  ;;  %v2625_v48 = vrot.slane %v5829_v54, 5 }
 0x355   : > { %v5896_v47 = vsel %vm2232_vm10, %v2577_v51, %v5764_v55  ;;  %v5900_v61 = vsel %vm2232_vm10, %v2345_v12, %v5770_v59  ;;  %v2611_v42 = vrot.slane %v3101_v21, 5  ;;  %v2758_v56 = vrot.slane %v5829_v54, 1 }
 0x356   : > { %v5905_v16 = vsel %vm2232_vm10, %v2331_v13, %v5773_v62  ;;  %v5909_v26 = vsel %vm2232_vm10, %v2478_v4, %v5777_v30  ;;  %v5913_v20 = vsel %vm2232_vm10, %v2464_v28, %v5780_v58  ;;  %v5917_v55 = vsel %vm2232_vm10, %v2625_v48, %v5785_v23 }
 0x357   : > { %v5921_v59 = vsel %vm2232_vm10, %v2611_v42, %v5789_v31  ;;  %v5925_v62 = vsel %vm2232_vm10, %v2758_v56, %v5792_v9  ;;  %v2744_v49 = vrot.slane %v3101_v21, 1  ;;  %v2247_v40 = vrot.slane %v2181_v24, 2 }
 0x358   : > { %v2231_v30 = vrot.slane %v2101_v11, 2  ;;  %v2379_v7 = vrot.slane %v2181_v24, 6  ;;  %v2365_v18 = vrot.slane %v2101_v11, 6  ;;  %v2527_v58 = vrot.slane %v5829_v54, 2 }
 0x359   : > { %v5930_v29 = vsel %vm2232_vm10, %v2744_v49, %v5795_v22  ;;  %v5934_v23 = vsel %vm2232_vm10, %v2247_v40, %v5798_v19  ;;  %v2513_v31 = vrot.slane %v3101_v21, 2  ;;  %v2659_v41 = vrot.slane %v5829_v54, 6 }
 0x35a   : > { %v5939_v9 = vsel %vm2232_vm10, %v2231_v30, %v5801_v8  ;;  %v5943_v24 = vsel %vm2232_vm10, %v2379_v7, %v5806_v14  ;;  %v5947_v37 = vsel %vm2232_vm10, %v2365_v18, %v5810_v25  ;;  %v5951_v22 = vsel %vm2232_vm10, %v2527_v58, %v5815_v36 }
 0x35b   : > { %v5955_v19 = vsel %vm2232_vm10, %v2513_v31, %v5819_v43  ;;  %v5959_v8 = vsel %vm2232_vm10, %v2659_v41, %v5823_v60  ;;  %v2645_v54 = vrot.slane %v3101_v21, 6 }
 0x35d   : > { %v5963_v14 = vsel %vm2232_vm10, %v2645_v54, %v5827_v10 }
 0x369   : > { %v5965_v57 = vpop.f32.mrb[14].mxu1 }
 0x36a   : > { %v5967_v25 = vpop.f32.mrb[15].mxu1  ;;  %v2559_v36 = vrot.slane %v5965_v57, 2  ;;  %v2691_v45 = vrot.slane %v5965_v57, 6  ;;  %v2593_v43 = vrot.slane %v5965_v57, 3  ;;  %v2725_v5 = vrot.slane %v5965_v57, 7 }
 0x36b   : > { %v2279_v21 = vrot.slane %v5967_v25, 2  ;;  %v2411_v10 = vrot.slane %v5967_v25, 6  ;;  %v2313_v11 = vrot.slane %v5967_v25, 3  ;;  %v2445_v17 = vrot.slane %v5967_v25, 7 }
 0x36c   : > { %v5973_v60 = vpop.f32.mrb[14].mxu0  ;;  %v2560_v1 = vsel %vm2235_vm11, %v2559_v36, %v5843_v0  ;;  %v2692_v6 = vsel %vm2235_vm11, %v2691_v45, %v5847_v53  ;;  %v2627_v7 = vrot.slane %v5965_v57, 4  ;;  %v2381_v41 = vrot.slane %v5967_v25, 5 }
 0x36d   : > { %v2111_v27 = vpop.f32.mrb[15].mxu0  ;;  %v2545_v39 = vrot.slane %v5973_v60, 2  ;;  %v2677_v51 = vrot.slane %v5973_v60, 6  ;;  %v2280_v12 = vsel %vm2235_vm11, %v2279_v21, %v5851_v3  ;;  %v2412_v4 = vsel %vm2235_vm11, %v2411_v10, %v5855_v46 }
 0x36e   : > { %v2265_v13 = vrot.slane %v2111_v27, 2  ;;  %v2397_v28 = vrot.slane %v2111_v27, 6  ;;  %2283 = vrot.lane.b32.xlu1 %v2280_v12, %s3306_s15  ;;  %v2314_v53 = vsel %vm2235_vm11, %v2313_v11, %v5867_v32  ;;  %v2299_v42 = vrot.slane %v2111_v27, 3 }
 0x36f   : > { %v2546_v0 = vsel %vm2235_vm11, %v2545_v39, %v5859_v52  ;;  %v2678_v48 = vsel %vm2235_vm11, %v2677_v51, %v5863_v44  ;;  %v2446_v46 = vsel %vm2235_vm11, %v2445_v17, %v5839_v2  ;;  %v2431_v49 = vrot.slane %v2111_v27, 7 }
 0x370   : > { %v2266_v3 = vsel %vm2235_vm11, %v2265_v13, %v5871_v35  ;;  %v2398_v56 = vsel %vm2235_vm11, %v2397_v28, %v5875_v34  ;;  %v2300_v52 = vsel %vm2235_vm11, %v2299_v42, %v5887_v38  ;;  %v2594_v44 = vsel %vm2235_vm11, %v2593_v43, %v5883_v63  ;;  %v2792_v13 = vld [vmem:[%s6198_s4] sm:$0xf] }
 0x371   : > { %2281 = vrot.lane.b32.xlu0 %v2266_v3, %s3306_s15  ;;  %v2579_v32 = vrot.slane %v5973_v60, 3  ;;  %v2726_v35 = vsel %vm2235_vm11, %v2725_v5, %v5836_v33  ;;  %v2432_v34 = vsel %vm2235_vm11, %v2431_v49, %v5879_v50  ;;  %v2711_v40 = vrot.slane %v5973_v60, 7 }
 0x372   : > { %v2347_v2 = vrot.slane %v5967_v25, 4  ;;  %v2333_v30 = vrot.slane %v2111_v27, 4  ;;  %2415 = vrot.lane.b32.xlu1 %v2412_v4, %s3306_s15  ;;  %v2480_v63 = vsel %vm2235_vm11, %v5967_v25, %v5909_v26  ;;  %v2466_v33 = vsel %vm2235_vm11, %v2111_v27, %v5913_v20 }
 0x373   : > { %v2580_v38 = vsel %vm2235_vm11, %v2579_v32, %v5896_v47  ;;  %v2712_v50 = vsel %vm2235_vm11, %v2711_v40, %v5891_v15  ;;  %v2613_v47 = vrot.slane %v5973_v60, 4  ;;  %v2628_v26 = vsel %vm2235_vm11, %v2627_v7, %v5917_v55 }
 0x374   : > { %v2348_v18 = vsel %vm2235_vm11, %v2347_v2, %v5900_v61  ;;  %v2334_v58 = vsel %vm2235_vm11, %v2333_v30, %v5905_v16  ;;  %v2760_v20 = vsel %vm2235_vm11, %v5965_v57, %v5925_v62  ;;  %v2746_v15 = vsel %vm2235_vm11, %v5973_v60, %v5930_v29 }
 0x375   : > { %2413 = vrot.lane.b32.xlu0 %v2398_v56, %s3306_s15  ;;  %v2249_v61 = vrot.slane %v5967_v25, 1  ;;  %v2614_v16 = vsel %vm2235_vm11, %v2613_v47, %v5921_v59  ;;  %v2234_v31 = vrot.slane %v2111_v27, 1  ;;  %v2367_v54 = vrot.slane %v2111_v27, 5 }
 0x376   : > { %2563 = vrot.lane.b32.xlu1 %v2560_v1, %s3306_s15  ;;  %v2529_v62 = vrot.slane %v5965_v57, 1  ;;  %v2515_v36 = vrot.slane %v5973_v60, 1  ;;  %v2661_v29 = vrot.slane %v5965_v57, 5  ;;  %v6053_v59 = vsel %vm2235_vm11, %v2381_v41, %v5943_v24 }
 0x377   : > { %v2250_v55 = vsel %vm2235_vm11, %v2249_v61, %v5934_v23  ;;  %v2236_v45 = vsel %vm2235_vm11, %v2234_v31, %v5939_v9  ;;  %v6057_v25 = vsel %vm2235_vm11, %v2367_v54, %v5947_v37  ;;  %v2647_v43 = vrot.slane %v5973_v60, 5 }
 0x378   : > { %v6063_v23 = vsel %vm2235_vm11, %v2529_v62, %v5951_v22  ;;  %v6067_v57 = vsel %vm2235_vm11, %v2515_v36, %v5955_v19  ;;  %v6071_v9 = vsel %vm2235_vm11, %v2661_v29, %v5959_v8  ;;  %v2794_v17 = vlaneseq }
 0x379   : > { %2561 = vrot.lane.b32.xlu0 %v2546_v0, %s3306_s15  ;;  %v6075_v24 = vsel %vm2235_vm11, %v2647_v43, %v5963_v14 }
 0x37a   : > { %2695 = vrot.lane.b32.xlu1 %v2692_v6, %s3306_s15  ;;  %v2795_v39 = vshrl.u32 %v2794_v17, 7 }
 0x37c   : > { %v2796_v12 = vsub.s32 0, %v2795_v39  ;;  %v2808_v47 = vsub.s32 3, %v2795_v39 }
 0x37d   : > { %2693 = vrot.lane.b32.xlu0 %v2678_v48, %s3306_s15  ;;  %v2800_v48 = vsub.s32 1, %v2795_v39 }
 0x37e   : > { %2317 = vrot.lane.b32.xlu1 %v2314_v53, %s3310_s24  ;;  %v2797_v0 = vrot.slane %v2792_v13, %v2796_v12  ;;  %v2809_v36 = vrot.slane %v2792_v13, %v2808_v47 }
 0x37f   : > { %v2801_v32 = vrot.slane %v2792_v13, %v2800_v48 }
 0x381   : > { %2315 = vrot.lane.b32.xlu0 %v2300_v52, %s3310_s24 }
 0x382   : > { %2449 = vrot.lane.b32.xlu1 %v2446_v46, %s3310_s24 }
 0x385   : > { %2447 = vrot.lane.b32.xlu0 %v2432_v34, %s3310_s24 }
 0x386   : > { %2597 = vrot.lane.b32.xlu1 %v2594_v44, %s3310_s24 }
 0x389   : > { %2595 = vrot.lane.b32.xlu0 %v2580_v38, %s3310_s24 }
 0x38a   : > { %2729 = vrot.lane.b32.xlu1 %v2726_v35, %s3310_s24  ;;  %v2804_v35 = vsub.s32 2, %v2795_v39 }
 0x38d   : > { %2727 = vrot.lane.b32.xlu0 %v2712_v50, %s3310_s24  ;;  %s6104_s24 = scalar_lea.vmem [#allocation2], %s2976_s13 }
 0x38e   : > { %2351 = vrot.lane.b32.xlu1 %v2348_v18, %s3311_s8  ;;  %s2847_s27 = sshll.u32 %s6104_s24, 4  ;;  %s6142_s27 = int_to_ptr.vmem [resolvable:$true] %s2847_s27 }
 0x38f   : > { %s3223_s9 = scalar_lea.vmem %s6142_s27, 1024  ;;  %p3230_p1 = scmp.lt.s32.totalorder %s6142_s27, %s3228_s11 }
 0x390   : > { %p3224_p12 = scmp.ne.s32.totalorder %s6142_s27, %s3223_s9 }
 0x391   : > { %2349 = vrot.lane.b32.xlu0 %v2334_v58, %s3311_s8  ;;  %v2805_v58 = vrot.slane %v2792_v13, %v2804_v35 }
 0x392   : > { %2483 = vrot.lane.b32.xlu1 %v2480_v63, %s3311_s8  ;;  %p3225_p13 = pnand %p3224_p12, %p3384_p4 }
 0x394   : > { %p3226_p0 = pneg %p3225_p13 }
 0x395   : > { %2481 = vrot.lane.b32.xlu0 %v2466_v33, %s3311_s8 }
 0x396   : > { %2631 = vrot.lane.b32.xlu1 %v2628_v26, %s3311_s8 }
 0x399   : > { %2629 = vrot.lane.b32.xlu0 %v2614_v16, %s3311_s8 }
 0x39a   : > { %2763 = vrot.lane.b32.xlu1 %v2760_v20, %s3311_s8 }
 0x39d   : > { %2761 = vrot.lane.b32.xlu0 %v2746_v15, %s3311_s8  ;;  %s3229_s8 = scalar_lea.vmem %s3228_s11, 2048 }
 0x39e   : > { %p3231_p2 = scmp.lt.s32.totalorder %s3229_s8, %s3223_s9 }
 0x3a0   : > { %p3232_p3 = por %p3231_p2, %p3230_p1 }
 0x3a2   : > { %p3233_p5 = pnand %p3232_p3, %p3226_p0 }
 0x3e0   : > { %v2284_v37 = vpop.permute.xlu1 %2283 }
 0x3e1   : > { %v2768_v53 = vsel %vm1704_vm7, %v2250_v55, %v2284_v37 }
 0x3e3   : > { %v2282_v22 = vpop.permute.xlu0 %2281 }
 0x3e4   : > { %v2416_v19 = vpop.permute.xlu1 %2415  ;;  %v2767_v56 = vsel %vm1704_vm7, %v2236_v45, %v2282_v22 }
 0x3e5   : > { %v2775_v34 = vsel %vm1704_vm7, %v6053_v59, %v2416_v19 }
 0x3e7   : > { %v2414_v8 = vpop.permute.xlu0 %2413 }
 0x3e8   : > { %v2564_v14 = vpop.permute.xlu1 %2563  ;;  %v2774_v63 = vsel %vm1704_vm7, %v6057_v25, %v2414_v8 }
 0x3e9   : > { %v2781_v26 = vsel %vm1704_vm7, %v6063_v23, %v2564_v14 }
 0x3eb   : > { %v2562_v5 = vpop.permute.xlu0 %2561 }
 0x3ec   : > { %v2696_v60 = vpop.permute.xlu1 %2695  ;;  %v2780_v31 = vsel %vm1704_vm7, %v6067_v57, %v2562_v5 }
 0x3ed   : > { %v2787_v29 = vsel %vm1704_vm7, %v6071_v9, %v2696_v60 }
 0x3ef   : > { %v6087_v21 = vpop.permute.xlu0 %2693 }
 0x3f0   : > { %v2318_v10 = vpop.permute.xlu1 %2317  ;;  %v2786_v23 = vsel %vm1704_vm7, %v6075_v24, %v6087_v21 }
 0x3f1   : > { %v2770_v42 = vsel %vm1836_vm12, %v2768_v53, %v2318_v10 }
 0x3f3   : > { %v2316_v11 = vpop.permute.xlu0 %2315 }
 0x3f4   : > { %v2450_v27 = vpop.permute.xlu1 %2449  ;;  %v2769_v49 = vsel %vm1836_vm12, %v2767_v56, %v2316_v11 }
 0x3f5   : > { %v2777_v2 = vsel %vm1836_vm12, %v2775_v34, %v2450_v27 }
 0x3f7   : > { %v2448_v1 = vpop.permute.xlu0 %2447 }
 0x3f8   : > { %v2598_v6 = vpop.permute.xlu1 %2597  ;;  %v2776_v7 = vsel %vm1836_vm12, %v2774_v63, %v2448_v1 }
 0x3f9   : > { %v2783_v15 = vsel %vm1836_vm12, %v2781_v26, %v2598_v6 }
 0x3fb   : > { %v2596_v51 = vpop.permute.xlu0 %2595 }
 0x3fc   : > { %v2730_v4 = vpop.permute.xlu1 %2729  ;;  %v2782_v54 = vsel %vm1836_vm12, %v2780_v31, %v2596_v51 }
 0x3fd   : > { %v2789_v59 = vsel %vm1836_vm12, %v2787_v29, %v2730_v4 }
 0x3ff   : > { %v2728_v28 = vpop.permute.xlu0 %2727 }
 0x400   : > { %v2352_v3 = vpop.permute.xlu1 %2351  ;;  %v2788_v9 = vsel %vm1836_vm12, %v2786_v23, %v2728_v28 }
 0x401   : > { %v2773_v46 = vsel %vm2771_vm13, %v2770_v42, %v2352_v3 }
 0x402   : > { %v2818_v52 = vadd.f32 %v2797_v0, %v2773_v46 }
 0x403   : > { %v2350_v44 = vpop.permute.xlu0 %2349 }
 0x404   : > { %v2772_v40 = vsel %vm2771_vm13, %v2769_v49, %v2350_v44  ;;  %2826 = vst [vmem:[%s6104_s24 + $0x20] sm:$0xff] %v2818_v52  ;;  %v2484_v38 = vpop.permute.xlu1 %2483 }
 0x405   : > { %v2814_v30 = vadd.f32 %v2797_v0, %v2772_v40  ;;  %v2779_v33 = vsel %vm2771_vm13, %v2777_v2, %v2484_v38 }
 0x406   : > { %v2819_v50 = vadd.f32 %v2801_v32, %v2779_v33 }
 0x407   : > { %2822 = vst [vmem:[%s6104_s24] sm:$0xff] %v2814_v30  ;;  %v2482_v18 = vpop.permute.xlu0 %2481 }
 0x408   : > { %v2778_v20 = vsel %vm2771_vm13, %v2776_v7, %v2482_v18  ;;  %2827 = vst [vmem:[%s6104_s24 + $0x28] sm:$0xff] %v2819_v50  ;;  %v2632_v16 = vpop.permute.xlu1 %2631 }
 0x409   : > { %v2815_v61 = vadd.f32 %v2801_v32, %v2778_v20  ;;  %v2785_v41 = vsel %vm2771_vm13, %v2783_v15, %v2632_v16 }
 0x40a   : > { %v2820_v55 = vadd.f32 %v2805_v58, %v2785_v41 }
 0x40b   : > { %2823 = vst [vmem:[%s6104_s24 + $0x8] sm:$0xff] %v2815_v61  ;;  %v2630_v62 = vpop.permute.xlu0 %2629 }
 0x40c   : > { %v2784_v45 = vsel %vm2771_vm13, %v2782_v54, %v2630_v62  ;;  %2828 = vst [vmem:[%s6104_s24 + $0x30] sm:$0xff] %v2820_v55  ;;  %v2764_v43 = vpop.permute.xlu1 %2763 }
 0x40d   : > { %v2816_v25 = vadd.f32 %v2805_v58, %v2784_v45  ;;  %v2791_v57 = vsel %vm2771_vm13, %v2789_v59, %v2764_v43 }
 0x40e   : > { %v2821_v37 = vadd.f32 %v2809_v36, %v2791_v57 }
 0x40f   : > { %2824 = vst [vmem:[%s6104_s24 + $0x10] sm:$0xff] %v2816_v25  ;;  %v2762_v22 = vpop.permute.xlu0 %2761 }
 0x410   : > { %v2790_v19 = vsel %vm2771_vm13, %v2788_v9, %v2762_v22  ;;  %2829 = vst [vmem:[%s6104_s24 + $0x38] sm:$0xff] %v2821_v37 }
 0x411   : > { %v2817_v8 = vadd.f32 %v2809_v36, %v2790_v19 }
 0x413   : > { %2825 = vst [vmem:[%s6104_s24 + $0x18] sm:$0xff] %v2817_v8 }
 0x414   : > { %3236 = shalt.err (!%p3233_p5)
}
 0x415   : > { %s3237_s16 = scalar_lea.hbm %s6139_s14, 1024  ;;  %s3241_s13 = scalar_lea.hbm %s6199_s5, 2048 }
 0x416   : > { %p3238_p6 = scmp.ne.s32.totalorder %s6139_s14, %s3237_s16  ;;  %p3242_p10 = scmp.lt.u32.totalorder %s6139_s14, %s6199_s5 }
 0x417   : > { %p3243_p11 = scmp.lt.u32.totalorder %s3241_s13, %s3237_s16  ;;  %p3245_p13 = scmp.lt.u32.totalorder %s3237_s16, %s6139_s14 }
 0x418   : > { %p3239_p7 = pnand %p3238_p6, %p3384_p4 }
 0x419   : > { %p3244_p12 = por %p3243_p11, %p3242_p10 }
 0x41a   : > { %p3240_p9 = pneg %p3239_p7 }
 0x41b   : > { %p3246_p0 = por %p3245_p13, %p3244_p12 }
 0x41d   : > { %p3247_p1 = pnand %p3246_p0, %p3240_p9 }
 0x41f   : > { %3250 = shalt.err (!%p3247_p1)
}
 0x420   : > { %s3313_s29 = smov 512  }
 0x421   : > { %3157 = dma.vmem_to_hbm [thread:$0]  (%p3384_p4), %s6142_s27, 1024, %s6139_s14, %s6147_s21, %s3313_s29, %s3313_s29, %s3306_s15  }
 0x422 PF: > { %p3164_p2 = scmp.ge.s32.totalorder %s3301_s23, 2  ;;  %s2862_s7 = sand.u32 1, %s3281_s18  }
 0x423   : > { %s2863_s9 = scalar_lea.sflag [#allocation3], %s2862_s7 }
 0x424   : > { %p3160_p3 = pnand %p3164_p2, %p3391_p8 }
 0x426   : > { %3276 = dma.done.wait (!%p3160_p3), %s2863_s9, 1024  }
 0x427   : > { %3278 = vsyncadd (!%p3160_p3), %s2863_s9, 4294966272  ;;  %s18_s23 = sadd.s32 1, %s3301_s23   ;;  %s6548_s18 = smov %s3285_s19 }
 0x428   : > { %p15_p5 = scmp.ge.s32.totalorder %s18_s23, 4   ;;  %s6549_s19 = smov %s3289_s20 }
 0x429   : > { %s6550_s20 = smov %s3397_s6  ;;  %s6551_s21 = smov %s3297_s22 }
 0x42a   : > { %s6552_s22 = smov %s6554_s26  ;;  %17 = sbr.rel (!%p15_p5) target bundleno = 4 (0x4), region = 81 }
 0x431   :  { %2868 = vsyncpa [#allocation3], 1 }
 0x432   :  { %2870 = vsyncpa [#allocation3 + $0x1], 1 }

</bundles_post_ra>
